<compile_context>
chip_gen: v7x
topology: tpu7x:2x2x1
jax: 0.10.0
libtpu: 0.0.40
codegen_flags: <defaults>
</compile_context>

<pallas_src>
import functools

import numpy as np
import jax
import jax.numpy as jnp
from jax import lax
from jax.experimental import pallas as pl
from jax.experimental.pallas import tpu as pltpu

N_FEATURES = 4
WINDOW = 8            # >= 3  => feature_dim = 32 + 4 * n_features = 48
BATCH = 2
HIDDEN = 32           # LSTM hidden size
EMBED = 256
LN_EPS = 1e-5

# ---- lane offsets inside the packed weight banks (all multiples of 128) ----
# wbig: (256, 2048) bf16
_O_AWV_P, _O_AWO_P, _O_AWV_V, _O_AWO_V = 0, 256, 512, 768
_O_PW0, _O_VW0, _O_PW1, _O_VW1 = 1024, 1280, 1536, 1664
_O_PW2B, _O_VW2B = 1792, 1920
# wmid: (128, 512) bf16
_O_PW2A, _O_VW2A, _O_PW3B, _O_VW3B = 0, 128, 256, 384
# wtail: (64, 384) bf16
_O_PW3A, _O_VW3A, _O_WLAST = 0, 128, 256


def _bf16_gates_default():
    """bf16 LSTM gate math only on chips with bf16 VPU/EUP (v6e / v7x)."""
    try:
        kind = jax.devices()[0].device_kind.lower()
    except Exception:  # pragma: no cover - no accelerator during import
        return False
    return not any(v in kind for v in ("v2", "v3", "v4", "v5"))


BF16_GATES = _bf16_gates_default()


def _mm(a, w):
    """bf16 MXU matmul with f32 accumulation."""
    return jnp.dot(a.astype(w.dtype), w, preferred_element_type=jnp.float32)


def _layer_norm(x, gamma, beta):
    m = jnp.mean(x, axis=-1, keepdims=True)
    v = jnp.mean(jnp.square(x - m), axis=-1, keepdims=True)
    return (x - m) * lax.rsqrt(v + LN_EPS) * gamma + beta


def _forward_core(x, wlx, wrec, wproj, wbig, wmid, wtail, bank, *, bf16_gates):
    """Shared forward math.

    wlx/wrec/wproj/wbig/wmid/wtail/bank may be Pallas refs (slicing loads just
    the needed windows) or plain jnp arrays (pure-JAX reference path).
    x must be a materialized array.
    """
    f32, bf16 = jnp.float32, jnp.bfloat16
    adt = bf16                                  # trunk / attention activation dtype
    gdt = bf16 if bf16_gates else f32           # LSTM gate / state dtype
    F, H, E, W = N_FEATURES, HIDDEN, EMBED, WINDOW
    B = x.shape[0]
    G = 4 * H                                   # 128 gate lanes per cell

    # ---- window statistics (two-pass variance, matches torch.std unbiased=False) ----
    x0 = x[:, 0:F]
    ssum, smax, smin = x0, x0, x0
    for t in range(1, W):
        xt = x[:, t * F:(t + 1) * F]
        ssum = ssum + xt
        smax = jnp.maximum(smax, xt)
        smin = jnp.minimum(smin, xt)
    mean = ssum * (1.0 / W)
    d0 = x0 - mean
    ssq = d0 * d0
    for t in range(1, W):
        d = x[:, t * F:(t + 1) * F] - mean
        ssq = ssq + d * d
    std = jnp.sqrt(ssq * (1.0 / W))

    # ---- 2-layer LSTM ----
    # layer-0 input projection for all timesteps hoisted into ONE matmul
    xp = _mm(x, wlx[...]) + bank[0:1, :]        # (B, W*4H), gate order [i,f,o,g]
    # fused recurrence weights: one (B,64) x (64,256) matmul per step produces
    #   lanes 0:128  -> g1_t      = [h0_t ; h1_{t-1}] @ [Wih1 ; Whh1]
    #   lanes 128:256-> rec_g0_{t+1} = h0_t @ Whh0
    wrec_all = wrec[...]                        # (2H, 2G) bf16
    b1 = bank[1:2, 0:G]

    def cell(g, c):
        g = g.astype(gdt)
        s = jax.nn.sigmoid(g[:, 0:3 * H])       # one sigmoid over i|f|o lanes
        gg = jnp.tanh(g[:, 3 * H:G])            # one tanh over g lanes
        c_new = s[:, H:2 * H] * c + s[:, 0:H] * gg
        h_new = s[:, 2 * H:3 * H] * jnp.tanh(c_new)
        return h_new, c_new

    h0 = c0 = h1 = c1 = jnp.zeros((B, H), gdt)
    rec_g0 = jnp.zeros((B, G), f32)             # h0-recurrent part of layer-0 gates
    for t in range(W):                          # W is small & static: unroll
        g0 = xp[:, t * G:(t + 1) * G] + rec_g0
        h0, c0 = cell(g0, c0)
        m = _mm(jnp.concatenate([h0, h1], axis=1), wrec_all)    # (B, 2G) f32
        g1 = m[:, 0:G] + b1
        rec_g0 = m[:, G:2 * G]                  # used at step t+1 (dead at t == W-1)
        h1, c1 = cell(g1, c1)

    # ---- fused policy+value projection: one (B,48) x (48,512) matmul ----
    feats = jnp.concatenate([h1.astype(f32), mean, std, smax, smin], axis=1)  # (B,48)
    pv = _mm(feats, wproj[...]) + bank[2:3, 0:2 * E]                          # (B,512)
    pol_f = _layer_norm(pv[:, 0:E], bank[3:4, 0:E], bank[3:4, E:2 * E]).astype(adt)
    val_f = _layer_norm(pv[:, E:2 * E], bank[3:4, 2 * E:3 * E],
                        bank[3:4, 3 * E:4 * E]).astype(adt)

    # ---- single-token MHA == out_proj(v_proj(x)) (softmax over 1 key is 1) ----
    pol_f = (_mm((_mm(pol_f, wbig[:, _O_AWV_P:_O_AWV_P + E])
                  + bank[4:5, 0:E]).astype(adt),
                 wbig[:, _O_AWO_P:_O_AWO_P + E]) + bank[4:5, E:2 * E]).astype(adt)
    val_f = (_mm((_mm(val_f, wbig[:, _O_AWV_V:_O_AWV_V + E])
                  + bank[4:5, 2 * E:3 * E]).astype(adt),
                 wbig[:, _O_AWO_V:_O_AWO_V + E]) + bank[4:5, 3 * E:4 * E]).astype(adt)

    # ---- skip-connection MLP trunks (torch.cat folded into split weight blocks) ----
    def trunk(xf, w0, b0, w1_, b1_, w2a, w2b, b2, w3a, w3b, b3):
        a0 = jax.nn.relu(_mm(xf, w0) + b0).astype(adt)
        a1 = jax.nn.relu(_mm(a0, w1_) + b1_).astype(adt)
        o2 = jax.nn.relu(_mm(a1, w2a) + _mm(a0, w2b) + b2).astype(adt)   # cat([a1, a0])
        o3 = jax.nn.relu(_mm(o2, w3a) + _mm(a1, w3b) + b3).astype(adt)   # cat([o2, a1])
        return o3

    o3_p = trunk(pol_f,
                 wbig[:, _O_PW0:_O_PW0 + E], bank[5:6, 0:E],
                 wbig[:, _O_PW1:_O_PW1 + 128], bank[6:7, 0:128],
                 wmid[:, _O_PW2A:_O_PW2A + 64], wbig[:, _O_PW2B:_O_PW2B + 64],
                 bank[7:8, 0:64],
                 wtail[:, _O_PW3A:_O_PW3A + 32], wmid[:, _O_PW3B:_O_PW3B + 32],
                 bank[7:8, 256:288])
    o3_v = trunk(val_f,
                 wbig[:, _O_VW0:_O_VW0 + E], bank[5:6, E:2 * E],
                 wbig[:, _O_VW1:_O_VW1 + 128], bank[6:7, 128:256],
                 wmid[:, _O_VW2A:_O_VW2A + 64], wbig[:, _O_VW2B:_O_VW2B + 64],
                 bank[7:8, 128:192],
                 wtail[:, _O_VW3A:_O_VW3A + 32], wmid[:, _O_VW3B:_O_VW3B + 32],
                 bank[7:8, 384:416])

    # ---- fused final layer -> lane-dense (B, 128) slab [pol(16) | val(8) | 0] ----
    out = _mm(jnp.concatenate([o3_p, o3_v], axis=1),
              wtail[:, _O_WLAST:_O_WLAST + 128])
    return out + bank[8:9, 0:128]


def windfarm_kernel(x_ref, wlx_ref, wrec_ref, wproj_ref, wbig_ref, wmid_ref,
                    wtail_ref, bank_ref, out_ref, *, bf16_gates):
    out = _forward_core(x_ref[...], wlx_ref, wrec_ref, wproj_ref, wbig_ref,
                        wmid_ref, wtail_ref, bank_ref, bf16_gates=bf16_gates)
    out_ref[...] = out.astype(out_ref.dtype)


def _pick_tile(batch):
    """Row-tile size: whole batch below 16; otherwise >=2 tiles of multiples of 8
    (megacore sharding on v7x), capped at 512 rows (VMEM / spill headroom)."""
    if batch < 16:
        return batch
    return max(8, min(512, ((batch // 2) // 8) * 8))


@jax.jit
def run_pallas(obs, wlx, wrec, wproj, wbig, wmid, wtail, bank):
    B = obs.shape[0]
    tile_b = _pick_tile(B)
    n_tiles = pl.cdiv(B, tile_b)
    Bp = n_tiles * tile_b
    if Bp != B:                                   # ragged batch -> zero-pad rows
        obs = jnp.pad(obs, ((0, Bp - B), (0, 0)))

    def full(a):                                  # resident full-array block
        return pl.BlockSpec(a.shape, lambda i: (0, 0))

    kernel = functools.partial(windfarm_kernel, bf16_gates=BF16_GATES)
    slab = pl.pallas_call(
        kernel,
        out_shape=jax.ShapeDtypeStruct((Bp, 128), jnp.float32),
        grid=(n_tiles,),
        in_specs=[pl.BlockSpec((tile_b, obs.shape[1]), lambda i: (i, 0)),
                  full(wlx), full(wrec), full(wproj),
                  full(wbig), full(wmid), full(wtail), full(bank)],
        out_specs=pl.BlockSpec((tile_b, 128), lambda i: (i, 0)),
        compiler_params=pltpu.CompilerParams(
            # batch tiles are independent -> sharded across both TensorCores on v7x
            dimension_semantics=("parallel",),
            vmem_limit_bytes=32 * 1024 * 1024),
    )(obs, wlx, wrec, wproj, wbig, wmid, wtail, bank)
    return slab[:B, 0:16], slab[:B, 16:24]


# ---------------------------------------------------------------------------
# Parameter generation (PyTorch layout) + packing into the fused kernel banks.
# ---------------------------------------------------------------------------
def init_torch_params(key):
    """Synthetic parameters in PyTorch layout: Linear weight (out,in), bias (out,)."""
    F, H, E = N_FEATURES, HIDDEN, EMBED
    specs = {
        "lstm.w_ih0": (4 * H, F), "lstm.w_hh0": (4 * H, H),
        "lstm.b_ih0": (4 * H,), "lstm.b_hh0": (4 * H,),
        "lstm.w_ih1": (4 * H, H), "lstm.w_hh1": (4 * H, H),
        "lstm.b_ih1": (4 * H,), "lstm.b_hh1": (4 * H,),
        "policy_proj.w": (E, 48), "policy_proj.b": (E,),
        "value_proj.w": (E, 48), "value_proj.b": (E,),
        "policy_ln.g": (E,), "policy_ln.b": (E,),
        "value_ln.g": (E,), "value_ln.b": (E,),
        "policy_attn.in_w": (3 * E, E), "policy_attn.in_b": (3 * E,),
        "policy_attn.out_w": (E, E), "policy_attn.out_b": (E,),
        "value_attn.in_w": (3 * E, E), "value_attn.in_b": (3 * E,),
        "value_attn.out_w": (E, E), "value_attn.out_b": (E,),
        "policy_l0.w": (E, E), "policy_l0.b": (E,),
        "policy_l1.w": (128, E), "policy_l1.b": (128,),
        "policy_l2.w": (64, 128 + E), "policy_l2.b": (64,),
        "policy_l3.w": (32, 64 + 128), "policy_l3.b": (32,),
        "policy_l4.w": (16, 32), "policy_l4.b": (16,),
        "value_l0.w": (E, E), "value_l0.b": (E,),
        "value_l1.w": (128, E), "value_l1.b": (128,),
        "value_l2.w": (64, 128 + E), "value_l2.b": (64,),
        "value_l3.w": (32, 64 + 128), "value_l3.b": (32,),
        "value_l4.w": (8, 32), "value_l4.b": (8,),
    }
    names = sorted(specs)
    keys = jax.random.split(key, len(names))
    p = {}
    for k, name in zip(keys, names):
        shape = specs[name]
        if name.endswith(".g"):                              # layer-norm gamma
            p[name] = 1.0 + 0.05 * jax.random.normal(k, shape, jnp.float32)
        elif len(shape) == 1:                                # biases / layer-norm beta
            p[name] = 0.05 * jax.random.normal(k, shape, jnp.float32)
        else:                                                # weights
            scale = np.float32(1.0 / np.sqrt(shape[-1]))
            p[name] = scale * jax.random.normal(k, shape, jnp.float32)
    return p


def pack_params(p):
    """Pack PyTorch-layout parameters into 7 fused kernel arrays (weights in bf16)."""
    F, H, E, W = N_FEATURES, HIDDEN, EMBED, WINDOW
    G = 4 * H
    f32, bf16 = jnp.float32, jnp.bfloat16

    def reorder(w):          # torch gate order [i,f,g,o] -> kernel order [i,f,o,g]
        return jnp.concatenate([w[0:2 * H], w[3 * H:4 * H], w[2 * H:3 * H]], axis=0)

    wih0 = reorder(p["lstm.w_ih0"]).T                      # (F, 4H)
    whh0 = reorder(p["lstm.w_hh0"]).T                      # (H, 4H)
    b0 = reorder(p["lstm.b_ih0"] + p["lstm.b_hh0"])        # (4H,)
    wih1 = reorder(p["lstm.w_ih1"]).T                      # (H, 4H)
    whh1 = reorder(p["lstm.w_hh1"]).T                      # (H, 4H)
    b1 = reorder(p["lstm.b_ih1"] + p["lstm.b_hh1"])        # (4H,)

    # layer-0 input projection for all W timesteps as ONE block-diagonal matmul
    wlx = jnp.kron(jnp.eye(W, dtype=f32), wih0)            # (W*F, W*4H)
    # fused recurrence weights (2H, 2*4H):
    #   cols 0:G   rows [0:H, H:2H] = [Wih1 ; Whh1]  (produces g1_t)
    #   cols G:2G  rows [0:H]       =  Whh0          (produces rec part of g0_{t+1})
    wrec = jnp.zeros((2 * H, 2 * G), f32)
    wrec = wrec.at[0:H, 0:G].set(wih1)
    wrec = wrec.at[H:2 * H, 0:G].set(whh1)
    wrec = wrec.at[0:H, G:2 * G].set(whh0)
    wproj = jnp.concatenate([p["policy_proj.w"].T, p["value_proj.w"].T], axis=1)  # (48, 512)

    awv_p = p["policy_attn.in_w"][2 * E:3 * E].T           # v_proj weight
    awo_p = p["policy_attn.out_w"].T
    awv_v = p["value_attn.in_w"][2 * E:3 * E].T
    awo_v = p["value_attn.out_w"].T
    pw0, vw0 = p["policy_l0.w"].T, p["value_l0.w"].T       # (E, E)
    pw1, vw1 = p["policy_l1.w"].T, p["value_l1.w"].T       # (E, 128)
    pw2a = p["policy_l2.w"][:, 0:128].T                    # (128, 64)  acts on a1
    pw2b = p["policy_l2.w"][:, 128:128 + E].T              # (E, 64)    acts on a0
    vw2a = p["value_l2.w"][:, 0:128].T
    vw2b = p["value_l2.w"][:, 128:128 + E].T
    pw3a = p["policy_l3.w"][:, 0:64].T                     # (64, 32)   acts on o2
    pw3b = p["policy_l3.w"][:, 64:192].T                   # (128, 32)  acts on a1
    vw3a = p["value_l3.w"][:, 0:64].T
    vw3b = p["value_l3.w"][:, 64:192].T
    pw4, vw4 = p["policy_l4.w"].T, p["value_l4.w"].T       # (32,16), (32,8)

    zE64 = jnp.zeros((E, 64), f32)
    wbig = jnp.concatenate([awv_p, awo_p, awv_v, awo_v, pw0, vw0, pw1, vw1,
                            pw2b, zE64, vw2b, zE64], axis=1)           # (256, 2048)

    z128_64 = jnp.zeros((128, 64), f32)
    z128_96 = jnp.zeros((128, 96), f32)
    wmid = jnp.concatenate([pw2a, z128_64, vw2a, z128_64,
                            pw3b, z128_96, vw3b, z128_96], axis=1)     # (128, 512)

    w_last = jnp.zeros((2 * H, 128), f32)
    w_last = w_last.at[0:H, 0:16].set(pw4).at[H:2 * H, 16:24].set(vw4)
    z64_96 = jnp.zeros((2 * H, 96), f32)
    wtail = jnp.concatenate([pw3a, z64_96, vw3a, z64_96, w_last], axis=1)  # (64, 384)

    bank = jnp.zeros((9, 1024), f32)
    bank = bank.at[0, :].set(jnp.tile(b0, W))                          # layer-0 bias x W
    bank = bank.at[1, 0:4 * H].set(b1)                                 # layer-1 bias
    bank = bank.at[2, 0:E].set(p["policy_proj.b"]).at[2, E:2 * E].set(p["value_proj.b"])
    bank = bank.at[3, 0:E].set(p["policy_ln.g"]).at[3, E:2 * E].set(p["policy_ln.b"])
    bank = bank.at[3, 2 * E:3 * E].set(p["value_ln.g"]).at[3, 3 * E:4 * E].set(p["value_ln.b"])
    bank = bank.at[4, 0:E].set(p["policy_attn.in_b"][2 * E:3 * E])
    bank = bank.at[4, E:2 * E].set(p["policy_attn.out_b"])
    bank = bank.at[4, 2 * E:3 * E].set(p["value_attn.in_b"][2 * E:3 * E])
    bank = bank.at[4, 3 * E:4 * E].set(p["value_attn.out_b"])
    bank = bank.at[5, 0:E].set(p["policy_l0.b"]).at[5, E:2 * E].set(p["value_l0.b"])
    bank = bank.at[6, 0:128].set(p["policy_l1.b"]).at[6, 128:256].set(p["value_l1.b"])
    bank = bank.at[7, 0:64].set(p["policy_l2.b"]).at[7, 128:192].set(p["value_l2.b"])
    bank = bank.at[7, 256:288].set(p["policy_l3.b"]).at[7, 384:416].set(p["value_l3.b"])
    bank = bank.at[8, 0:16].set(p["policy_l4.b"]).at[8, 16:24].set(p["value_l4.b"])

    return (wlx.astype(bf16), wrec.astype(bf16), wproj.astype(bf16),
            wbig.astype(bf16), wmid.astype(bf16), wtail.astype(bf16), bank)


# ---------------------------------------------------------------------------
# Pure-JAX f32 reference in the original (PyTorch) parameter layout.
# ---------------------------------------------------------------------------
def reference_f32(obs, p):
    F, H, E, W = N_FEATURES, HIDDEN, EMBED, WINDOW
    B = obs.shape[0]
    x = obs.reshape(B, W, F)

    def lstm_layer(seq, w_ih, w_hh, b_ih, b_hh):
        h = jnp.zeros((B, H), jnp.float32)
        c = jnp.zeros((B, H), jnp.float32)
        hs = []
        for t in range(W):
            g = seq[:, t] @ w_ih.T + h @ w_hh.T + b_ih + b_hh
            i = jax.nn.sigmoid(g[:, 0:H])
            f = jax.nn.sigmoid(g[:, H:2 * H])
            gg = jnp.tanh(g[:, 2 * H:3 * H])
            o = jax.nn.sigmoid(g[:, 3 * H:4 * H])
            c = f * c + i * gg
            h = o * jnp.tanh(c)
            hs.append(h)
        return jnp.stack(hs, axis=1)

    h0_seq = lstm_layer(x, p["lstm.w_ih0"], p["lstm.w_hh0"], p["lstm.b_ih0"], p["lstm.b_hh0"])
    h1_seq = lstm_layer(h0_seq, p["lstm.w_ih1"], p["lstm.w_hh1"], p["lstm.b_ih1"], p["lstm.b_hh1"])
    lstm_feat = h1_seq[:, -1]
    mean = x.mean(axis=1)
    std = jnp.sqrt(((x - mean[:, None, :]) ** 2).mean(axis=1))   # unbiased=False
    mx = x.max(axis=1)
    mn = x.min(axis=1)
    feats = jnp.concatenate([lstm_feat, mean, std, mx, mn], axis=1)

    relu = jax.nn.relu

    def head(prefix):
        y = feats @ p[f"{prefix}_proj.w"].T + p[f"{prefix}_proj.b"]
        m = y.mean(-1, keepdims=True)
        v = ((y - m) ** 2).mean(-1, keepdims=True)
        y = (y - m) / jnp.sqrt(v + LN_EPS) * p[f"{prefix}_ln.g"] + p[f"{prefix}_ln.b"]
        # length-1 self-attention == out_proj(v_proj(y))
        vv = y @ p[f"{prefix}_attn.in_w"][2 * E:3 * E].T + p[f"{prefix}_attn.in_b"][2 * E:3 * E]
        y = vv @ p[f"{prefix}_attn.out_w"].T + p[f"{prefix}_attn.out_b"]
        a0 = relu(y @ p[f"{prefix}_l0.w"].T + p[f"{prefix}_l0.b"])
        a1 = relu(a0 @ p[f"{prefix}_l1.w"].T + p[f"{prefix}_l1.b"])
        o2 = relu(jnp.concatenate([a1, a0], axis=1) @ p[f"{prefix}_l2.w"].T + p[f"{prefix}_l2.b"])
        o3 = relu(jnp.concatenate([o2, a1], axis=1) @ p[f"{prefix}_l3.w"].T + p[f"{prefix}_l3.b"])
        return o3 @ p[f"{prefix}_l4.w"].T + p[f"{prefix}_l4.b"]

    return head("policy"), head("value")


if __name__ == "__main__":
    key = jax.random.PRNGKey(0)
    k_obs, k_par = jax.random.split(key)
    obs = jax.random.normal(k_obs, (BATCH, WINDOW * N_FEATURES), jnp.float32)
    tp = init_torch_params(k_par)
    packed = pack_params(tp)

    pol, val = run_pallas(obs, *packed)
    jax.block_until_ready((pol, val))
    assert pol.shape == (BATCH, 16) and val.shape == (BATCH, 8)

    # Tight check: identical math (same packed bf16 banks, same activation dtypes)
    # evaluated outside the kernel; tolerance covers Mosaic-vs-XLA transcendental
    # implementation differences at bf16 activation precision.
    ref_core = jax.jit(functools.partial(_forward_core, bf16_gates=BF16_GATES))
    ref_slab = ref_core(obs, *packed)
    np.testing.assert_allclose(np.asarray(pol), np.asarray(ref_slab[:, 0:16]),
                               rtol=2e-2, atol=2e-2)
    np.testing.assert_allclose(np.asarray(val), np.asarray(ref_slab[:, 16:24]),
                               rtol=2e-2, atol=2e-2)

    # End-to-end check vs an f32 reference in the original PyTorch parameter layout:
    # validates gate reordering / recurrence fusion / block-diagonal hoist / packing;
    # loose tolerance covers bf16 weight AND activation quantization in the kernel.
    ref_pol, ref_val = jax.jit(reference_f32)(obs, tp)
    np.testing.assert_allclose(np.asarray(pol), np.asarray(ref_pol), rtol=0.15, atol=0.15)
    np.testing.assert_allclose(np.asarray(val), np.asarray(ref_val), rtol=0.15, atol=0.15)

    print("KERNEL_OK")
</pallas_src>

<mosaic_0001>
module attributes {stable_mosaic.version = 11 : i64} {
  func.func @windfarm_kernel(%arg0: i32, %arg1: memref<2x32xf32, #tpu.memory_space<vmem>>, %arg2: memref<32x1024xbf16, #tpu.memory_space<vmem>>, %arg3: memref<64x256xbf16, #tpu.memory_space<vmem>>, %arg4: memref<48x512xbf16, #tpu.memory_space<vmem>>, %arg5: memref<256x2048xbf16, #tpu.memory_space<vmem>>, %arg6: memref<128x512xbf16, #tpu.memory_space<vmem>>, %arg7: memref<64x384xbf16, #tpu.memory_space<vmem>>, %arg8: memref<9x1024xf32, #tpu.memory_space<vmem>>, %arg9: memref<2x128xf32, #tpu.memory_space<vmem>>) attributes {dimension_semantics = [#tpu.dimension_semantics<parallel>], iteration_bounds = array<i64: 1>, scalar_prefetch = 0 : i64, scratch_operands = 0 : i64, tpu.core_type = #tpu.core_type<tc>, window_params = [{transform_indices = @transform_0, window_bounds = array<i64: 2, 32>}, {pipeline_mode = #tpu.pipeline_mode<synchronous>, transform_indices = @transform_1, window_bounds = array<i64: 32, 1024>}, {pipeline_mode = #tpu.pipeline_mode<synchronous>, transform_indices = @transform_2, window_bounds = array<i64: 64, 256>}, {pipeline_mode = #tpu.pipeline_mode<synchronous>, transform_indices = @transform_3, window_bounds = array<i64: 48, 512>}, {pipeline_mode = #tpu.pipeline_mode<synchronous>, transform_indices = @transform_4, window_bounds = array<i64: 256, 2048>}, {pipeline_mode = #tpu.pipeline_mode<synchronous>, transform_indices = @transform_5, window_bounds = array<i64: 128, 512>}, {pipeline_mode = #tpu.pipeline_mode<synchronous>, transform_indices = @transform_6, window_bounds = array<i64: 64, 384>}, {pipeline_mode = #tpu.pipeline_mode<synchronous>, transform_indices = @transform_7, window_bounds = array<i64: 9, 1024>}, {transform_indices = @transform_8, window_bounds = array<i64: 2, 128>}]} {
    %c0 = arith.constant 0 : index
    %c0_0 = arith.constant 0 : index
    %0 = vector.load %arg1[%c0, %c0_0] : memref<2x32xf32, #tpu.memory_space<vmem>>, vector<2x32xf32>
    %1 = vector.extract_strided_slice %0 {offsets = [0, 0], sizes = [2, 4], strides = [1, 1]} : vector<2x32xf32> to vector<2x4xf32>
    %2 = vector.extract_strided_slice %0 {offsets = [0, 4], sizes = [2, 4], strides = [1, 1]} : vector<2x32xf32> to vector<2x4xf32>
    %3 = arith.addf %1, %2 : vector<2x4xf32>
    %4 = arith.maximumf %1, %2 : vector<2x4xf32>
    %5 = arith.minimumf %1, %2 : vector<2x4xf32>
    %6 = vector.extract_strided_slice %0 {offsets = [0, 8], sizes = [2, 4], strides = [1, 1]} : vector<2x32xf32> to vector<2x4xf32>
    %7 = arith.addf %3, %6 : vector<2x4xf32>
    %8 = arith.maximumf %4, %6 : vector<2x4xf32>
    %9 = arith.minimumf %5, %6 : vector<2x4xf32>
    %10 = vector.extract_strided_slice %0 {offsets = [0, 12], sizes = [2, 4], strides = [1, 1]} : vector<2x32xf32> to vector<2x4xf32>
    %11 = arith.addf %7, %10 : vector<2x4xf32>
    %12 = arith.maximumf %8, %10 : vector<2x4xf32>
    %13 = arith.minimumf %9, %10 : vector<2x4xf32>
    %14 = vector.extract_strided_slice %0 {offsets = [0, 16], sizes = [2, 4], strides = [1, 1]} : vector<2x32xf32> to vector<2x4xf32>
    %15 = arith.addf %11, %14 : vector<2x4xf32>
    %16 = arith.maximumf %12, %14 : vector<2x4xf32>
    %17 = arith.minimumf %13, %14 : vector<2x4xf32>
    %18 = vector.extract_strided_slice %0 {offsets = [0, 20], sizes = [2, 4], strides = [1, 1]} : vector<2x32xf32> to vector<2x4xf32>
    %19 = arith.addf %15, %18 : vector<2x4xf32>
    %20 = arith.maximumf %16, %18 : vector<2x4xf32>
    %21 = arith.minimumf %17, %18 : vector<2x4xf32>
    %22 = vector.extract_strided_slice %0 {offsets = [0, 24], sizes = [2, 4], strides = [1, 1]} : vector<2x32xf32> to vector<2x4xf32>
    %23 = arith.addf %19, %22 : vector<2x4xf32>
    %24 = arith.maximumf %20, %22 : vector<2x4xf32>
    %25 = arith.minimumf %21, %22 : vector<2x4xf32>
    %26 = vector.extract_strided_slice %0 {offsets = [0, 28], sizes = [2, 4], strides = [1, 1]} : vector<2x32xf32> to vector<2x4xf32>
    %27 = arith.addf %23, %26 : vector<2x4xf32>
    %28 = arith.maximumf %24, %26 : vector<2x4xf32>
    %29 = arith.minimumf %25, %26 : vector<2x4xf32>
    %cst = arith.constant 1.250000e-01 : f32
    %30 = vector.broadcast %cst : f32 to vector<2x4xf32>
    %31 = arith.mulf %27, %30 : vector<2x4xf32>
    %32 = arith.subf %1, %31 : vector<2x4xf32>
    %33 = arith.mulf %32, %32 : vector<2x4xf32>
    %34 = vector.extract_strided_slice %0 {offsets = [0, 4], sizes = [2, 4], strides = [1, 1]} : vector<2x32xf32> to vector<2x4xf32>
    %35 = arith.subf %34, %31 : vector<2x4xf32>
    %36 = arith.mulf %35, %35 : vector<2x4xf32>
    %37 = arith.addf %33, %36 : vector<2x4xf32>
    %38 = vector.extract_strided_slice %0 {offsets = [0, 8], sizes = [2, 4], strides = [1, 1]} : vector<2x32xf32> to vector<2x4xf32>
    %39 = arith.subf %38, %31 : vector<2x4xf32>
    %40 = arith.mulf %39, %39 : vector<2x4xf32>
    %41 = arith.addf %37, %40 : vector<2x4xf32>
    %42 = vector.extract_strided_slice %0 {offsets = [0, 12], sizes = [2, 4], strides = [1, 1]} : vector<2x32xf32> to vector<2x4xf32>
    %43 = arith.subf %42, %31 : vector<2x4xf32>
    %44 = arith.mulf %43, %43 : vector<2x4xf32>
    %45 = arith.addf %41, %44 : vector<2x4xf32>
    %46 = vector.extract_strided_slice %0 {offsets = [0, 16], sizes = [2, 4], strides = [1, 1]} : vector<2x32xf32> to vector<2x4xf32>
    %47 = arith.subf %46, %31 : vector<2x4xf32>
    %48 = arith.mulf %47, %47 : vector<2x4xf32>
    %49 = arith.addf %45, %48 : vector<2x4xf32>
    %50 = vector.extract_strided_slice %0 {offsets = [0, 20], sizes = [2, 4], strides = [1, 1]} : vector<2x32xf32> to vector<2x4xf32>
    %51 = arith.subf %50, %31 : vector<2x4xf32>
    %52 = arith.mulf %51, %51 : vector<2x4xf32>
    %53 = arith.addf %49, %52 : vector<2x4xf32>
    %54 = vector.extract_strided_slice %0 {offsets = [0, 24], sizes = [2, 4], strides = [1, 1]} : vector<2x32xf32> to vector<2x4xf32>
    %55 = arith.subf %54, %31 : vector<2x4xf32>
    %56 = arith.mulf %55, %55 : vector<2x4xf32>
    %57 = arith.addf %53, %56 : vector<2x4xf32>
    %58 = vector.extract_strided_slice %0 {offsets = [0, 28], sizes = [2, 4], strides = [1, 1]} : vector<2x32xf32> to vector<2x4xf32>
    %59 = arith.subf %58, %31 : vector<2x4xf32>
    %60 = arith.mulf %59, %59 : vector<2x4xf32>
    %61 = arith.addf %57, %60 : vector<2x4xf32>
    %cst_1 = arith.constant 1.250000e-01 : f32
    %62 = vector.broadcast %cst_1 : f32 to vector<2x4xf32>
    %63 = arith.mulf %61, %62 : vector<2x4xf32>
    %64 = math.sqrt %63 : vector<2x4xf32>
    %c0_2 = arith.constant 0 : index
    %c0_3 = arith.constant 0 : index
    %65 = vector.load %arg2[%c0_2, %c0_3] : memref<32x1024xbf16, #tpu.memory_space<vmem>>, vector<32x1024xbf16>
    %66 = arith.truncf %0 : vector<2x32xf32> to vector<2x32xbf16>
    %cst_4 = arith.constant dense<0.000000e+00> : vector<2x1024xf32>
    %67 = tpu.matmul %66, %65, %cst_4 {dimension_numbers = #tpu.dot_dimension_numbers<[1], [0], [0], [1], [0, 0, 1, 1], [], []>} : vector<2x32xbf16>, vector<32x1024xbf16>, vector<2x1024xf32> -> vector<2x1024xf32>
    %c0_5 = arith.constant 0 : index
    %c0_6 = arith.constant 0 : index
    %68 = vector.load %arg8[%c0_5, %c0_6] : memref<9x1024xf32, #tpu.memory_space<vmem>>, vector<1x1024xf32>
    %69 = vector.broadcast %68 : vector<1x1024xf32> to vector<2x1024xf32>
    %70 = arith.addf %67, %69 : vector<2x1024xf32>
    %c0_7 = arith.constant 0 : index
    %c0_8 = arith.constant 0 : index
    %71 = vector.load %arg3[%c0_7, %c0_8] : memref<64x256xbf16, #tpu.memory_space<vmem>>, vector<64x256xbf16>
    %c1 = arith.constant 1 : index
    %c0_9 = arith.constant 0 : index
    %72 = vector.load %arg8[%c1, %c0_9] : memref<9x1024xf32, #tpu.memory_space<vmem>>, vector<1x128xf32>
    %cst_10 = arith.constant 0.000000e+00 : bf16
    %73 = vector.broadcast %cst_10 : bf16 to vector<2x32xbf16>
    %cst_11 = arith.constant 0.000000e+00 : f32
    %74 = vector.broadcast %cst_11 : f32 to vector<2x128xf32>
    %75 = vector.extract_strided_slice %70 {offsets = [0, 0], sizes = [2, 128], strides = [1, 1]} : vector<2x1024xf32> to vector<2x128xf32>
    %76 = arith.addf %75, %74 : vector<2x128xf32>
    %77 = arith.truncf %76 : vector<2x128xf32> to vector<2x128xbf16>
    %78 = vector.extract_strided_slice %77 {offsets = [0, 0], sizes = [2, 96], strides = [1, 1]} : vector<2x128xbf16> to vector<2x96xbf16>
    %79 = arith.negf %78 : vector<2x96xbf16>
    %80 = math.exp %79 : vector<2x96xbf16>
    %cst_12 = arith.constant 1.000000e+00 : bf16
    %81 = vector.broadcast %cst_12 : bf16 to vector<2x96xbf16>
    %82 = arith.addf %81, %80 : vector<2x96xbf16>
    %83 = arith.divf %81, %82 : vector<2x96xbf16>
    %84 = vector.extract_strided_slice %77 {offsets = [0, 96], sizes = [2, 32], strides = [1, 1]} : vector<2x128xbf16> to vector<2x32xbf16>
    %85 = math.tanh %84 : vector<2x32xbf16>
    %86 = vector.extract_strided_slice %83 {offsets = [0, 32], sizes = [2, 32], strides = [1, 1]} : vector<2x96xbf16> to vector<2x32xbf16>
    %87 = arith.mulf %86, %73 : vector<2x32xbf16>
    %88 = vector.extract_strided_slice %83 {offsets = [0, 0], sizes = [2, 32], strides = [1, 1]} : vector<2x96xbf16> to vector<2x32xbf16>
    %89 = arith.mulf %88, %85 : vector<2x32xbf16>
    %90 = arith.addf %87, %89 : vector<2x32xbf16>
    %91 = vector.extract_strided_slice %83 {offsets = [0, 64], sizes = [2, 32], strides = [1, 1]} : vector<2x96xbf16> to vector<2x32xbf16>
    %92 = math.tanh %90 : vector<2x32xbf16>
    %93 = arith.mulf %91, %92 : vector<2x32xbf16>
    %94 = tpu.concatenate %93, %73 in 1 : vector<2x32xbf16>, vector<2x32xbf16> -> vector<2x64xbf16>
    %cst_13 = arith.constant dense<0.000000e+00> : vector<2x256xf32>
    %95 = tpu.matmul %94, %71, %cst_13 {dimension_numbers = #tpu.dot_dimension_numbers<[1], [0], [0], [1], [0, 0, 1, 1], [], []>} : vector<2x64xbf16>, vector<64x256xbf16>, vector<2x256xf32> -> vector<2x256xf32>
    %96 = vector.extract_strided_slice %95 {offsets = [0, 0], sizes = [2, 128], strides = [1, 1]} : vector<2x256xf32> to vector<2x128xf32>
    %97 = vector.broadcast %72 : vector<1x128xf32> to vector<2x128xf32>
    %98 = arith.addf %96, %97 : vector<2x128xf32>
    %99 = vector.extract_strided_slice %95 {offsets = [0, 128], sizes = [2, 128], strides = [1, 1]} : vector<2x256xf32> to vector<2x128xf32>
    %100 = arith.truncf %98 : vector<2x128xf32> to vector<2x128xbf16>
    %101 = vector.extract_strided_slice %100 {offsets = [0, 0], sizes = [2, 96], strides = [1, 1]} : vector<2x128xbf16> to vector<2x96xbf16>
    %102 = arith.negf %101 : vector<2x96xbf16>
    %103 = math.exp %102 : vector<2x96xbf16>
    %cst_14 = arith.constant 1.000000e+00 : bf16
    %104 = vector.broadcast %cst_14 : bf16 to vector<2x96xbf16>
    %105 = arith.addf %104, %103 : vector<2x96xbf16>
    %106 = arith.divf %104, %105 : vector<2x96xbf16>
    %107 = vector.extract_strided_slice %100 {offsets = [0, 96], sizes = [2, 32], strides = [1, 1]} : vector<2x128xbf16> to vector<2x32xbf16>
    %108 = math.tanh %107 : vector<2x32xbf16>
    %109 = vector.extract_strided_slice %106 {offsets = [0, 32], sizes = [2, 32], strides = [1, 1]} : vector<2x96xbf16> to vector<2x32xbf16>
    %110 = arith.mulf %109, %73 : vector<2x32xbf16>
    %111 = vector.extract_strided_slice %106 {offsets = [0, 0], sizes = [2, 32], strides = [1, 1]} : vector<2x96xbf16> to vector<2x32xbf16>
    %112 = arith.mulf %111, %108 : vector<2x32xbf16>
    %113 = arith.addf %110, %112 : vector<2x32xbf16>
    %114 = vector.extract_strided_slice %106 {offsets = [0, 64], sizes = [2, 32], strides = [1, 1]} : vector<2x96xbf16> to vector<2x32xbf16>
    %115 = math.tanh %113 : vector<2x32xbf16>
    %116 = arith.mulf %114, %115 : vector<2x32xbf16>
    %117 = vector.extract_strided_slice %70 {offsets = [0, 128], sizes = [2, 128], strides = [1, 1]} : vector<2x1024xf32> to vector<2x128xf32>
    %118 = arith.addf %117, %99 : vector<2x128xf32>
    %119 = arith.truncf %118 : vector<2x128xf32> to vector<2x128xbf16>
    %120 = vector.extract_strided_slice %119 {offsets = [0, 0], sizes = [2, 96], strides = [1, 1]} : vector<2x128xbf16> to vector<2x96xbf16>
    %121 = arith.negf %120 : vector<2x96xbf16>
    %122 = math.exp %121 : vector<2x96xbf16>
    %cst_15 = arith.constant 1.000000e+00 : bf16
    %123 = vector.broadcast %cst_15 : bf16 to vector<2x96xbf16>
    %124 = arith.addf %123, %122 : vector<2x96xbf16>
    %125 = arith.divf %123, %124 : vector<2x96xbf16>
    %126 = vector.extract_strided_slice %119 {offsets = [0, 96], sizes = [2, 32], strides = [1, 1]} : vector<2x128xbf16> to vector<2x32xbf16>
    %127 = math.tanh %126 : vector<2x32xbf16>
    %128 = vector.extract_strided_slice %125 {offsets = [0, 32], sizes = [2, 32], strides = [1, 1]} : vector<2x96xbf16> to vector<2x32xbf16>
    %129 = arith.mulf %128, %90 : vector<2x32xbf16>
    %130 = vector.extract_strided_slice %125 {offsets = [0, 0], sizes = [2, 32], strides = [1, 1]} : vector<2x96xbf16> to vector<2x32xbf16>
    %131 = arith.mulf %130, %127 : vector<2x32xbf16>
    %132 = arith.addf %129, %131 : vector<2x32xbf16>
    %133 = vector.extract_strided_slice %125 {offsets = [0, 64], sizes = [2, 32], strides = [1, 1]} : vector<2x96xbf16> to vector<2x32xbf16>
    %134 = math.tanh %132 : vector<2x32xbf16>
    %135 = arith.mulf %133, %134 : vector<2x32xbf16>
    %136 = tpu.concatenate %135, %116 in 1 : vector<2x32xbf16>, vector<2x32xbf16> -> vector<2x64xbf16>
    %cst_16 = arith.constant dense<0.000000e+00> : vector<2x256xf32>
    %137 = tpu.matmul %136, %71, %cst_16 {dimension_numbers = #tpu.dot_dimension_numbers<[1], [0], [0], [1], [0, 0, 1, 1], [], []>} : vector<2x64xbf16>, vector<64x256xbf16>, vector<2x256xf32> -> vector<2x256xf32>
    %138 = vector.extract_strided_slice %137 {offsets = [0, 0], sizes = [2, 128], strides = [1, 1]} : vector<2x256xf32> to vector<2x128xf32>
    %139 = vector.broadcast %72 : vector<1x128xf32> to vector<2x128xf32>
    %140 = arith.addf %138, %139 : vector<2x128xf32>
    %141 = vector.extract_strided_slice %137 {offsets = [0, 128], sizes = [2, 128], strides = [1, 1]} : vector<2x256xf32> to vector<2x128xf32>
    %142 = arith.truncf %140 : vector<2x128xf32> to vector<2x128xbf16>
    %143 = vector.extract_strided_slice %142 {offsets = [0, 0], sizes = [2, 96], strides = [1, 1]} : vector<2x128xbf16> to vector<2x96xbf16>
    %144 = arith.negf %143 : vector<2x96xbf16>
    %145 = math.exp %144 : vector<2x96xbf16>
    %cst_17 = arith.constant 1.000000e+00 : bf16
    %146 = vector.broadcast %cst_17 : bf16 to vector<2x96xbf16>
    %147 = arith.addf %146, %145 : vector<2x96xbf16>
    %148 = arith.divf %146, %147 : vector<2x96xbf16>
    %149 = vector.extract_strided_slice %142 {offsets = [0, 96], sizes = [2, 32], strides = [1, 1]} : vector<2x128xbf16> to vector<2x32xbf16>
    %150 = math.tanh %149 : vector<2x32xbf16>
    %151 = vector.extract_strided_slice %148 {offsets = [0, 32], sizes = [2, 32], strides = [1, 1]} : vector<2x96xbf16> to vector<2x32xbf16>
    %152 = arith.mulf %151, %113 : vector<2x32xbf16>
    %153 = vector.extract_strided_slice %148 {offsets = [0, 0], sizes = [2, 32], strides = [1, 1]} : vector<2x96xbf16> to vector<2x32xbf16>
    %154 = arith.mulf %153, %150 : vector<2x32xbf16>
    %155 = arith.addf %152, %154 : vector<2x32xbf16>
    %156 = vector.extract_strided_slice %148 {offsets = [0, 64], sizes = [2, 32], strides = [1, 1]} : vector<2x96xbf16> to vector<2x32xbf16>
    %157 = math.tanh %155 : vector<2x32xbf16>
    %158 = arith.mulf %156, %157 : vector<2x32xbf16>
    %159 = vector.extract_strided_slice %70 {offsets = [0, 256], sizes = [2, 128], strides = [1, 1]} : vector<2x1024xf32> to vector<2x128xf32>
    %160 = arith.addf %159, %141 : vector<2x128xf32>
    %161 = arith.truncf %160 : vector<2x128xf32> to vector<2x128xbf16>
    %162 = vector.extract_strided_slice %161 {offsets = [0, 0], sizes = [2, 96], strides = [1, 1]} : vector<2x128xbf16> to vector<2x96xbf16>
    %163 = arith.negf %162 : vector<2x96xbf16>
    %164 = math.exp %163 : vector<2x96xbf16>
    %cst_18 = arith.constant 1.000000e+00 : bf16
    %165 = vector.broadcast %cst_18 : bf16 to vector<2x96xbf16>
    %166 = arith.addf %165, %164 : vector<2x96xbf16>
    %167 = arith.divf %165, %166 : vector<2x96xbf16>
    %168 = vector.extract_strided_slice %161 {offsets = [0, 96], sizes = [2, 32], strides = [1, 1]} : vector<2x128xbf16> to vector<2x32xbf16>
    %169 = math.tanh %168 : vector<2x32xbf16>
    %170 = vector.extract_strided_slice %167 {offsets = [0, 32], sizes = [2, 32], strides = [1, 1]} : vector<2x96xbf16> to vector<2x32xbf16>
    %171 = arith.mulf %170, %132 : vector<2x32xbf16>
    %172 = vector.extract_strided_slice %167 {offsets = [0, 0], sizes = [2, 32], strides = [1, 1]} : vector<2x96xbf16> to vector<2x32xbf16>
    %173 = arith.mulf %172, %169 : vector<2x32xbf16>
    %174 = arith.addf %171, %173 : vector<2x32xbf16>
    %175 = vector.extract_strided_slice %167 {offsets = [0, 64], sizes = [2, 32], strides = [1, 1]} : vector<2x96xbf16> to vector<2x32xbf16>
    %176 = math.tanh %174 : vector<2x32xbf16>
    %177 = arith.mulf %175, %176 : vector<2x32xbf16>
    %178 = tpu.concatenate %177, %158 in 1 : vector<2x32xbf16>, vector<2x32xbf16> -> vector<2x64xbf16>
    %cst_19 = arith.constant dense<0.000000e+00> : vector<2x256xf32>
    %179 = tpu.matmul %178, %71, %cst_19 {dimension_numbers = #tpu.dot_dimension_numbers<[1], [0], [0], [1], [0, 0, 1, 1], [], []>} : vector<2x64xbf16>, vector<64x256xbf16>, vector<2x256xf32> -> vector<2x256xf32>
    %180 = vector.extract_strided_slice %179 {offsets = [0, 0], sizes = [2, 128], strides = [1, 1]} : vector<2x256xf32> to vector<2x128xf32>
    %181 = vector.broadcast %72 : vector<1x128xf32> to vector<2x128xf32>
    %182 = arith.addf %180, %181 : vector<2x128xf32>
    %183 = vector.extract_strided_slice %179 {offsets = [0, 128], sizes = [2, 128], strides = [1, 1]} : vector<2x256xf32> to vector<2x128xf32>
    %184 = arith.truncf %182 : vector<2x128xf32> to vector<2x128xbf16>
    %185 = vector.extract_strided_slice %184 {offsets = [0, 0], sizes = [2, 96], strides = [1, 1]} : vector<2x128xbf16> to vector<2x96xbf16>
    %186 = arith.negf %185 : vector<2x96xbf16>
    %187 = math.exp %186 : vector<2x96xbf16>
    %cst_20 = arith.constant 1.000000e+00 : bf16
    %188 = vector.broadcast %cst_20 : bf16 to vector<2x96xbf16>
    %189 = arith.addf %188, %187 : vector<2x96xbf16>
    %190 = arith.divf %188, %189 : vector<2x96xbf16>
    %191 = vector.extract_strided_slice %184 {offsets = [0, 96], sizes = [2, 32], strides = [1, 1]} : vector<2x128xbf16> to vector<2x32xbf16>
    %192 = math.tanh %191 : vector<2x32xbf16>
    %193 = vector.extract_strided_slice %190 {offsets = [0, 32], sizes = [2, 32], strides = [1, 1]} : vector<2x96xbf16> to vector<2x32xbf16>
    %194 = arith.mulf %193, %155 : vector<2x32xbf16>
    %195 = vector.extract_strided_slice %190 {offsets = [0, 0], sizes = [2, 32], strides = [1, 1]} : vector<2x96xbf16> to vector<2x32xbf16>
    %196 = arith.mulf %195, %192 : vector<2x32xbf16>
    %197 = arith.addf %194, %196 : vector<2x32xbf16>
    %198 = vector.extract_strided_slice %190 {offsets = [0, 64], sizes = [2, 32], strides = [1, 1]} : vector<2x96xbf16> to vector<2x32xbf16>
    %199 = math.tanh %197 : vector<2x32xbf16>
    %200 = arith.mulf %198, %199 : vector<2x32xbf16>
    %201 = vector.extract_strided_slice %70 {offsets = [0, 384], sizes = [2, 128], strides = [1, 1]} : vector<2x1024xf32> to vector<2x128xf32>
    %202 = arith.addf %201, %183 : vector<2x128xf32>
    %203 = arith.truncf %202 : vector<2x128xf32> to vector<2x128xbf16>
    %204 = vector.extract_strided_slice %203 {offsets = [0, 0], sizes = [2, 96], strides = [1, 1]} : vector<2x128xbf16> to vector<2x96xbf16>
    %205 = arith.negf %204 : vector<2x96xbf16>
    %206 = math.exp %205 : vector<2x96xbf16>
    %cst_21 = arith.constant 1.000000e+00 : bf16
    %207 = vector.broadcast %cst_21 : bf16 to vector<2x96xbf16>
    %208 = arith.addf %207, %206 : vector<2x96xbf16>
    %209 = arith.divf %207, %208 : vector<2x96xbf16>
    %210 = vector.extract_strided_slice %203 {offsets = [0, 96], sizes = [2, 32], strides = [1, 1]} : vector<2x128xbf16> to vector<2x32xbf16>
    %211 = math.tanh %210 : vector<2x32xbf16>
    %212 = vector.extract_strided_slice %209 {offsets = [0, 32], sizes = [2, 32], strides = [1, 1]} : vector<2x96xbf16> to vector<2x32xbf16>
    %213 = arith.mulf %212, %174 : vector<2x32xbf16>
    %214 = vector.extract_strided_slice %209 {offsets = [0, 0], sizes = [2, 32], strides = [1, 1]} : vector<2x96xbf16> to vector<2x32xbf16>
    %215 = arith.mulf %214, %211 : vector<2x32xbf16>
    %216 = arith.addf %213, %215 : vector<2x32xbf16>
    %217 = vector.extract_strided_slice %209 {offsets = [0, 64], sizes = [2, 32], strides = [1, 1]} : vector<2x96xbf16> to vector<2x32xbf16>
    %218 = math.tanh %216 : vector<2x32xbf16>
    %219 = arith.mulf %217, %218 : vector<2x32xbf16>
    %220 = tpu.concatenate %219, %200 in 1 : vector<2x32xbf16>, vector<2x32xbf16> -> vector<2x64xbf16>
    %cst_22 = arith.constant dense<0.000000e+00> : vector<2x256xf32>
    %221 = tpu.matmul %220, %71, %cst_22 {dimension_numbers = #tpu.dot_dimension_numbers<[1], [0], [0], [1], [0, 0, 1, 1], [], []>} : vector<2x64xbf16>, vector<64x256xbf16>, vector<2x256xf32> -> vector<2x256xf32>
    %222 = vector.extract_strided_slice %221 {offsets = [0, 0], sizes = [2, 128], strides = [1, 1]} : vector<2x256xf32> to vector<2x128xf32>
    %223 = vector.broadcast %72 : vector<1x128xf32> to vector<2x128xf32>
    %224 = arith.addf %222, %223 : vector<2x128xf32>
    %225 = vector.extract_strided_slice %221 {offsets = [0, 128], sizes = [2, 128], strides = [1, 1]} : vector<2x256xf32> to vector<2x128xf32>
    %226 = arith.truncf %224 : vector<2x128xf32> to vector<2x128xbf16>
    %227 = vector.extract_strided_slice %226 {offsets = [0, 0], sizes = [2, 96], strides = [1, 1]} : vector<2x128xbf16> to vector<2x96xbf16>
    %228 = arith.negf %227 : vector<2x96xbf16>
    %229 = math.exp %228 : vector<2x96xbf16>
    %cst_23 = arith.constant 1.000000e+00 : bf16
    %230 = vector.broadcast %cst_23 : bf16 to vector<2x96xbf16>
    %231 = arith.addf %230, %229 : vector<2x96xbf16>
    %232 = arith.divf %230, %231 : vector<2x96xbf16>
    %233 = vector.extract_strided_slice %226 {offsets = [0, 96], sizes = [2, 32], strides = [1, 1]} : vector<2x128xbf16> to vector<2x32xbf16>
    %234 = math.tanh %233 : vector<2x32xbf16>
    %235 = vector.extract_strided_slice %232 {offsets = [0, 32], sizes = [2, 32], strides = [1, 1]} : vector<2x96xbf16> to vector<2x32xbf16>
    %236 = arith.mulf %235, %197 : vector<2x32xbf16>
    %237 = vector.extract_strided_slice %232 {offsets = [0, 0], sizes = [2, 32], strides = [1, 1]} : vector<2x96xbf16> to vector<2x32xbf16>
    %238 = arith.mulf %237, %234 : vector<2x32xbf16>
    %239 = arith.addf %236, %238 : vector<2x32xbf16>
    %240 = vector.extract_strided_slice %232 {offsets = [0, 64], sizes = [2, 32], strides = [1, 1]} : vector<2x96xbf16> to vector<2x32xbf16>
    %241 = math.tanh %239 : vector<2x32xbf16>
    %242 = arith.mulf %240, %241 : vector<2x32xbf16>
    %243 = vector.extract_strided_slice %70 {offsets = [0, 512], sizes = [2, 128], strides = [1, 1]} : vector<2x1024xf32> to vector<2x128xf32>
    %244 = arith.addf %243, %225 : vector<2x128xf32>
    %245 = arith.truncf %244 : vector<2x128xf32> to vector<2x128xbf16>
    %246 = vector.extract_strided_slice %245 {offsets = [0, 0], sizes = [2, 96], strides = [1, 1]} : vector<2x128xbf16> to vector<2x96xbf16>
    %247 = arith.negf %246 : vector<2x96xbf16>
    %248 = math.exp %247 : vector<2x96xbf16>
    %cst_24 = arith.constant 1.000000e+00 : bf16
    %249 = vector.broadcast %cst_24 : bf16 to vector<2x96xbf16>
    %250 = arith.addf %249, %248 : vector<2x96xbf16>
    %251 = arith.divf %249, %250 : vector<2x96xbf16>
    %252 = vector.extract_strided_slice %245 {offsets = [0, 96], sizes = [2, 32], strides = [1, 1]} : vector<2x128xbf16> to vector<2x32xbf16>
    %253 = math.tanh %252 : vector<2x32xbf16>
    %254 = vector.extract_strided_slice %251 {offsets = [0, 32], sizes = [2, 32], strides = [1, 1]} : vector<2x96xbf16> to vector<2x32xbf16>
    %255 = arith.mulf %254, %216 : vector<2x32xbf16>
    %256 = vector.extract_strided_slice %251 {offsets = [0, 0], sizes = [2, 32], strides = [1, 1]} : vector<2x96xbf16> to vector<2x32xbf16>
    %257 = arith.mulf %256, %253 : vector<2x32xbf16>
    %258 = arith.addf %255, %257 : vector<2x32xbf16>
    %259 = vector.extract_strided_slice %251 {offsets = [0, 64], sizes = [2, 32], strides = [1, 1]} : vector<2x96xbf16> to vector<2x32xbf16>
    %260 = math.tanh %258 : vector<2x32xbf16>
    %261 = arith.mulf %259, %260 : vector<2x32xbf16>
    %262 = tpu.concatenate %261, %242 in 1 : vector<2x32xbf16>, vector<2x32xbf16> -> vector<2x64xbf16>
    %cst_25 = arith.constant dense<0.000000e+00> : vector<2x256xf32>
    %263 = tpu.matmul %262, %71, %cst_25 {dimension_numbers = #tpu.dot_dimension_numbers<[1], [0], [0], [1], [0, 0, 1, 1], [], []>} : vector<2x64xbf16>, vector<64x256xbf16>, vector<2x256xf32> -> vector<2x256xf32>
    %264 = vector.extract_strided_slice %263 {offsets = [0, 0], sizes = [2, 128], strides = [1, 1]} : vector<2x256xf32> to vector<2x128xf32>
    %265 = vector.broadcast %72 : vector<1x128xf32> to vector<2x128xf32>
    %266 = arith.addf %264, %265 : vector<2x128xf32>
    %267 = vector.extract_strided_slice %263 {offsets = [0, 128], sizes = [2, 128], strides = [1, 1]} : vector<2x256xf32> to vector<2x128xf32>
    %268 = arith.truncf %266 : vector<2x128xf32> to vector<2x128xbf16>
    %269 = vector.extract_strided_slice %268 {offsets = [0, 0], sizes = [2, 96], strides = [1, 1]} : vector<2x128xbf16> to vector<2x96xbf16>
    %270 = arith.negf %269 : vector<2x96xbf16>
    %271 = math.exp %270 : vector<2x96xbf16>
    %cst_26 = arith.constant 1.000000e+00 : bf16
    %272 = vector.broadcast %cst_26 : bf16 to vector<2x96xbf16>
    %273 = arith.addf %272, %271 : vector<2x96xbf16>
    %274 = arith.divf %272, %273 : vector<2x96xbf16>
    %275 = vector.extract_strided_slice %268 {offsets = [0, 96], sizes = [2, 32], strides = [1, 1]} : vector<2x128xbf16> to vector<2x32xbf16>
    %276 = math.tanh %275 : vector<2x32xbf16>
    %277 = vector.extract_strided_slice %274 {offsets = [0, 32], sizes = [2, 32], strides = [1, 1]} : vector<2x96xbf16> to vector<2x32xbf16>
    %278 = arith.mulf %277, %239 : vector<2x32xbf16>
    %279 = vector.extract_strided_slice %274 {offsets = [0, 0], sizes = [2, 32], strides = [1, 1]} : vector<2x96xbf16> to vector<2x32xbf16>
    %280 = arith.mulf %279, %276 : vector<2x32xbf16>
    %281 = arith.addf %278, %280 : vector<2x32xbf16>
    %282 = vector.extract_strided_slice %274 {offsets = [0, 64], sizes = [2, 32], strides = [1, 1]} : vector<2x96xbf16> to vector<2x32xbf16>
    %283 = math.tanh %281 : vector<2x32xbf16>
    %284 = arith.mulf %282, %283 : vector<2x32xbf16>
    %285 = vector.extract_strided_slice %70 {offsets = [0, 640], sizes = [2, 128], strides = [1, 1]} : vector<2x1024xf32> to vector<2x128xf32>
    %286 = arith.addf %285, %267 : vector<2x128xf32>
    %287 = arith.truncf %286 : vector<2x128xf32> to vector<2x128xbf16>
    %288 = vector.extract_strided_slice %287 {offsets = [0, 0], sizes = [2, 96], strides = [1, 1]} : vector<2x128xbf16> to vector<2x96xbf16>
    %289 = arith.negf %288 : vector<2x96xbf16>
    %290 = math.exp %289 : vector<2x96xbf16>
    %cst_27 = arith.constant 1.000000e+00 : bf16
    %291 = vector.broadcast %cst_27 : bf16 to vector<2x96xbf16>
    %292 = arith.addf %291, %290 : vector<2x96xbf16>
    %293 = arith.divf %291, %292 : vector<2x96xbf16>
    %294 = vector.extract_strided_slice %287 {offsets = [0, 96], sizes = [2, 32], strides = [1, 1]} : vector<2x128xbf16> to vector<2x32xbf16>
    %295 = math.tanh %294 : vector<2x32xbf16>
    %296 = vector.extract_strided_slice %293 {offsets = [0, 32], sizes = [2, 32], strides = [1, 1]} : vector<2x96xbf16> to vector<2x32xbf16>
    %297 = arith.mulf %296, %258 : vector<2x32xbf16>
    %298 = vector.extract_strided_slice %293 {offsets = [0, 0], sizes = [2, 32], strides = [1, 1]} : vector<2x96xbf16> to vector<2x32xbf16>
    %299 = arith.mulf %298, %295 : vector<2x32xbf16>
    %300 = arith.addf %297, %299 : vector<2x32xbf16>
    %301 = vector.extract_strided_slice %293 {offsets = [0, 64], sizes = [2, 32], strides = [1, 1]} : vector<2x96xbf16> to vector<2x32xbf16>
    %302 = math.tanh %300 : vector<2x32xbf16>
    %303 = arith.mulf %301, %302 : vector<2x32xbf16>
    %304 = tpu.concatenate %303, %284 in 1 : vector<2x32xbf16>, vector<2x32xbf16> -> vector<2x64xbf16>
    %cst_28 = arith.constant dense<0.000000e+00> : vector<2x256xf32>
    %305 = tpu.matmul %304, %71, %cst_28 {dimension_numbers = #tpu.dot_dimension_numbers<[1], [0], [0], [1], [0, 0, 1, 1], [], []>} : vector<2x64xbf16>, vector<64x256xbf16>, vector<2x256xf32> -> vector<2x256xf32>
    %306 = vector.extract_strided_slice %305 {offsets = [0, 0], sizes = [2, 128], strides = [1, 1]} : vector<2x256xf32> to vector<2x128xf32>
    %307 = vector.broadcast %72 : vector<1x128xf32> to vector<2x128xf32>
    %308 = arith.addf %306, %307 : vector<2x128xf32>
    %309 = vector.extract_strided_slice %305 {offsets = [0, 128], sizes = [2, 128], strides = [1, 1]} : vector<2x256xf32> to vector<2x128xf32>
    %310 = arith.truncf %308 : vector<2x128xf32> to vector<2x128xbf16>
    %311 = vector.extract_strided_slice %310 {offsets = [0, 0], sizes = [2, 96], strides = [1, 1]} : vector<2x128xbf16> to vector<2x96xbf16>
    %312 = arith.negf %311 : vector<2x96xbf16>
    %313 = math.exp %312 : vector<2x96xbf16>
    %cst_29 = arith.constant 1.000000e+00 : bf16
    %314 = vector.broadcast %cst_29 : bf16 to vector<2x96xbf16>
    %315 = arith.addf %314, %313 : vector<2x96xbf16>
    %316 = arith.divf %314, %315 : vector<2x96xbf16>
    %317 = vector.extract_strided_slice %310 {offsets = [0, 96], sizes = [2, 32], strides = [1, 1]} : vector<2x128xbf16> to vector<2x32xbf16>
    %318 = math.tanh %317 : vector<2x32xbf16>
    %319 = vector.extract_strided_slice %316 {offsets = [0, 32], sizes = [2, 32], strides = [1, 1]} : vector<2x96xbf16> to vector<2x32xbf16>
    %320 = arith.mulf %319, %281 : vector<2x32xbf16>
    %321 = vector.extract_strided_slice %316 {offsets = [0, 0], sizes = [2, 32], strides = [1, 1]} : vector<2x96xbf16> to vector<2x32xbf16>
    %322 = arith.mulf %321, %318 : vector<2x32xbf16>
    %323 = arith.addf %320, %322 : vector<2x32xbf16>
    %324 = vector.extract_strided_slice %316 {offsets = [0, 64], sizes = [2, 32], strides = [1, 1]} : vector<2x96xbf16> to vector<2x32xbf16>
    %325 = math.tanh %323 : vector<2x32xbf16>
    %326 = arith.mulf %324, %325 : vector<2x32xbf16>
    %327 = vector.extract_strided_slice %70 {offsets = [0, 768], sizes = [2, 128], strides = [1, 1]} : vector<2x1024xf32> to vector<2x128xf32>
    %328 = arith.addf %327, %309 : vector<2x128xf32>
    %329 = arith.truncf %328 : vector<2x128xf32> to vector<2x128xbf16>
    %330 = vector.extract_strided_slice %329 {offsets = [0, 0], sizes = [2, 96], strides = [1, 1]} : vector<2x128xbf16> to vector<2x96xbf16>
    %331 = arith.negf %330 : vector<2x96xbf16>
    %332 = math.exp %331 : vector<2x96xbf16>
    %cst_30 = arith.constant 1.000000e+00 : bf16
    %333 = vector.broadcast %cst_30 : bf16 to vector<2x96xbf16>
    %334 = arith.addf %333, %332 : vector<2x96xbf16>
    %335 = arith.divf %333, %334 : vector<2x96xbf16>
    %336 = vector.extract_strided_slice %329 {offsets = [0, 96], sizes = [2, 32], strides = [1, 1]} : vector<2x128xbf16> to vector<2x32xbf16>
    %337 = math.tanh %336 : vector<2x32xbf16>
    %338 = vector.extract_strided_slice %335 {offsets = [0, 32], sizes = [2, 32], strides = [1, 1]} : vector<2x96xbf16> to vector<2x32xbf16>
    %339 = arith.mulf %338, %300 : vector<2x32xbf16>
    %340 = vector.extract_strided_slice %335 {offsets = [0, 0], sizes = [2, 32], strides = [1, 1]} : vector<2x96xbf16> to vector<2x32xbf16>
    %341 = arith.mulf %340, %337 : vector<2x32xbf16>
    %342 = arith.addf %339, %341 : vector<2x32xbf16>
    %343 = vector.extract_strided_slice %335 {offsets = [0, 64], sizes = [2, 32], strides = [1, 1]} : vector<2x96xbf16> to vector<2x32xbf16>
    %344 = math.tanh %342 : vector<2x32xbf16>
    %345 = arith.mulf %343, %344 : vector<2x32xbf16>
    %346 = tpu.concatenate %345, %326 in 1 : vector<2x32xbf16>, vector<2x32xbf16> -> vector<2x64xbf16>
    %cst_31 = arith.constant dense<0.000000e+00> : vector<2x256xf32>
    %347 = tpu.matmul %346, %71, %cst_31 {dimension_numbers = #tpu.dot_dimension_numbers<[1], [0], [0], [1], [0, 0, 1, 1], [], []>} : vector<2x64xbf16>, vector<64x256xbf16>, vector<2x256xf32> -> vector<2x256xf32>
    %348 = vector.extract_strided_slice %347 {offsets = [0, 0], sizes = [2, 128], strides = [1, 1]} : vector<2x256xf32> to vector<2x128xf32>
    %349 = vector.broadcast %72 : vector<1x128xf32> to vector<2x128xf32>
    %350 = arith.addf %348, %349 : vector<2x128xf32>
    %351 = vector.extract_strided_slice %347 {offsets = [0, 128], sizes = [2, 128], strides = [1, 1]} : vector<2x256xf32> to vector<2x128xf32>
    %352 = arith.truncf %350 : vector<2x128xf32> to vector<2x128xbf16>
    %353 = vector.extract_strided_slice %352 {offsets = [0, 0], sizes = [2, 96], strides = [1, 1]} : vector<2x128xbf16> to vector<2x96xbf16>
    %354 = arith.negf %353 : vector<2x96xbf16>
    %355 = math.exp %354 : vector<2x96xbf16>
    %cst_32 = arith.constant 1.000000e+00 : bf16
    %356 = vector.broadcast %cst_32 : bf16 to vector<2x96xbf16>
    %357 = arith.addf %356, %355 : vector<2x96xbf16>
    %358 = arith.divf %356, %357 : vector<2x96xbf16>
    %359 = vector.extract_strided_slice %352 {offsets = [0, 96], sizes = [2, 32], strides = [1, 1]} : vector<2x128xbf16> to vector<2x32xbf16>
    %360 = math.tanh %359 : vector<2x32xbf16>
    %361 = vector.extract_strided_slice %358 {offsets = [0, 32], sizes = [2, 32], strides = [1, 1]} : vector<2x96xbf16> to vector<2x32xbf16>
    %362 = arith.mulf %361, %323 : vector<2x32xbf16>
    %363 = vector.extract_strided_slice %358 {offsets = [0, 0], sizes = [2, 32], strides = [1, 1]} : vector<2x96xbf16> to vector<2x32xbf16>
    %364 = arith.mulf %363, %360 : vector<2x32xbf16>
    %365 = arith.addf %362, %364 : vector<2x32xbf16>
    %366 = vector.extract_strided_slice %358 {offsets = [0, 64], sizes = [2, 32], strides = [1, 1]} : vector<2x96xbf16> to vector<2x32xbf16>
    %367 = math.tanh %365 : vector<2x32xbf16>
    %368 = arith.mulf %366, %367 : vector<2x32xbf16>
    %369 = vector.extract_strided_slice %70 {offsets = [0, 896], sizes = [2, 128], strides = [1, 1]} : vector<2x1024xf32> to vector<2x128xf32>
    %370 = arith.addf %369, %351 : vector<2x128xf32>
    %371 = arith.truncf %370 : vector<2x128xf32> to vector<2x128xbf16>
    %372 = vector.extract_strided_slice %371 {offsets = [0, 0], sizes = [2, 96], strides = [1, 1]} : vector<2x128xbf16> to vector<2x96xbf16>
    %373 = arith.negf %372 : vector<2x96xbf16>
    %374 = math.exp %373 : vector<2x96xbf16>
    %cst_33 = arith.constant 1.000000e+00 : bf16
    %375 = vector.broadcast %cst_33 : bf16 to vector<2x96xbf16>
    %376 = arith.addf %375, %374 : vector<2x96xbf16>
    %377 = arith.divf %375, %376 : vector<2x96xbf16>
    %378 = vector.extract_strided_slice %371 {offsets = [0, 96], sizes = [2, 32], strides = [1, 1]} : vector<2x128xbf16> to vector<2x32xbf16>
    %379 = math.tanh %378 : vector<2x32xbf16>
    %380 = vector.extract_strided_slice %377 {offsets = [0, 32], sizes = [2, 32], strides = [1, 1]} : vector<2x96xbf16> to vector<2x32xbf16>
    %381 = arith.mulf %380, %342 : vector<2x32xbf16>
    %382 = vector.extract_strided_slice %377 {offsets = [0, 0], sizes = [2, 32], strides = [1, 1]} : vector<2x96xbf16> to vector<2x32xbf16>
    %383 = arith.mulf %382, %379 : vector<2x32xbf16>
    %384 = arith.addf %381, %383 : vector<2x32xbf16>
    %385 = vector.extract_strided_slice %377 {offsets = [0, 64], sizes = [2, 32], strides = [1, 1]} : vector<2x96xbf16> to vector<2x32xbf16>
    %386 = math.tanh %384 : vector<2x32xbf16>
    %387 = arith.mulf %385, %386 : vector<2x32xbf16>
    %388 = tpu.concatenate %387, %368 in 1 : vector<2x32xbf16>, vector<2x32xbf16> -> vector<2x64xbf16>
    %cst_34 = arith.constant dense<0.000000e+00> : vector<2x256xf32>
    %389 = tpu.matmul %388, %71, %cst_34 {dimension_numbers = #tpu.dot_dimension_numbers<[1], [0], [0], [1], [0, 0, 1, 1], [], []>} : vector<2x64xbf16>, vector<64x256xbf16>, vector<2x256xf32> -> vector<2x256xf32>
    %390 = vector.extract_strided_slice %389 {offsets = [0, 0], sizes = [2, 128], strides = [1, 1]} : vector<2x256xf32> to vector<2x128xf32>
    %391 = vector.broadcast %72 : vector<1x128xf32> to vector<2x128xf32>
    %392 = arith.addf %390, %391 : vector<2x128xf32>
    %393 = arith.truncf %392 : vector<2x128xf32> to vector<2x128xbf16>
    %394 = vector.extract_strided_slice %393 {offsets = [0, 0], sizes = [2, 96], strides = [1, 1]} : vector<2x128xbf16> to vector<2x96xbf16>
    %395 = arith.negf %394 : vector<2x96xbf16>
    %396 = math.exp %395 : vector<2x96xbf16>
    %cst_35 = arith.constant 1.000000e+00 : bf16
    %397 = vector.broadcast %cst_35 : bf16 to vector<2x96xbf16>
    %398 = arith.addf %397, %396 : vector<2x96xbf16>
    %399 = arith.divf %397, %398 : vector<2x96xbf16>
    %400 = vector.extract_strided_slice %393 {offsets = [0, 96], sizes = [2, 32], strides = [1, 1]} : vector<2x128xbf16> to vector<2x32xbf16>
    %401 = math.tanh %400 : vector<2x32xbf16>
    %402 = vector.extract_strided_slice %399 {offsets = [0, 32], sizes = [2, 32], strides = [1, 1]} : vector<2x96xbf16> to vector<2x32xbf16>
    %403 = arith.mulf %402, %365 : vector<2x32xbf16>
    %404 = vector.extract_strided_slice %399 {offsets = [0, 0], sizes = [2, 32], strides = [1, 1]} : vector<2x96xbf16> to vector<2x32xbf16>
    %405 = arith.mulf %404, %401 : vector<2x32xbf16>
    %406 = arith.addf %403, %405 : vector<2x32xbf16>
    %407 = vector.extract_strided_slice %399 {offsets = [0, 64], sizes = [2, 32], strides = [1, 1]} : vector<2x96xbf16> to vector<2x32xbf16>
    %408 = math.tanh %406 : vector<2x32xbf16>
    %409 = arith.mulf %407, %408 : vector<2x32xbf16>
    %410 = arith.extf %409 : vector<2x32xbf16> to vector<2x32xf32>
    %411 = tpu.concatenate %410, %31, %64, %28, %29 in 1 : vector<2x32xf32>, vector<2x4xf32>, vector<2x4xf32>, vector<2x4xf32>, vector<2x4xf32> -> vector<2x48xf32>
    %c0_36 = arith.constant 0 : index
    %c0_37 = arith.constant 0 : index
    %412 = vector.load %arg4[%c0_36, %c0_37] : memref<48x512xbf16, #tpu.memory_space<vmem>>, vector<48x512xbf16>
    %413 = arith.truncf %411 : vector<2x48xf32> to vector<2x48xbf16>
    %cst_38 = arith.constant dense<0.000000e+00> : vector<2x512xf32>
    %414 = tpu.matmul %413, %412, %cst_38 {dimension_numbers = #tpu.dot_dimension_numbers<[1], [0], [0], [1], [0, 0, 1, 1], [], []>} : vector<2x48xbf16>, vector<48x512xbf16>, vector<2x512xf32> -> vector<2x512xf32>
    %c2 = arith.constant 2 : index
    %c0_39 = arith.constant 0 : index
    %415 = vector.load %arg8[%c2, %c0_39] : memref<9x1024xf32, #tpu.memory_space<vmem>>, vector<1x512xf32>
    %416 = vector.broadcast %415 : vector<1x512xf32> to vector<2x512xf32>
    %417 = arith.addf %414, %416 : vector<2x512xf32>
    %418 = vector.extract_strided_slice %417 {offsets = [0, 0], sizes = [2, 256], strides = [1, 1]} : vector<2x512xf32> to vector<2x256xf32>
    %c3 = arith.constant 3 : index
    %c0_40 = arith.constant 0 : index
    %419 = vector.load %arg8[%c3, %c0_40] : memref<9x1024xf32, #tpu.memory_space<vmem>>, vector<1x256xf32>
    %c3_41 = arith.constant 3 : index
    %c256 = arith.constant 256 : index
    %420 = vector.load %arg8[%c3_41, %c256] : memref<9x1024xf32, #tpu.memory_space<vmem>>, vector<1x256xf32>
    %cst_42 = arith.constant dense<0.000000e+00> : vector<2xf32>
    %421 = vector.multi_reduction <add>, %418, %cst_42 [1] : vector<2x256xf32> to vector<2xf32>
    %422 = vector.shape_cast %421 : vector<2xf32> to vector<2x1xf32>
    %cst_43 = arith.constant 2.560000e+02 : f32
    %423 = vector.broadcast %cst_43 : f32 to vector<2x1xf32>
    %424 = arith.divf %422, %423 : vector<2x1xf32>
    %425 = vector.broadcast %424 : vector<2x1xf32> to vector<2x256xf32>
    %426 = arith.subf %418, %425 : vector<2x256xf32>
    %427 = arith.mulf %426, %426 : vector<2x256xf32>
    %cst_44 = arith.constant dense<0.000000e+00> : vector<2xf32>
    %428 = vector.multi_reduction <add>, %427, %cst_44 [1] : vector<2x256xf32> to vector<2xf32>
    %429 = vector.shape_cast %428 : vector<2xf32> to vector<2x1xf32>
    %cst_45 = arith.constant 2.560000e+02 : f32
    %430 = vector.broadcast %cst_45 : f32 to vector<2x1xf32>
    %431 = arith.divf %429, %430 : vector<2x1xf32>
    %432 = vector.broadcast %424 : vector<2x1xf32> to vector<2x256xf32>
    %433 = arith.subf %418, %432 : vector<2x256xf32>
    %cst_46 = arith.constant 9.99999974E-6 : f32
    %434 = vector.broadcast %cst_46 : f32 to vector<2x1xf32>
    %435 = arith.addf %431, %434 : vector<2x1xf32>
    %436 = math.rsqrt %435 : vector<2x1xf32>
    %437 = vector.broadcast %436 : vector<2x1xf32> to vector<2x256xf32>
    %438 = arith.mulf %433, %437 : vector<2x256xf32>
    %439 = vector.broadcast %419 : vector<1x256xf32> to vector<2x256xf32>
    %440 = arith.mulf %438, %439 : vector<2x256xf32>
    %441 = vector.broadcast %420 : vector<1x256xf32> to vector<2x256xf32>
    %442 = arith.addf %440, %441 : vector<2x256xf32>
    %443 = arith.truncf %442 : vector<2x256xf32> to vector<2x256xbf16>
    %444 = vector.extract_strided_slice %417 {offsets = [0, 256], sizes = [2, 256], strides = [1, 1]} : vector<2x512xf32> to vector<2x256xf32>
    %c3_47 = arith.constant 3 : index
    %c512 = arith.constant 512 : index
    %445 = vector.load %arg8[%c3_47, %c512] : memref<9x1024xf32, #tpu.memory_space<vmem>>, vector<1x256xf32>
    %c3_48 = arith.constant 3 : index
    %c768 = arith.constant 768 : index
    %446 = vector.load %arg8[%c3_48, %c768] : memref<9x1024xf32, #tpu.memory_space<vmem>>, vector<1x256xf32>
    %cst_49 = arith.constant dense<0.000000e+00> : vector<2xf32>
    %447 = vector.multi_reduction <add>, %444, %cst_49 [1] : vector<2x256xf32> to vector<2xf32>
    %448 = vector.shape_cast %447 : vector<2xf32> to vector<2x1xf32>
    %cst_50 = arith.constant 2.560000e+02 : f32
    %449 = vector.broadcast %cst_50 : f32 to vector<2x1xf32>
    %450 = arith.divf %448, %449 : vector<2x1xf32>
    %451 = vector.broadcast %450 : vector<2x1xf32> to vector<2x256xf32>
    %452 = arith.subf %444, %451 : vector<2x256xf32>
    %453 = arith.mulf %452, %452 : vector<2x256xf32>
    %cst_51 = arith.constant dense<0.000000e+00> : vector<2xf32>
    %454 = vector.multi_reduction <add>, %453, %cst_51 [1] : vector<2x256xf32> to vector<2xf32>
    %455 = vector.shape_cast %454 : vector<2xf32> to vector<2x1xf32>
    %cst_52 = arith.constant 2.560000e+02 : f32
    %456 = vector.broadcast %cst_52 : f32 to vector<2x1xf32>
    %457 = arith.divf %455, %456 : vector<2x1xf32>
    %458 = vector.broadcast %450 : vector<2x1xf32> to vector<2x256xf32>
    %459 = arith.subf %444, %458 : vector<2x256xf32>
    %cst_53 = arith.constant 9.99999974E-6 : f32
    %460 = vector.broadcast %cst_53 : f32 to vector<2x1xf32>
    %461 = arith.addf %457, %460 : vector<2x1xf32>
    %462 = math.rsqrt %461 : vector<2x1xf32>
    %463 = vector.broadcast %462 : vector<2x1xf32> to vector<2x256xf32>
    %464 = arith.mulf %459, %463 : vector<2x256xf32>
    %465 = vector.broadcast %445 : vector<1x256xf32> to vector<2x256xf32>
    %466 = arith.mulf %464, %465 : vector<2x256xf32>
    %467 = vector.broadcast %446 : vector<1x256xf32> to vector<2x256xf32>
    %468 = arith.addf %466, %467 : vector<2x256xf32>
    %469 = arith.truncf %468 : vector<2x256xf32> to vector<2x256xbf16>
    %c0_54 = arith.constant 0 : index
    %c0_55 = arith.constant 0 : index
    %470 = vector.load %arg5[%c0_54, %c0_55] : memref<256x2048xbf16, #tpu.memory_space<vmem>>, vector<256x256xbf16>
    %cst_56 = arith.constant dense<0.000000e+00> : vector<2x256xf32>
    %471 = tpu.matmul %443, %470, %cst_56 {dimension_numbers = #tpu.dot_dimension_numbers<[1], [0], [0], [1], [0, 0, 1, 1], [], []>} : vector<2x256xbf16>, vector<256x256xbf16>, vector<2x256xf32> -> vector<2x256xf32>
    %c4 = arith.constant 4 : index
    %c0_57 = arith.constant 0 : index
    %472 = vector.load %arg8[%c4, %c0_57] : memref<9x1024xf32, #tpu.memory_space<vmem>>, vector<1x256xf32>
    %473 = vector.broadcast %472 : vector<1x256xf32> to vector<2x256xf32>
    %474 = arith.addf %471, %473 : vector<2x256xf32>
    %475 = arith.truncf %474 : vector<2x256xf32> to vector<2x256xbf16>
    %c0_58 = arith.constant 0 : index
    %c256_59 = arith.constant 256 : index
    %476 = vector.load %arg5[%c0_58, %c256_59] : memref<256x2048xbf16, #tpu.memory_space<vmem>>, vector<256x256xbf16>
    %cst_60 = arith.constant dense<0.000000e+00> : vector<2x256xf32>
    %477 = tpu.matmul %475, %476, %cst_60 {dimension_numbers = #tpu.dot_dimension_numbers<[1], [0], [0], [1], [0, 0, 1, 1], [], []>} : vector<2x256xbf16>, vector<256x256xbf16>, vector<2x256xf32> -> vector<2x256xf32>
    %c4_61 = arith.constant 4 : index
    %c256_62 = arith.constant 256 : index
    %478 = vector.load %arg8[%c4_61, %c256_62] : memref<9x1024xf32, #tpu.memory_space<vmem>>, vector<1x256xf32>
    %479 = vector.broadcast %478 : vector<1x256xf32> to vector<2x256xf32>
    %480 = arith.addf %477, %479 : vector<2x256xf32>
    %481 = arith.truncf %480 : vector<2x256xf32> to vector<2x256xbf16>
    %c0_63 = arith.constant 0 : index
    %c512_64 = arith.constant 512 : index
    %482 = vector.load %arg5[%c0_63, %c512_64] : memref<256x2048xbf16, #tpu.memory_space<vmem>>, vector<256x256xbf16>
    %cst_65 = arith.constant dense<0.000000e+00> : vector<2x256xf32>
    %483 = tpu.matmul %469, %482, %cst_65 {dimension_numbers = #tpu.dot_dimension_numbers<[1], [0], [0], [1], [0, 0, 1, 1], [], []>} : vector<2x256xbf16>, vector<256x256xbf16>, vector<2x256xf32> -> vector<2x256xf32>
    %c4_66 = arith.constant 4 : index
    %c512_67 = arith.constant 512 : index
    %484 = vector.load %arg8[%c4_66, %c512_67] : memref<9x1024xf32, #tpu.memory_space<vmem>>, vector<1x256xf32>
    %485 = vector.broadcast %484 : vector<1x256xf32> to vector<2x256xf32>
    %486 = arith.addf %483, %485 : vector<2x256xf32>
    %487 = arith.truncf %486 : vector<2x256xf32> to vector<2x256xbf16>
    %c0_68 = arith.constant 0 : index
    %c768_69 = arith.constant 768 : index
    %488 = vector.load %arg5[%c0_68, %c768_69] : memref<256x2048xbf16, #tpu.memory_space<vmem>>, vector<256x256xbf16>
    %cst_70 = arith.constant dense<0.000000e+00> : vector<2x256xf32>
    %489 = tpu.matmul %487, %488, %cst_70 {dimension_numbers = #tpu.dot_dimension_numbers<[1], [0], [0], [1], [0, 0, 1, 1], [], []>} : vector<2x256xbf16>, vector<256x256xbf16>, vector<2x256xf32> -> vector<2x256xf32>
    %c4_71 = arith.constant 4 : index
    %c768_72 = arith.constant 768 : index
    %490 = vector.load %arg8[%c4_71, %c768_72] : memref<9x1024xf32, #tpu.memory_space<vmem>>, vector<1x256xf32>
    %491 = vector.broadcast %490 : vector<1x256xf32> to vector<2x256xf32>
    %492 = arith.addf %489, %491 : vector<2x256xf32>
    %493 = arith.truncf %492 : vector<2x256xf32> to vector<2x256xbf16>
    %c0_73 = arith.constant 0 : index
    %c1024 = arith.constant 1024 : index
    %494 = vector.load %arg5[%c0_73, %c1024] : memref<256x2048xbf16, #tpu.memory_space<vmem>>, vector<256x256xbf16>
    %c5 = arith.constant 5 : index
    %c0_74 = arith.constant 0 : index
    %495 = vector.load %arg8[%c5, %c0_74] : memref<9x1024xf32, #tpu.memory_space<vmem>>, vector<1x256xf32>
    %c0_75 = arith.constant 0 : index
    %c1536 = arith.constant 1536 : index
    %496 = vector.load %arg5[%c0_75, %c1536] : memref<256x2048xbf16, #tpu.memory_space<vmem>>, vector<256x128xbf16>
    %c6 = arith.constant 6 : index
    %c0_76 = arith.constant 0 : index
    %497 = vector.load %arg8[%c6, %c0_76] : memref<9x1024xf32, #tpu.memory_space<vmem>>, vector<1x128xf32>
    %c0_77 = arith.constant 0 : index
    %c0_78 = arith.constant 0 : index
    %498 = vector.load %arg6[%c0_77, %c0_78] : memref<128x512xbf16, #tpu.memory_space<vmem>>, vector<128x64xbf16>
    %c0_79 = arith.constant 0 : index
    %c1792 = arith.constant 1792 : index
    %499 = vector.load %arg5[%c0_79, %c1792] : memref<256x2048xbf16, #tpu.memory_space<vmem>>, vector<256x64xbf16>
    %c7 = arith.constant 7 : index
    %c0_80 = arith.constant 0 : index
    %500 = vector.load %arg8[%c7, %c0_80] : memref<9x1024xf32, #tpu.memory_space<vmem>>, vector<1x64xf32>
    %c0_81 = arith.constant 0 : index
    %c0_82 = arith.constant 0 : index
    %501 = vector.load %arg7[%c0_81, %c0_82] : memref<64x384xbf16, #tpu.memory_space<vmem>>, vector<64x32xbf16>
    %c0_83 = arith.constant 0 : index
    %c256_84 = arith.constant 256 : index
    %502 = vector.load %arg6[%c0_83, %c256_84] : memref<128x512xbf16, #tpu.memory_space<vmem>>, vector<128x32xbf16>
    %c7_85 = arith.constant 7 : index
    %c256_86 = arith.constant 256 : index
    %503 = vector.load %arg8[%c7_85, %c256_86] : memref<9x1024xf32, #tpu.memory_space<vmem>>, vector<1x32xf32>
    %cst_87 = arith.constant dense<0.000000e+00> : vector<2x256xf32>
    %504 = tpu.matmul %481, %494, %cst_87 {dimension_numbers = #tpu.dot_dimension_numbers<[1], [0], [0], [1], [0, 0, 1, 1], [], []>} : vector<2x256xbf16>, vector<256x256xbf16>, vector<2x256xf32> -> vector<2x256xf32>
    %505 = vector.broadcast %495 : vector<1x256xf32> to vector<2x256xf32>
    %506 = arith.addf %504, %505 : vector<2x256xf32>
    %cst_88 = arith.constant 0.000000e+00 : f32
    %507 = vector.broadcast %cst_88 : f32 to vector<2x256xf32>
    %508 = arith.maximumf %506, %507 : vector<2x256xf32>
    %509 = arith.truncf %508 : vector<2x256xf32> to vector<2x256xbf16>
    %cst_89 = arith.constant dense<0.000000e+00> : vector<2x128xf32>
    %510 = tpu.matmul %509, %496, %cst_89 {dimension_numbers = #tpu.dot_dimension_numbers<[1], [0], [0], [1], [0, 0, 1, 1], [], []>} : vector<2x256xbf16>, vector<256x128xbf16>, vector<2x128xf32> -> vector<2x128xf32>
    %511 = vector.broadcast %497 : vector<1x128xf32> to vector<2x128xf32>
    %512 = arith.addf %510, %511 : vector<2x128xf32>
    %cst_90 = arith.constant 0.000000e+00 : f32
    %513 = vector.broadcast %cst_90 : f32 to vector<2x128xf32>
    %514 = arith.maximumf %512, %513 : vector<2x128xf32>
    %515 = arith.truncf %514 : vector<2x128xf32> to vector<2x128xbf16>
    %cst_91 = arith.constant dense<0.000000e+00> : vector<2x64xf32>
    %516 = tpu.matmul %515, %498, %cst_91 {dimension_numbers = #tpu.dot_dimension_numbers<[1], [0], [0], [1], [0, 0, 1, 1], [], []>} : vector<2x128xbf16>, vector<128x64xbf16>, vector<2x64xf32> -> vector<2x64xf32>
    %cst_92 = arith.constant dense<0.000000e+00> : vector<2x64xf32>
    %517 = tpu.matmul %509, %499, %cst_92 {dimension_numbers = #tpu.dot_dimension_numbers<[1], [0], [0], [1], [0, 0, 1, 1], [], []>} : vector<2x256xbf16>, vector<256x64xbf16>, vector<2x64xf32> -> vector<2x64xf32>
    %518 = arith.addf %516, %517 : vector<2x64xf32>
    %519 = vector.broadcast %500 : vector<1x64xf32> to vector<2x64xf32>
    %520 = arith.addf %518, %519 : vector<2x64xf32>
    %cst_93 = arith.constant 0.000000e+00 : f32
    %521 = vector.broadcast %cst_93 : f32 to vector<2x64xf32>
    %522 = arith.maximumf %520, %521 : vector<2x64xf32>
    %523 = arith.truncf %522 : vector<2x64xf32> to vector<2x64xbf16>
    %cst_94 = arith.constant dense<0.000000e+00> : vector<2x32xf32>
    %524 = tpu.matmul %523, %501, %cst_94 {dimension_numbers = #tpu.dot_dimension_numbers<[1], [0], [0], [1], [0, 0, 1, 1], [], []>} : vector<2x64xbf16>, vector<64x32xbf16>, vector<2x32xf32> -> vector<2x32xf32>
    %cst_95 = arith.constant dense<0.000000e+00> : vector<2x32xf32>
    %525 = tpu.matmul %515, %502, %cst_95 {dimension_numbers = #tpu.dot_dimension_numbers<[1], [0], [0], [1], [0, 0, 1, 1], [], []>} : vector<2x128xbf16>, vector<128x32xbf16>, vector<2x32xf32> -> vector<2x32xf32>
    %526 = arith.addf %524, %525 : vector<2x32xf32>
    %527 = vector.broadcast %503 : vector<1x32xf32> to vector<2x32xf32>
    %528 = arith.addf %526, %527 : vector<2x32xf32>
    %cst_96 = arith.constant 0.000000e+00 : f32
    %529 = vector.broadcast %cst_96 : f32 to vector<2x32xf32>
    %530 = arith.maximumf %528, %529 : vector<2x32xf32>
    %531 = arith.truncf %530 : vector<2x32xf32> to vector<2x32xbf16>
    %c0_97 = arith.constant 0 : index
    %c1280 = arith.constant 1280 : index
    %532 = vector.load %arg5[%c0_97, %c1280] : memref<256x2048xbf16, #tpu.memory_space<vmem>>, vector<256x256xbf16>
    %c5_98 = arith.constant 5 : index
    %c256_99 = arith.constant 256 : index
    %533 = vector.load %arg8[%c5_98, %c256_99] : memref<9x1024xf32, #tpu.memory_space<vmem>>, vector<1x256xf32>
    %c0_100 = arith.constant 0 : index
    %c1664 = arith.constant 1664 : index
    %534 = vector.load %arg5[%c0_100, %c1664] : memref<256x2048xbf16, #tpu.memory_space<vmem>>, vector<256x128xbf16>
    %c6_101 = arith.constant 6 : index
    %c128 = arith.constant 128 : index
    %535 = vector.load %arg8[%c6_101, %c128] : memref<9x1024xf32, #tpu.memory_space<vmem>>, vector<1x128xf32>
    %c0_102 = arith.constant 0 : index
    %c128_103 = arith.constant 128 : index
    %536 = vector.load %arg6[%c0_102, %c128_103] : memref<128x512xbf16, #tpu.memory_space<vmem>>, vector<128x64xbf16>
    %c0_104 = arith.constant 0 : index
    %c1920 = arith.constant 1920 : index
    %537 = vector.load %arg5[%c0_104, %c1920] : memref<256x2048xbf16, #tpu.memory_space<vmem>>, vector<256x64xbf16>
    %c7_105 = arith.constant 7 : index
    %c128_106 = arith.constant 128 : index
    %538 = vector.load %arg8[%c7_105, %c128_106] : memref<9x1024xf32, #tpu.memory_space<vmem>>, vector<1x64xf32>
    %c0_107 = arith.constant 0 : index
    %c128_108 = arith.constant 128 : index
    %539 = vector.load %arg7[%c0_107, %c128_108] : memref<64x384xbf16, #tpu.memory_space<vmem>>, vector<64x32xbf16>
    %c0_109 = arith.constant 0 : index
    %c384 = arith.constant 384 : index
    %540 = vector.load %arg6[%c0_109, %c384] : memref<128x512xbf16, #tpu.memory_space<vmem>>, vector<128x32xbf16>
    %c7_110 = arith.constant 7 : index
    %c384_111 = arith.constant 384 : index
    %541 = vector.load %arg8[%c7_110, %c384_111] : memref<9x1024xf32, #tpu.memory_space<vmem>>, vector<1x32xf32>
    %cst_112 = arith.constant dense<0.000000e+00> : vector<2x256xf32>
    %542 = tpu.matmul %493, %532, %cst_112 {dimension_numbers = #tpu.dot_dimension_numbers<[1], [0], [0], [1], [0, 0, 1, 1], [], []>} : vector<2x256xbf16>, vector<256x256xbf16>, vector<2x256xf32> -> vector<2x256xf32>
    %543 = vector.broadcast %533 : vector<1x256xf32> to vector<2x256xf32>
    %544 = arith.addf %542, %543 : vector<2x256xf32>
    %cst_113 = arith.constant 0.000000e+00 : f32
    %545 = vector.broadcast %cst_113 : f32 to vector<2x256xf32>
    %546 = arith.maximumf %544, %545 : vector<2x256xf32>
    %547 = arith.truncf %546 : vector<2x256xf32> to vector<2x256xbf16>
    %cst_114 = arith.constant dense<0.000000e+00> : vector<2x128xf32>
    %548 = tpu.matmul %547, %534, %cst_114 {dimension_numbers = #tpu.dot_dimension_numbers<[1], [0], [0], [1], [0, 0, 1, 1], [], []>} : vector<2x256xbf16>, vector<256x128xbf16>, vector<2x128xf32> -> vector<2x128xf32>
    %549 = vector.broadcast %535 : vector<1x128xf32> to vector<2x128xf32>
    %550 = arith.addf %548, %549 : vector<2x128xf32>
    %cst_115 = arith.constant 0.000000e+00 : f32
    %551 = vector.broadcast %cst_115 : f32 to vector<2x128xf32>
    %552 = arith.maximumf %550, %551 : vector<2x128xf32>
    %553 = arith.truncf %552 : vector<2x128xf32> to vector<2x128xbf16>
    %cst_116 = arith.constant dense<0.000000e+00> : vector<2x64xf32>
    %554 = tpu.matmul %553, %536, %cst_116 {dimension_numbers = #tpu.dot_dimension_numbers<[1], [0], [0], [1], [0, 0, 1, 1], [], []>} : vector<2x128xbf16>, vector<128x64xbf16>, vector<2x64xf32> -> vector<2x64xf32>
    %cst_117 = arith.constant dense<0.000000e+00> : vector<2x64xf32>
    %555 = tpu.matmul %547, %537, %cst_117 {dimension_numbers = #tpu.dot_dimension_numbers<[1], [0], [0], [1], [0, 0, 1, 1], [], []>} : vector<2x256xbf16>, vector<256x64xbf16>, vector<2x64xf32> -> vector<2x64xf32>
    %556 = arith.addf %554, %555 : vector<2x64xf32>
    %557 = vector.broadcast %538 : vector<1x64xf32> to vector<2x64xf32>
    %558 = arith.addf %556, %557 : vector<2x64xf32>
    %cst_118 = arith.constant 0.000000e+00 : f32
    %559 = vector.broadcast %cst_118 : f32 to vector<2x64xf32>
    %560 = arith.maximumf %558, %559 : vector<2x64xf32>
    %561 = arith.truncf %560 : vector<2x64xf32> to vector<2x64xbf16>
    %cst_119 = arith.constant dense<0.000000e+00> : vector<2x32xf32>
    %562 = tpu.matmul %561, %539, %cst_119 {dimension_numbers = #tpu.dot_dimension_numbers<[1], [0], [0], [1], [0, 0, 1, 1], [], []>} : vector<2x64xbf16>, vector<64x32xbf16>, vector<2x32xf32> -> vector<2x32xf32>
    %cst_120 = arith.constant dense<0.000000e+00> : vector<2x32xf32>
    %563 = tpu.matmul %553, %540, %cst_120 {dimension_numbers = #tpu.dot_dimension_numbers<[1], [0], [0], [1], [0, 0, 1, 1], [], []>} : vector<2x128xbf16>, vector<128x32xbf16>, vector<2x32xf32> -> vector<2x32xf32>
    %564 = arith.addf %562, %563 : vector<2x32xf32>
    %565 = vector.broadcast %541 : vector<1x32xf32> to vector<2x32xf32>
    %566 = arith.addf %564, %565 : vector<2x32xf32>
    %cst_121 = arith.constant 0.000000e+00 : f32
    %567 = vector.broadcast %cst_121 : f32 to vector<2x32xf32>
    %568 = arith.maximumf %566, %567 : vector<2x32xf32>
    %569 = arith.truncf %568 : vector<2x32xf32> to vector<2x32xbf16>
    %570 = tpu.concatenate %531, %569 in 1 : vector<2x32xbf16>, vector<2x32xbf16> -> vector<2x64xbf16>
    %c0_122 = arith.constant 0 : index
    %c256_123 = arith.constant 256 : index
    %571 = vector.load %arg7[%c0_122, %c256_123] : memref<64x384xbf16, #tpu.memory_space<vmem>>, vector<64x128xbf16>
    %cst_124 = arith.constant dense<0.000000e+00> : vector<2x128xf32>
    %572 = tpu.matmul %570, %571, %cst_124 {dimension_numbers = #tpu.dot_dimension_numbers<[1], [0], [0], [1], [0, 0, 1, 1], [], []>} : vector<2x64xbf16>, vector<64x128xbf16>, vector<2x128xf32> -> vector<2x128xf32>
    %c8 = arith.constant 8 : index
    %c0_125 = arith.constant 0 : index
    %573 = vector.load %arg8[%c8, %c0_125] : memref<9x1024xf32, #tpu.memory_space<vmem>>, vector<1x128xf32>
    %574 = vector.broadcast %573 : vector<1x128xf32> to vector<2x128xf32>
    %575 = arith.addf %572, %574 : vector<2x128xf32>
    %c0_126 = arith.constant 0 : index
    %c0_127 = arith.constant 0 : index
    %576 = vector.load %arg9[%c0_126, %c0_127] : memref<2x128xf32, #tpu.memory_space<vmem>>, vector<2x128xf32>
    tpu.vector_store %arg9[%c0_126, %c0_127], %575 {strides = array<i32>} : memref<2x128xf32, #tpu.memory_space<vmem>>, vector<2x128xf32>,
    return
  }
  func.func @transform_0(%arg0: i32) -> (i32, i32) {
    %c0_i32 = arith.constant 0 : i32
    %c0_i32_0 = arith.constant 0 : i32
    return %arg0, %c0_i32 : i32, i32
  }
  func.func @transform_1(%arg0: i32) -> (i32, i32) {
    %c0_i32 = arith.constant 0 : i32
    %c0_i32_0 = arith.constant 0 : i32
    %c0_i32_1 = arith.constant 0 : i32
    return %c0_i32, %c0_i32_0 : i32, i32
  }
  func.func @transform_2(%arg0: i32) -> (i32, i32) {
    %c0_i32 = arith.constant 0 : i32
    %c0_i32_0 = arith.constant 0 : i32
    %c0_i32_1 = arith.constant 0 : i32
    return %c0_i32, %c0_i32_0 : i32, i32
  }
  func.func @transform_3(%arg0: i32) -> (i32, i32) {
    %c0_i32 = arith.constant 0 : i32
    %c0_i32_0 = arith.constant 0 : i32
    %c0_i32_1 = arith.constant 0 : i32
    return %c0_i32, %c0_i32_0 : i32, i32
  }
  func.func @transform_4(%arg0: i32) -> (i32, i32) {
    %c0_i32 = arith.constant 0 : i32
    %c0_i32_0 = arith.constant 0 : i32
    %c0_i32_1 = arith.constant 0 : i32
    return %c0_i32, %c0_i32_0 : i32, i32
  }
  func.func @transform_5(%arg0: i32) -> (i32, i32) {
    %c0_i32 = arith.constant 0 : i32
    %c0_i32_0 = arith.constant 0 : i32
    %c0_i32_1 = arith.constant 0 : i32
    return %c0_i32, %c0_i32_0 : i32, i32
  }
  func.func @transform_6(%arg0: i32) -> (i32, i32) {
    %c0_i32 = arith.constant 0 : i32
    %c0_i32_0 = arith.constant 0 : i32
    %c0_i32_1 = arith.constant 0 : i32
    return %c0_i32, %c0_i32_0 : i32, i32
  }
  func.func @transform_7(%arg0: i32) -> (i32, i32) {
    %c0_i32 = arith.constant 0 : i32
    %c0_i32_0 = arith.constant 0 : i32
    %c0_i32_1 = arith.constant 0 : i32
    return %c0_i32, %c0_i32_0 : i32, i32
  }
  func.func @transform_8(%arg0: i32) -> (i32, i32) {
    %c0_i32 = arith.constant 0 : i32
    %c0_i32_0 = arith.constant 0 : i32
    return %arg0, %c0_i32 : i32, i32
  }
}

</mosaic_0001>

<bundles_post_ra>
// kernel: run_pallas.1
= control target key start
LH: loop header
LB: loop body
LE: loop exit
PB: predicated region body
PF: predicated region fallthrough
CT: control target
= control target key end

     0   :  { %13 = vsyncpa [#allocation3], 0  ;;  %s6403_s0 = inlined_call_operand.hbm [shape: f32[2,32], index: 0, kind: input, shape index: {}]   ;;  %s6404_s1 = inlined_call_operand.hbm [shape: bf16[32,1024], index: 1, kind: input, shape index: {}]   ;;  %s6405_s2 = inlined_call_operand.hbm [shape: bf16[64,256], index: 2, kind: input, shape index: {}]   ;;  %s6406_s3 = inlined_call_operand.hbm [shape: bf16[48,512], index: 3, kind: input, shape index: {}]   ;;  %s6407_s4 = inlined_call_operand.hbm [shape: bf16[256,2048], index: 4, kind: input, shape index: {}]   ;;  %s6408_s5 = inlined_call_operand.hbm [shape: bf16[128,512], index: 5, kind: input, shape index: {}]   ;;  %s6409_s6 = inlined_call_operand.hbm [shape: bf16[64,384], index: 6, kind: input, shape index: {}]   ;;  %s6410_s7 = inlined_call_operand.hbm [shape: f32[9,1024], index: 7, kind: input, shape index: {}]   ;;  %s6411_s8 = inlined_call_operand.vmem [shape: f32[2,128], index: 8, kind: output, shape index: {}]  }
   0x1   :  { %14 = vsyncpa [#allocation5], 0 }
   0x2   :  { %15 = vsyncpa [#allocation8], 0 }
   0x3   :  { %16 = vsyncpa [#allocation11], 0 }
   0x4   :  { %17 = vsyncpa [#allocation14], 0  ;;  %s5681_s27 = smov [#allocation4]   ;;  %s5495_s9 = scalar_lea.hbm %s6404_s1, 2048 }
   0x5   :  { %s33_s28 = sshll.u32 %s5681_s27, 4  ;;  %p5496_p0 = scmp.ne.s32.totalorder %s6404_s1, %s5495_s9  ;;  %s34_s28 = int_to_ptr.vmem [resolvable:$true] %s33_s28 }
   0x6   :  { %p5499_p1 = scmp.lt.u32.totalorder %s5495_s9, %s6404_s1 }
   0x8   :  { %p5501_p2 = pnand %p5499_p1, %p5496_p0 }
   0xa   :  { %5504 = shalt.err (!%p5501_p2)
}
   0xb   :  { %s5505_s14 = scalar_lea.vmem %s34_s28, 2048  ;;  %p5510_p4 = scmp.lt.s32.totalorder %s34_s28, %s34_s28 }
   0xc   :  { %p5506_p3 = scmp.ne.s32.totalorder %s34_s28, %s5505_s14  ;;  %p5511_p5 = scmp.lt.s32.totalorder %s5505_s14, %s5505_s14 }
   0xe   :  { %p5512_p6 = por %p5511_p5, %p5510_p4 }
  0x10   :  { %p5513_p7 = pnand %p5512_p6, %p5506_p3 }
  0x12   :  { %5516 = shalt.err (!%p5513_p7)
}
  0x13   :  { %s5682_s15 = smov 512   ;;  %s5683_s16 = smov 32  }
  0x14   :  { %39 = dma.hbm_to_vmem [thread:$0]  %s6404_s1, 2048, %s34_s28, [#allocation5], %s5682_s15, %s5682_s15, %s5683_s16  }
  0x15   :  { %s5684_s19 = smov [#allocation7]   ;;  %s5517_s23 = scalar_lea.hbm %s6406_s3, 1536 }
  0x16   :  { %s57_s20 = sshll.u32 %s5684_s19, 4  ;;  %p5518_p8 = scmp.ne.s32.totalorder %s6406_s3, %s5517_s23  ;;  %s58_s20 = int_to_ptr.vmem [resolvable:$true] %s57_s20 }
  0x17   :  { %p5521_p9 = scmp.lt.u32.totalorder %s5517_s23, %s6406_s3 }
  0x19   :  { %p5523_p10 = pnand %p5521_p9, %p5518_p8 }
  0x1b   :  { %5526 = shalt.err (!%p5523_p10)
}
  0x1c   :  { %s5527_s29 = scalar_lea.vmem %s58_s20, 1536  ;;  %p5532_p12 = scmp.lt.s32.totalorder %s58_s20, %s58_s20 }
  0x1d   :  { %p5528_p11 = scmp.ne.s32.totalorder %s58_s20, %s5527_s29  ;;  %p5533_p13 = scmp.lt.s32.totalorder %s5527_s29, %s5527_s29 }
  0x1f   :  { %p5534_p0 = por %p5533_p13, %p5532_p12 }
  0x21   :  { %p5535_p1 = pnand %p5534_p0, %p5528_p11 }
  0x23   :  { %5538 = shalt.err (!%p5535_p1)
}
  0x24   :  { %s5685_s1 = smov 256   ;;  %s5686_s28 = smov 16  }
  0x25   :  { %63 = dma.hbm_to_vmem [thread:$0]  %s6406_s3, 1536, %s58_s20, [#allocation8], %s5685_s1, %s5685_s1, %s5686_s28  }
  0x26   :  { %s5687_s10 = smov [#allocation10]   ;;  %s5688_s12 = smov [#allocation2]  }
  0x27   :  { %s81_s11 = sshll.u32 %s5687_s10, 4  ;;  %s24_s13 = sshll.u32 %s5688_s12, 4  ;;  %s82_s11 = int_to_ptr.vmem [resolvable:$true] %s81_s11  ;;  %s25_s13 = int_to_ptr.vmem [resolvable:$true] %s24_s13 }
  0x28   :  { %s5539_s17 = scalar_lea.hbm %s6408_s5, 4096 }
  0x29   :  { %p5540_p2 = scmp.ne.s32.totalorder %s6408_s5, %s5539_s17  ;;  %p5543_p3 = scmp.lt.u32.totalorder %s5539_s17, %s6408_s5 }
  0x2b   :  { %p5545_p4 = pnand %p5543_p3, %p5540_p2 }
  0x2d   :  { %5548 = shalt.err (!%p5545_p4)
}
  0x2e   :  { %s5549_s3 = scalar_lea.vmem %s82_s11, 4096  ;;  %p5554_p6 = scmp.lt.s32.totalorder %s82_s11, %s82_s11 }
  0x2f   :  { %p5550_p5 = scmp.ne.s32.totalorder %s82_s11, %s5549_s3  ;;  %p5555_p7 = scmp.lt.s32.totalorder %s5549_s3, %s5549_s3 }
  0x31   :  { %p5556_p8 = por %p5555_p7, %p5554_p6 }
  0x33   :  { %p5557_p9 = pnand %p5556_p8, %p5550_p5 }
  0x35   :  { %5560 = shalt.err (!%p5557_p9)
}
  0x36   :  { %87 = dma.hbm_to_vmem [thread:$0]  %s6408_s5, 4096, %s82_s11, [#allocation11], %s5685_s1, %s5685_s1, %s5686_s28  }
  0x37   :  { %s5561_s26 = scalar_lea.hbm %s6403_s0, 32 }
  0x38   :  { %p5562_p10 = scmp.ne.s32.totalorder %s6403_s0, %s5561_s26  ;;  %p5565_p11 = scmp.lt.u32.totalorder %s5561_s26, %s6403_s0 }
  0x3a   :  { %p5567_p12 = pnand %p5565_p11, %p5562_p10 }
  0x3c   :  { %5570 = shalt.err (!%p5567_p12)
}
  0x3d   :  { %s5571_s10 = scalar_lea.vmem %s25_s13, 32  ;;  %p5576_p0 = scmp.lt.s32.totalorder %s25_s13, %s25_s13 }
  0x3e   :  { %p5572_p13 = scmp.ne.s32.totalorder %s25_s13, %s5571_s10  ;;  %p5577_p1 = scmp.lt.s32.totalorder %s5571_s10, %s5571_s10 }
  0x40   :  { %p5578_p2 = por %p5577_p1, %p5576_p0 }
  0x42   :  { %p5579_p3 = pnand %p5578_p2, %p5572_p13 }
  0x44   :  { %5582 = shalt.err (!%p5579_p3)
}
  0x45   :  { %27 = dma.hbm_to_vmem [thread:$0]  %s6403_s0, 32, %s25_s13, [#allocation3]  }
  0x46   :  { %s5689_s11 = smov [#allocation6]   ;;  %s5583_s17 = scalar_lea.hbm %s6405_s2, 1024 }
  0x47   :  { %s45_s12 = sshll.u32 %s5689_s11, 4  ;;  %p5584_p4 = scmp.ne.s32.totalorder %s6405_s2, %s5583_s17  ;;  %s46_s12 = int_to_ptr.vmem [resolvable:$true] %s45_s12 }
  0x48   :  { %p5587_p5 = scmp.lt.u32.totalorder %s5583_s17, %s6405_s2 }
  0x4a   :  { %p5589_p6 = pnand %p5587_p5, %p5584_p4 }
  0x4c   :  { %5592 = shalt.err (!%p5589_p6)
}
  0x4d   :  { %s5593_s3 = scalar_lea.vmem %s46_s12, 1024  ;;  %p5598_p8 = scmp.lt.s32.totalorder %s46_s12, %s46_s12 }
  0x4e   :  { %p5594_p7 = scmp.ne.s32.totalorder %s46_s12, %s5593_s3  ;;  %p5599_p9 = scmp.lt.s32.totalorder %s5593_s3, %s5593_s3 }
  0x50   :  { %p5600_p10 = por %p5599_p9, %p5598_p8 }
  0x52   :  { %p5601_p11 = pnand %p5600_p10, %p5594_p7 }
  0x54   :  { %5604 = shalt.err (!%p5601_p11)
}
  0x55   :  { %s5690_s0 = smov 128   ;;  %s5691_s13 = smov 8  }
  0x56   :  { %51 = dma.hbm_to_vmem [thread:$0]  %s6405_s2, 1024, %s46_s12, [#allocation5], %s5690_s0, %s5690_s0, %s5691_s13  }
  0x57   :  { %s5692_s24 = smov [#allocation9]   ;;  %s5605_s29 = scalar_lea.hbm %s6407_s4, 32768 }
  0x58   :  { %s69_s25 = sshll.u32 %s5692_s24, 4  ;;  %p5606_p12 = scmp.ne.s32.totalorder %s6407_s4, %s5605_s29  ;;  %s70_s25 = int_to_ptr.vmem [resolvable:$true] %s69_s25 }
  0x59   :  { %p5609_p13 = scmp.lt.u32.totalorder %s5605_s29, %s6407_s4 }
  0x5b   :  { %p5611_p0 = pnand %p5609_p13, %p5606_p12 }
  0x5d   :  { %5614 = shalt.err (!%p5611_p0)
}
  0x5e   :  { %s5615_s1 = scalar_lea.vmem %s70_s25, 32768  ;;  %p5620_p2 = scmp.lt.s32.totalorder %s70_s25, %s70_s25 }
  0x5f   :  { %p5616_p1 = scmp.ne.s32.totalorder %s70_s25, %s5615_s1  ;;  %p5621_p3 = scmp.lt.s32.totalorder %s5615_s1, %s5615_s1 }
  0x61   :  { %p5622_p4 = por %p5621_p3, %p5620_p2 }
  0x63   :  { %p5623_p5 = pnand %p5622_p4, %p5616_p1 }
  0x65   :  { %5626 = shalt.err (!%p5623_p5)
}
  0x66   :  { %s5693_s2 = smov 1024   ;;  %s5694_s11 = smov 64  }
  0x67   :  { %75 = dma.hbm_to_vmem [thread:$0]  %s6407_s4, 32768, %s70_s25, [#allocation8], %s5693_s2, %s5693_s2, %s5694_s11  }
  0x68   :  { %s5695_s15 = smov [#allocation12]   ;;  %s5627_s21 = scalar_lea.hbm %s6409_s6, 1536 }
  0x69   :  { %s93_s17 = sshll.u32 %s5695_s15, 4  ;;  %p5628_p6 = scmp.ne.s32.totalorder %s6409_s6, %s5627_s21  ;;  %s94_s17 = int_to_ptr.vmem [resolvable:$true] %s93_s17 }
  0x6a   :  { %p5631_p7 = scmp.lt.u32.totalorder %s5627_s21, %s6409_s6 }
  0x6c   :  { %p5633_p8 = pnand %p5631_p7, %p5628_p6 }
  0x6e   :  { %5636 = shalt.err (!%p5633_p8)
}
  0x6f   :  { %s5637_s23 = scalar_lea.vmem %s94_s17, 1536  ;;  %p5642_p10 = scmp.lt.s32.totalorder %s94_s17, %s94_s17 }
  0x70   :  { %p5638_p9 = scmp.ne.s32.totalorder %s94_s17, %s5637_s23  ;;  %p5643_p11 = scmp.lt.s32.totalorder %s5637_s23, %s5637_s23 }
  0x72   :  { %p5644_p12 = por %p5643_p11, %p5642_p10 }
  0x74   :  { %p5645_p13 = pnand %p5644_p12, %p5638_p9 }
  0x76   :  { %5648 = shalt.err (!%p5645_p13)
}
  0x77   :  { %s5696_s4 = smov 192   ;;  %s5697_s24 = smov 12  }
  0x78   :  { %99 = dma.hbm_to_vmem [thread:$0]  %s6409_s6, 1536, %s94_s17, [#allocation11], %s5696_s4, %s5696_s4, %s5697_s24  }
  0x79   :  { %s5698_s27 = smov [#allocation13]   ;;  %s5649_s10 = scalar_lea.hbm %s6410_s7, 2048 }
  0x7a   :  { %s105_s29 = sshll.u32 %s5698_s27, 4  ;;  %p5650_p0 = scmp.ne.s32.totalorder %s6410_s7, %s5649_s10  ;;  %s106_s29 = int_to_ptr.vmem [resolvable:$true] %s105_s29 }
  0x7b   :  { %p5653_p1 = scmp.lt.u32.totalorder %s5649_s10, %s6410_s7 }
  0x7d   :  { %p5655_p2 = pnand %p5653_p1, %p5650_p0 }
  0x7f   :  { %5658 = shalt.err (!%p5655_p2)
}
  0x80   :  { %s5659_s15 = scalar_lea.vmem %s106_s29, 2048  ;;  %p5664_p4 = scmp.lt.s32.totalorder %s106_s29, %s106_s29 }
  0x81   :  { %p5660_p3 = scmp.ne.s32.totalorder %s106_s29, %s5659_s15  ;;  %p5665_p5 = scmp.lt.s32.totalorder %s5659_s15, %s5659_s15 }
  0x83   :  { %p5666_p6 = por %p5665_p5, %p5664_p4 }
  0x85   :  { %p5667_p7 = pnand %p5666_p6, %p5660_p3 }
  0x87   :  { %5670 = shalt.err (!%p5667_p7)
}
  0x88   :  { %111 = dma.hbm_to_vmem [thread:$0]  %s6410_s7, 2048, %s106_s29, [#allocation14], %s5693_s2, %s5693_s2, %s5694_s11  }
  0x89   :  { %5671 = dma.done.wait [#allocation3], 32  }
  0x8a   :  { %5672 = vsyncadd [#allocation3], 4294967264 }
  0x8b   :  { %5673 = dma.done.wait [#allocation5], 3072  }
  0x8c   :  { %5674 = vsyncadd [#allocation5], 4294964224 }
  0x8d   :  { %5675 = dma.done.wait [#allocation8], 34304  }
  0x8e   :  { %5676 = vsyncadd [#allocation8], 4294932992 }
  0x8f   :  { %5677 = dma.done.wait [#allocation11], 5632  }
  0x90   :  { %5678 = vsyncadd [#allocation11], 4294961664 }
  0x91   :  { %5679 = dma.done.wait [#allocation14], 2048  }
  0x92   :  { %5680 = vsyncadd [#allocation14], 4294965248  ;;  %v5699_v0 = vmov 0   ;;  %v264_v1 = vld [vmem:[#allocation4] sm:$0xff]  ;;  %v138_v8 = vld [vmem:[#allocation2] sm:$0x3]  ;;  %v285_v11 = vlaneseq }
  0x93   :  { %441 = vmatprep.mubr.bf16.mxu1 %v5699_v0  ;;  %523 = vmatprep.mubr.bf16.mxu0 %v5699_v0  ;;  %v268_v2 = vld [vmem:[#allocation4 + $0x20] sm:$0xff]  ;;  %v5871_v10 = vpack.c.bf16 %v138_v8, %v138_v8  ;;  %vm405_vm0 = vcmask 261120   ;;  %v266_v35 = vld [vmem:[#allocation4 + $0x10] sm:$0xff]  ;;  %vm655_vm1 = vcmask 523264   ;;  %s5700_s7 = smov 96   ;;  %s5701_s2 = smov 120  }
  0x94   :  { %v272_v3 = vld [vmem:[#allocation4 + $0x40] sm:$0xff]  ;;  %v4626_v4 = vcombine.high %v264_v1, %v268_v2  ;;  %v4625_v5 = vcombine.low %v264_v1, %v268_v2  ;;  %v5876_v12 = vshrl.u32 %v285_v11, 7  ;;  %v270_v36 = vld [vmem:[#allocation4 + $0x30] sm:$0xff]  ;;  %s5702_s18 = smov 124   ;;  %s5703_s19 = smov 112   ;;  %vm1488_vm4 = vcmask 293888  }
  0x95   :  { %v276_v6 = vld [vmem:[#allocation4 + $0x60] sm:$0xff]  ;;  %v274_v37 = vld [vmem:[#allocation4 + $0x50] sm:$0xff]  ;;  %v4630_v38 = vcombine.high %v266_v35, %v270_v36  ;;  %v4629_v39 = vcombine.low %v266_v35, %v270_v36  ;;  %v265_v36 = vld [vmem:[#allocation4 + $0x8] sm:$0xff]  ;;  %s5704_s21 = smov 116   ;;  %s5705_s22 = smov 104   ;;  %vm1490_vm5 = vcmask 326656  }
  0x96   :  { %v4634_v7 = vcombine.high %v272_v3, %v276_v6  ;;  %409 = vmatprep.subr.bf16.mxu1 %v4626_v4  ;;  %v4633_v9 = vcombine.low %v272_v3, %v276_v6  ;;  %v281_v13 = vld [vmem:[#allocation13] ss:$8 sm:$0xf]  ;;  %v5881_v16 = vsub.s32 0, %v5876_v12  ;;  %v5892_v43 = vld [vmem:[#allocation6 + $0x4] ss:$8 sps:$4 sm:$0xff]  }
  0x97   :  { %410 = vmatpush1.bf16.msra.mxu1 %v4625_v5  ;;  %v282_v14 = vld [vmem:[#allocation13] ss:$8 sm:$0xf0]  ;;  %491 = vmatprep.subr.bf16.mxu0 %v4630_v38  ;;  %v5897_v45 = vld [vmem:[#allocation6 + $0x14] ss:$8 sps:$4 sm:$0xff]   ;;  %v5938_v60 = vsub.s32 1, %v5876_v12 }
  0x98   :  { %411 = vmatprep.subr.bf16.mxu1 %v4634_v7  ;;  %v5878_v15 = vor.u32 %v282_v14, %v281_v13  ;;  %v278_v40 = vld [vmem:[#allocation4 + $0x70] sm:$0xff]  ;;  %492 = vmatpush1.bf16.msra.mxu0 %v4629_v39  ;;  %v5894_v44 = vld [vmem:[#allocation6] ss:$8 sps:$4 sm:$0xff]   ;;  %v5907_v48 = vld [vmem:[#allocation6 + $0x24] ss:$8 sps:$4 sm:$0xff]   ;;  %s5706_s3 = smov 108  }
  0x99   :  { %v4638_v41 = vcombine.high %v274_v37, %v278_v40  ;;  %v4637_v42 = vcombine.low %v274_v37, %v278_v40  ;;  %v5903_v47 = vld [vmem:[#allocation6 + $0x10] ss:$8 sps:$4 sm:$0xff]   ;;  %v5910_v49 = vld [vmem:[#allocation6 + $0x20] ss:$8 sps:$4 sm:$0xff]   ;;  %v5913_v50 = vld [vmem:[#allocation6 + $0x34] ss:$8 sps:$4 sm:$0xff]  }
  0x9a   :  { %v288_v17 = vrot.slane %v5878_v15, %v5881_v16  ;;  %v5916_v51 = vld [vmem:[#allocation6 + $0x30] ss:$8 sps:$4 sm:$0xff]   ;;  %v292_v61 = vrot.slane %v5878_v15, %v5938_v60  ;;  %v5942_v62 = vld [vmem:[#allocation13 + $0x1] ss:$0 sm:$0xff]  ;;  %v269_v37 = vld [vmem:[#allocation4 + $0x28] sm:$0xff]  ;;  %s5707_s0 = smov 100  }
  0x9b   :  { %412 = vmatpush1.bf16.msra.mxu1 %v4633_v9  ;;  %493 = vmatprep.subr.bf16.mxu0 %v4638_v41  ;;  %v273_v38 = vld [vmem:[#allocation4 + $0x48] sm:$0xff]  ;;  %v4627_v39 = vcombine.low %v265_v36, %v269_v37  ;;  %v4628_v40 = vcombine.high %v265_v36, %v269_v37  ;;  %s5708_s20 = smov 4   ;;  %s5709_s23 = smov 20   ;;  %vm1492_vm6 = vcmask 359424   ;;  %vm1590_vm7 = vcmask 392192  }
  0x9c   :  { %494 = vmatpush1.bf16.msra.mxu0 %v4637_v42  ;;  %v277_v41 = vld [vmem:[#allocation4 + $0x68] sm:$0xff]  ;;  %s5710_s4 = smov 28   ;;  %s5714_s25 = smov 44   ;;  %vm1680_vm8 = vcmask 1041408   ;;  %vm5716_vm9 = vmmov 0  }
  0x9d   :  { %658 = vmatprep.subr.bf16.mxu0 %v5892_v43  ;;  %v4636_v42 = vcombine.high %v273_v38, %v277_v41  ;;  %450 = vmatprep.subr.bf16.mxu1 %v4628_v40 }
  0x9e   :  { %4641 = vmatmul.mubr.msk.bf16.vlgmr.msra.gmra.mrb[0].mxu1 %vm405_vm0, %v5871_v10 }
  0x9f   :  { %482 = vmatprep.mubr.bf16.mxu1 %v5699_v0  ;;  %4643 = vmatmul.mubr.msk.bf16.vlgmr.msra.gmra.mrb[0].mxu0 %vm405_vm0, %v5871_v10 }
  0xa0   :  { %659 = vmatpush1.bf16.msra.mxu0 %v5894_v44  ;;  %690 = vmatprep.mubr.bf16.mxu0 %v5699_v0 }
  0xa1   :  { %660 = vmatprep.subr.bf16.mxu0 %v5897_v45  ;;  %451 = vmatpush1.bf16.msra.mxu1 %v4627_v39 }
  0xa2   :  { %452 = vmatprep.subr.bf16.mxu1 %v4636_v42 }
  0xa4   :  { %661 = vmatpush1.bf16.msra.mxu0 %v5903_v47 }
  0xa5   :  { %662 = vmatprep.subr.bf16.mxu0 %v5907_v48 }
  0xa8   :  { %663 = vmatpush1.bf16.msra.mxu0 %v5910_v49 }
  0xa9   :  { %664 = vmatprep.subr.bf16.mxu0 %v5913_v50 }
  0xac   :  { %665 = vmatpush1.bf16.msra.mxu0 %v5916_v51 }
  0xad   :  { %870 = vmatprep.subr.bf16.mxu0 %v5892_v43 }
 0x171   :  { %v443_v18 = vpop.f32.mrb[0].mxu1 }
 0x172   :  { %v444_v19 = vadd.f32 %v443_v18, %v288_v17  ;;  %v5885_v20 = vpop.f32.mrb[1].mxu1  ;;  %v5922_v54 = vpop.f32.mrb[0].mxu0 }
 0x173   :  { %v447_v21 = vpop.f32.mrb[2].mxu1  ;;  %v5924_v55 = vpop.f32.mrb[1].mxu0  ;;  %v446_v63 = vadd.f32 %v5885_v20, %v292_v61 }
 0x174   :  { %v583_v22 = vpack.c.bf16 %v444_v19, %v444_v19  ;;  %v448_v23 = vpop.f32.mrb[3].mxu1  ;;  %v529_v56 = vpop.f32.mrb[2].mxu0 }
 0x175   :  { %v530_v57 = vpop.f32.mrb[3].mxu0  ;;  %v275_v56 = vld [vmem:[#allocation4 + $0x58] sm:$0xff] }
 0x176   :  { %5359 = vtanh.bf16 %v583_v22  ;;  %v4645_v25 = vmul.bf16 3216621497, %v583_v22  ;;  %v279_v57 = vld [vmem:[#allocation4 + $0x78] sm:$0xff] }
 0x177   :  { %v4640_v61 = vcombine.high %v275_v56, %v279_v57 }
 0x178   :  { %5361 = vpow.bf16 %v4645_v25 }
 0x181   :  { %v5360_v24 = vpop.eup %5359 }
 0x182   :  { %594 = vrot.lane.b32.xlu0 %v5360_v24, %s5683_s16 }
 0x183   :  { %v5362_v26 = vpop.eup %5361 }
 0x184   :  { %v588_v27 = vadd.bf16 1065369472, %v5362_v26 }
 0x186   :  { %5363 = vrcp.bf16 %v588_v27 }
 0x191   :  { %v5364_v28 = vpop.eup %5363 }
 0x192   :  { %v590_v29 = vmul.bf16 1065369472, %v5364_v28 }
 0x194   :  { %v592_v32 = vmul.bf16 0, %v590_v29 }
 0x1f4   :  { %v595_v30 = vpop.permute.xlu0 %594 }
 0x1f5   :  { %v597_v31 = vmul.bf16 %v595_v30, %v590_v29 }
 0x1f7   :  { %599 = vrot.lane.b32.xlu0 %v597_v31, %s5683_s16 }
 0x269   :  { %v600_v33 = vpop.permute.xlu0 %599 }
 0x26a   :  { %v5889_v34 = vadd.bf16 %v600_v33, %v592_v32 }
 0x26c   :  { %5365 = vtanh.bf16 %v5889_v34 }
 0x277   :  { %v5366_v46 = vpop.eup %5365 }
 0x278   :  { %605 = vrot.lane.b32.xlu1 %v5366_v46, %s5683_s16  ;;  %v267_v46 = vld [vmem:[#allocation4 + $0x18] sm:$0xff] }
 0x2ea   :  { %v606_v52 = vpop.permute.xlu1 %605 }
 0x2eb   :  { %v608_v53 = vmul.bf16 %v606_v52, %v590_v29  ;;  %v271_v52 = vld [vmem:[#allocation4 + $0x38] sm:$0xff] }
 0x2ed   :  { %610 = vrot.lane.b32.xlu1 %v608_v53, %s5694_s11  ;;  %v4632_v53 = vcombine.high %v267_v46, %v271_v52 }
 0x35f   :  { %v611_v58 = vpop.permute.xlu1 %610 }
 0x360   :  { %v614_v59 = vsel %vm405_vm0, %v611_v58, 0  ;;  %v4631_v58 = vcombine.low %v267_v46, %v271_v52 }
 0x361   :  { %4654 = vmatmul.mubr.msk.bf16.vlgmr.msra.gmra.mrb[4].mxu0 %vm655_vm1, %v614_v59 }
 0x362   :  { %871 = vmatpush1.bf16.msra.mxu0 %v5894_v44  ;;  %902 = vmatprep.mubr.bf16.mxu0 %v5699_v0 }
 0x363   :  { %872 = vmatprep.subr.bf16.mxu0 %v5897_v45 }
 0x366   :  { %873 = vmatpush1.bf16.msra.mxu0 %v5903_v47 }
 0x367   :  { %874 = vmatprep.subr.bf16.mxu0 %v5907_v48 }
 0x36a   :  { %875 = vmatpush1.bf16.msra.mxu0 %v5910_v49 }
 0x36b   :  { %876 = vmatprep.subr.bf16.mxu0 %v5913_v50 }
 0x36e   :  { %877 = vmatpush1.bf16.msra.mxu0 %v5916_v51 }
 0x36f   :  { %1082 = vmatprep.subr.bf16.mxu0 %v5892_v43 }
 0x434   :  { %v692_v1 = vpop.f32.mrb[4].mxu0 }
 0x435   :  { %v699_v2 = vadd.f32 %v692_v1, %v5942_v62  ;;  %v694_v3 = vpop.f32.mrb[5].mxu0  ;;  %v4639_v1 = vcombine.low %v275_v56, %v279_v57 }
 0x436   :  { %v726_v4 = vadd.f32 %v694_v3, %v446_v63  ;;  %v696_v5 = vpop.f32.mrb[6].mxu0 }
 0x437   :  { %v700_v6 = vpack.c.bf16 %v699_v2, %v699_v2  ;;  %v697_v7 = vpop.f32.mrb[7].mxu0 }
 0x438   :  { %v727_v8 = vpack.c.bf16 %v726_v4, %v726_v4 }
 0x439   :  { %5367 = vtanh.bf16 %v700_v6  ;;  %v4655_v13 = vmul.bf16 3216621497, %v700_v6 }
 0x43a   :  { %5369 = vtanh.bf16 %v727_v8  ;;  %v4656_v14 = vmul.bf16 3216621497, %v727_v8 }
 0x43b   :  { %5371 = vpow.bf16 %v4655_v13 }
 0x43c   :  { %5373 = vpow.bf16 %v4656_v14 }
 0x444   :  { %v5368_v9 = vpop.eup %5367 }
 0x445   :  { %v5370_v11 = vpop.eup %5369  ;;  %711 = vrot.lane.b32.xlu0 %v5368_v9, %s5683_s16 }
 0x446   :  { %738 = vrot.lane.b32.xlu1 %v5370_v11, %s5683_s16  ;;  %v5372_v17 = vpop.eup %5371 }
 0x447   :  { %v5374_v18 = vpop.eup %5373  ;;  %v705_v19 = vadd.bf16 1065369472, %v5372_v17 }
 0x448   :  { %v732_v20 = vadd.bf16 1065369472, %v5374_v18 }
 0x449   :  { %5375 = vrcp.bf16 %v705_v19 }
 0x44a   :  { %5377 = vrcp.bf16 %v732_v20  ;;  %v295_v20 = vsub.s32 2, %v5876_v12 }
 0x454   :  { %v5376_v21 = vpop.eup %5375 }
 0x455   :  { %v5378_v22 = vpop.eup %5377  ;;  %v707_v23 = vmul.bf16 1065369472, %v5376_v21  ;;  %v296_v21 = vrot.slane %v5878_v15, %v295_v20 }
 0x456   :  { %v734_v25 = vmul.bf16 1065369472, %v5378_v22 }
 0x457   :  { %v709_v29 = vmul.bf16 0, %v707_v23 }
 0x458   :  { %v736_v31 = vmul.bf16 %v734_v25, %v5889_v34  ;;  %v4635_v34 = vcombine.low %v273_v38, %v277_v41 }
 0x45a   :  { %453 = vmatpush1.bf16.msra.mxu1 %v4635_v34 }
 0x45b   :  { %532 = vmatprep.subr.bf16.mxu1 %v4632_v53 }
 0x45d   :  { %4642 = vmatmul.mubr.msk.bf16.vlgmr.msra.gmra.mrb[4].mxu1 %vm405_vm0, %v5871_v10 }
 0x45e   :  { %533 = vmatpush1.bf16.msra.mxu1 %v4631_v58  ;;  %564 = vmatprep.mubr.bf16.mxu1 %v5699_v0 }
 0x45f   :  { %534 = vmatprep.subr.bf16.mxu1 %v4640_v61 }
 0x462   :  { %535 = vmatpush1.bf16.msra.mxu1 %v4639_v1 }
 0x463   :  { %764 = vmatprep.subr.bf16.mxu1 %v5892_v43 }
 0x465   :  { %4644 = vmatmul.mubr.msk.bf16.vlgmr.msra.gmra.mrb[8].mxu1 %vm405_vm0, %v5871_v10 }
 0x466   :  { %765 = vmatpush1.bf16.msra.mxu1 %v5894_v44  ;;  %796 = vmatprep.mubr.bf16.mxu1 %v5699_v0 }
 0x467   :  { %766 = vmatprep.subr.bf16.mxu1 %v5897_v45 }
 0x46a   :  { %767 = vmatpush1.bf16.msra.mxu1 %v5903_v47 }
 0x46b   :  { %768 = vmatprep.subr.bf16.mxu1 %v5907_v48 }
 0x46e   :  { %769 = vmatpush1.bf16.msra.mxu1 %v5910_v49 }
 0x46f   :  { %770 = vmatprep.subr.bf16.mxu1 %v5913_v50 }
 0x472   :  { %771 = vmatpush1.bf16.msra.mxu1 %v5916_v51 }
 0x473   :  { %976 = vmatprep.subr.bf16.mxu1 %v5892_v43 }
 0x4b7   :  { %v712_v24 = vpop.permute.xlu0 %711 }
 0x4b8   :  { %v714_v26 = vmul.bf16 %v712_v24, %v707_v23  ;;  %v739_v27 = vpop.permute.xlu1 %738 }
 0x4b9   :  { %v741_v28 = vmul.bf16 %v739_v27, %v734_v25 }
 0x4ba   :  { %716 = vrot.lane.b32.xlu0 %v714_v26, %s5683_s16 }
 0x4bb   :  { %743 = vrot.lane.b32.xlu1 %v741_v28, %s5683_s16 }
 0x52c   :  { %v717_v30 = vpop.permute.xlu0 %716 }
 0x52d   :  { %v5951_v32 = vadd.bf16 %v717_v30, %v709_v29  ;;  %v744_v33 = vpop.permute.xlu1 %743 }
 0x52e   :  { %v5953_v35 = vadd.bf16 %v744_v33, %v736_v31 }
 0x52f   :  { %5379 = vtanh.bf16 %v5951_v32 }
 0x530   :  { %5381 = vtanh.bf16 %v5953_v35  ;;  %v484_v5 = vpop.f32.mrb[4].mxu1 }
 0x531   :  { %v5976_v6 = vpop.f32.mrb[5].mxu1  ;;  %v485_v22 = vadd.f32 %v484_v5, %v296_v21 }
 0x532   :  { %v488_v7 = vpop.f32.mrb[6].mxu1 }
 0x533   :  { %v489_v8 = vpop.f32.mrb[7].mxu1 }
 0x538   :  { %v5978_v9 = vpop.f32.mrb[8].mxu1 }
 0x539   :  { %v5980_v11 = vpop.f32.mrb[9].mxu1 }
 0x53a   :  { %v5380_v59 = vpop.eup %5379  ;;  %v570_v13 = vpop.f32.mrb[10].mxu1 }
 0x53b   :  { %v5382_v63 = vpop.eup %5381  ;;  %722 = vrot.lane.b32.xlu0 %v5380_v59, %s5683_s16  ;;  %v571_v14 = vpop.f32.mrb[11].mxu1 }
 0x53c   :  { %749 = vrot.lane.b32.xlu1 %v5382_v63, %s5683_s16 }
 0x5ad   :  { %v723_v2 = vpop.permute.xlu0 %722 }
 0x5ae   :  { %v725_v10 = vmul.bf16 %v723_v2, %v707_v23  ;;  %v750_v3 = vpop.permute.xlu1 %749 }
 0x5af   :  { %v752_v4 = vmul.bf16 %v750_v3, %v734_v25 }
 0x5b0   :  { %757 = vrot.lane.b32.xlu1 %v725_v10, %s5700_s7 }
 0x5b1   :  { %754 = vrot.lane.b32.xlu0 %v752_v4, %s5694_s11 }
 0x622   :  { %v758_v17 = vpop.permute.xlu1 %757 }
 0x623   :  { %v755_v18 = vpop.permute.xlu0 %754 }
 0x624   :  { %v761_v19 = vsel %vm405_vm0, %v755_v18, %v758_v17  ;;  %v299_v17 = vsub.s32 3, %v5876_v12 }
 0x625   :  { %4657 = vmatmul.mubr.msk.bf16.vlgmr.msra.gmra.mrb[12].mxu1 %vm655_vm1, %v761_v19 }
 0x626   :  { %977 = vmatpush1.bf16.msra.mxu1 %v5894_v44  ;;  %1008 = vmatprep.mubr.bf16.mxu1 %v5699_v0  ;;  %v300_v18 = vrot.slane %v5878_v15, %v299_v17 }
 0x627   :  { %978 = vmatprep.subr.bf16.mxu1 %v5897_v45 }
 0x628   :  { %v487_v19 = vadd.f32 %v5976_v6, %v300_v18 }
 0x62a   :  { %979 = vmatpush1.bf16.msra.mxu1 %v5903_v47 }
 0x62b   :  { %980 = vmatprep.subr.bf16.mxu1 %v5907_v48 }
 0x62e   :  { %981 = vmatpush1.bf16.msra.mxu1 %v5910_v49 }
 0x62f   :  { %982 = vmatprep.subr.bf16.mxu1 %v5913_v50 }
 0x632   :  { %983 = vmatpush1.bf16.msra.mxu1 %v5916_v51 }
 0x633   :  { %1188 = vmatprep.subr.bf16.mxu1 %v5892_v43 }
 0x6f8   :  { %v798_v23 = vpop.f32.mrb[12].mxu1 }
 0x6f9   :  { %v805_v24 = vadd.f32 %v798_v23, %v5942_v62  ;;  %v800_v25 = vpop.f32.mrb[13].mxu1 }
 0x6fa   :  { %v832_v26 = vadd.f32 %v800_v25, %v485_v22  ;;  %v802_v27 = vpop.f32.mrb[14].mxu1 }
 0x6fb   :  { %v806_v28 = vpack.c.bf16 %v805_v24, %v805_v24  ;;  %v803_v29 = vpop.f32.mrb[15].mxu1 }
 0x6fc   :  { %v833_v30 = vpack.c.bf16 %v832_v26, %v832_v26 }
 0x6fd   :  { %5383 = vtanh.bf16 %v806_v28  ;;  %v4658_v36 = vmul.bf16 3216621497, %v806_v28 }
 0x6fe   :  { %5385 = vtanh.bf16 %v833_v30  ;;  %v4659_v37 = vmul.bf16 3216621497, %v833_v30 }
 0x6ff   :  { %5387 = vpow.bf16 %v4658_v36 }
 0x700   :  { %5389 = vpow.bf16 %v4659_v37 }
 0x708   :  { %v5384_v31 = vpop.eup %5383 }
 0x709   :  { %v5386_v33 = vpop.eup %5385  ;;  %817 = vrot.lane.b32.xlu0 %v5384_v31, %s5683_s16 }
 0x70a   :  { %844 = vrot.lane.b32.xlu1 %v5386_v33, %s5683_s16  ;;  %v5388_v38 = vpop.eup %5387 }
 0x70b   :  { %v5390_v39 = vpop.eup %5389  ;;  %v811_v40 = vadd.bf16 1065369472, %v5388_v38 }
 0x70c   :  { %v838_v41 = vadd.bf16 1065369472, %v5390_v39 }
 0x70d   :  { %5391 = vrcp.bf16 %v811_v40 }
 0x70e   :  { %5393 = vrcp.bf16 %v838_v41 }
 0x718   :  { %v5392_v42 = vpop.eup %5391 }
 0x719   :  { %v5394_v46 = vpop.eup %5393  ;;  %v813_v52 = vmul.bf16 1065369472, %v5392_v42 }
 0x71a   :  { %v840_v53 = vmul.bf16 1065369472, %v5394_v46 }
 0x71b   :  { %v815_v59 = vmul.bf16 %v813_v52, %v5951_v32 }
 0x71c   :  { %v842_v63 = vmul.bf16 %v840_v53, %v5953_v35 }
 0x77b   :  { %v818_v34 = vpop.permute.xlu0 %817 }
 0x77c   :  { %v820_v56 = vmul.bf16 %v818_v34, %v813_v52  ;;  %v845_v57 = vpop.permute.xlu1 %844 }
 0x77d   :  { %v847_v58 = vmul.bf16 %v845_v57, %v840_v53 }
 0x77e   :  { %822 = vrot.lane.b32.xlu0 %v820_v56, %s5683_s16 }
 0x77f   :  { %849 = vrot.lane.b32.xlu1 %v847_v58, %s5683_s16 }
 0x7f0   :  { %v823_v61 = vpop.permute.xlu0 %822 }
 0x7f1   :  { %v6004_v1 = vadd.bf16 %v823_v61, %v815_v59  ;;  %v850_v2 = vpop.permute.xlu1 %849 }
 0x7f2   :  { %v6006_v10 = vadd.bf16 %v850_v2, %v842_v63 }
 0x7f3   :  { %5395 = vtanh.bf16 %v6004_v1 }
 0x7f4   :  { %5397 = vtanh.bf16 %v6006_v10 }
 0x7fe   :  { %v5396_v3 = vpop.eup %5395 }
 0x7ff   :  { %v5398_v4 = vpop.eup %5397  ;;  %828 = vrot.lane.b32.xlu0 %v5396_v3, %s5683_s16 }
 0x800   :  { %855 = vrot.lane.b32.xlu1 %v5398_v4, %s5683_s16 }
 0x871   :  { %v829_v5 = vpop.permute.xlu0 %828 }
 0x872   :  { %v831_v32 = vmul.bf16 %v829_v5, %v813_v52  ;;  %v856_v7 = vpop.permute.xlu1 %855 }
 0x873   :  { %v858_v8 = vmul.bf16 %v856_v7, %v840_v53 }
 0x874   :  { %863 = vrot.lane.b32.xlu1 %v831_v32, %s5700_s7 }
 0x875   :  { %860 = vrot.lane.b32.xlu0 %v858_v8, %s5694_s11 }
 0x8e6   :  { %v864_v35 = vpop.permute.xlu1 %863 }
 0x8e7   :  { %v861_v13 = vpop.permute.xlu0 %860 }
 0x8e8   :  { %v867_v14 = vsel %vm405_vm0, %v861_v13, %v864_v35  ;;  %v303_v35 = vsub.s32 4, %v5876_v12 }
 0x8e9   :  { %4660 = vmatmul.mubr.msk.bf16.vlgmr.msra.gmra.mrb[8].mxu0 %vm655_vm1, %v867_v14 }
 0x8ea   :  { %1083 = vmatpush1.bf16.msra.mxu0 %v5894_v44  ;;  %1114 = vmatprep.mubr.bf16.mxu0 %v5699_v0  ;;  %v304_v13 = vrot.slane %v5878_v15, %v303_v35 }
 0x8eb   :  { %1084 = vmatprep.subr.bf16.mxu0 %v5897_v45 }
 0x8ec   :  { %v526_v14 = vadd.f32 %v5922_v54, %v304_v13 }
 0x8ee   :  { %1085 = vmatpush1.bf16.msra.mxu0 %v5903_v47 }
 0x8ef   :  { %1086 = vmatprep.subr.bf16.mxu0 %v5907_v48 }
 0x8f2   :  { %1087 = vmatpush1.bf16.msra.mxu0 %v5910_v49 }
 0x8f3   :  { %1088 = vmatprep.subr.bf16.mxu0 %v5913_v50 }
 0x8f6   :  { %1089 = vmatpush1.bf16.msra.mxu0 %v5916_v51 }
 0x8f7   :  { %1294 = vmatprep.subr.bf16.mxu0 %v5892_v43 }
 0x9bc   :  { %v904_v21 = vpop.f32.mrb[8].mxu0 }
 0x9bd   :  { %v911_v22 = vadd.f32 %v904_v21, %v5942_v62  ;;  %v906_v23 = vpop.f32.mrb[9].mxu0 }
 0x9be   :  { %v938_v24 = vadd.f32 %v906_v23, %v487_v19  ;;  %v908_v25 = vpop.f32.mrb[10].mxu0 }
 0x9bf   :  { %v912_v26 = vpack.c.bf16 %v911_v22, %v911_v22  ;;  %v909_v27 = vpop.f32.mrb[11].mxu0 }
 0x9c0   :  { %v939_v28 = vpack.c.bf16 %v938_v24, %v938_v24 }
 0x9c1   :  { %5399 = vtanh.bf16 %v912_v26  ;;  %v4661_v31 = vmul.bf16 3216621497, %v912_v26 }
 0x9c2   :  { %5401 = vtanh.bf16 %v939_v28  ;;  %v4662_v33 = vmul.bf16 3216621497, %v939_v28 }
 0x9c3   :  { %5403 = vpow.bf16 %v4661_v31 }
 0x9c4   :  { %5405 = vpow.bf16 %v4662_v33 }
 0x9cc   :  { %v5400_v29 = vpop.eup %5399 }
 0x9cd   :  { %v5402_v30 = vpop.eup %5401  ;;  %923 = vrot.lane.b32.xlu0 %v5400_v29, %s5683_s16 }
 0x9ce   :  { %950 = vrot.lane.b32.xlu1 %v5402_v30, %s5683_s16  ;;  %v5404_v6 = vpop.eup %5403 }
 0x9cf   :  { %v5406_v36 = vpop.eup %5405  ;;  %v917_v37 = vadd.bf16 1065369472, %v5404_v6 }
 0x9d0   :  { %v944_v38 = vadd.bf16 1065369472, %v5406_v36 }
 0x9d1   :  { %5407 = vrcp.bf16 %v917_v37 }
 0x9d2   :  { %5409 = vrcp.bf16 %v944_v38 }
 0x9dc   :  { %v5408_v39 = vpop.eup %5407 }
 0x9dd   :  { %v5410_v40 = vpop.eup %5409  ;;  %v919_v41 = vmul.bf16 1065369472, %v5408_v39 }
 0x9de   :  { %v946_v46 = vmul.bf16 1065369472, %v5410_v40 }
 0x9df   :  { %v921_v56 = vmul.bf16 %v919_v41, %v6004_v1 }
 0x9e0   :  { %v948_v58 = vmul.bf16 %v946_v46, %v6006_v10 }
 0xa3f   :  { %v924_v42 = vpop.permute.xlu0 %923 }
 0xa40   :  { %v926_v52 = vmul.bf16 %v924_v42, %v919_v41  ;;  %v951_v34 = vpop.permute.xlu1 %950 }
 0xa41   :  { %v953_v53 = vmul.bf16 %v951_v34, %v946_v46 }
 0xa42   :  { %928 = vrot.lane.b32.xlu0 %v926_v52, %s5683_s16 }
 0xa43   :  { %955 = vrot.lane.b32.xlu1 %v953_v53, %s5683_s16 }
 0xab4   :  { %v929_v57 = vpop.permute.xlu0 %928 }
 0xab5   :  { %v6037_v59 = vadd.bf16 %v929_v57, %v921_v56  ;;  %v956_v61 = vpop.permute.xlu1 %955 }
 0xab6   :  { %v6039_v63 = vadd.bf16 %v956_v61, %v948_v58 }
 0xab7   :  { %5411 = vtanh.bf16 %v6037_v59 }
 0xab8   :  { %5413 = vtanh.bf16 %v6039_v63 }
 0xac2   :  { %v5412_v2 = vpop.eup %5411 }
 0xac3   :  { %v5414_v3 = vpop.eup %5413  ;;  %934 = vrot.lane.b32.xlu0 %v5412_v2, %s5683_s16 }
 0xac4   :  { %961 = vrot.lane.b32.xlu1 %v5414_v3, %s5683_s16 }
 0xb35   :  { %v935_v4 = vpop.permute.xlu0 %934 }
 0xb36   :  { %v937_v1 = vmul.bf16 %v935_v4, %v919_v41  ;;  %v962_v5 = vpop.permute.xlu1 %961 }
 0xb37   :  { %v964_v32 = vmul.bf16 %v962_v5, %v946_v46 }
 0xb38   :  { %969 = vrot.lane.b32.xlu1 %v937_v1, %s5700_s7 }
 0xb39   :  { %966 = vrot.lane.b32.xlu0 %v964_v32, %s5694_s11  ;;  %v307_v32 = vsub.s32 5, %v5876_v12 }
 0xbaa   :  { %v970_v10 = vpop.permute.xlu1 %969 }
 0xbab   :  { %v967_v7 = vpop.permute.xlu0 %966 }
 0xbac   :  { %v973_v8 = vsel %vm405_vm0, %v967_v7, %v970_v10  ;;  %v308_v10 = vrot.slane %v5878_v15, %v307_v32 }
 0xbad   :  { %4663 = vmatmul.mubr.msk.bf16.vlgmr.msra.gmra.mrb[16].mxu1 %vm655_vm1, %v973_v8 }
 0xbae   :  { %1189 = vmatpush1.bf16.msra.mxu1 %v5894_v44  ;;  %1220 = vmatprep.mubr.bf16.mxu1 %v5699_v0  ;;  %v528_v7 = vadd.f32 %v5924_v55, %v308_v10 }
 0xbaf   :  { %1190 = vmatprep.subr.bf16.mxu1 %v5897_v45 }
 0xbb2   :  { %1191 = vmatpush1.bf16.msra.mxu1 %v5903_v47 }
 0xbb3   :  { %1192 = vmatprep.subr.bf16.mxu1 %v5907_v48 }
 0xbb6   :  { %1193 = vmatpush1.bf16.msra.mxu1 %v5910_v49 }
 0xbb7   :  { %1194 = vmatprep.subr.bf16.mxu1 %v5913_v50 }
 0xbba   :  { %1195 = vmatpush1.bf16.msra.mxu1 %v5916_v51 }
 0xbbb   :  { %1400 = vmatprep.subr.bf16.mxu1 %v5892_v43 }
 0xc80   :  { %v1010_v18 = vpop.f32.mrb[16].mxu1 }
 0xc81   :  { %v1017_v19 = vadd.f32 %v1010_v18, %v5942_v62  ;;  %v1012_v21 = vpop.f32.mrb[17].mxu1 }
 0xc82   :  { %v1044_v22 = vadd.f32 %v1012_v21, %v526_v14  ;;  %v1014_v23 = vpop.f32.mrb[18].mxu1 }
 0xc83   :  { %v1018_v24 = vpack.c.bf16 %v1017_v19, %v1017_v19  ;;  %v1015_v25 = vpop.f32.mrb[19].mxu1 }
 0xc84   :  { %v1045_v26 = vpack.c.bf16 %v1044_v22, %v1044_v22 }
 0xc85   :  { %5415 = vtanh.bf16 %v1018_v24  ;;  %v4664_v43 = vmul.bf16 3216621497, %v1018_v24 }
 0xc86   :  { %5417 = vtanh.bf16 %v1045_v26  ;;  %v4665_v29 = vmul.bf16 3216621497, %v1045_v26 }
 0xc87   :  { %5419 = vpow.bf16 %v4664_v43 }
 0xc88   :  { %5421 = vpow.bf16 %v4665_v29 }
 0xc90   :  { %v5416_v27 = vpop.eup %5415 }
 0xc91   :  { %v5418_v28 = vpop.eup %5417  ;;  %1029 = vrot.lane.b32.xlu0 %v5416_v27, %s5683_s16 }
 0xc92   :  { %1056 = vrot.lane.b32.xlu1 %v5418_v28, %s5683_s16  ;;  %v5420_v54 = vpop.eup %5419 }
 0xc93   :  { %v5422_v30 = vpop.eup %5421  ;;  %v1023_v31 = vadd.bf16 1065369472, %v5420_v54 }
 0xc94   :  { %v1050_v33 = vadd.bf16 1065369472, %v5422_v30 }
 0xc95   :  { %5423 = vrcp.bf16 %v1023_v31 }
 0xc96   :  { %5425 = vrcp.bf16 %v1050_v33 }
 0xca0   :  { %v5424_v6 = vpop.eup %5423 }
 0xca1   :  { %v5426_v36 = vpop.eup %5425  ;;  %v1025_v37 = vmul.bf16 1065369472, %v5424_v6 }
 0xca2   :  { %v1052_v39 = vmul.bf16 1065369472, %v5426_v36 }
 0xca3   :  { %v1027_v46 = vmul.bf16 %v1025_v37, %v6037_v59 }
 0xca4   :  { %v1054_v34 = vmul.bf16 %v1052_v39, %v6039_v63 }
 0xd03   :  { %v1030_v38 = vpop.permute.xlu0 %1029 }
 0xd04   :  { %v1032_v40 = vmul.bf16 %v1030_v38, %v1025_v37  ;;  %v1057_v41 = vpop.permute.xlu1 %1056 }
 0xd05   :  { %v1059_v42 = vmul.bf16 %v1057_v41, %v1052_v39 }
 0xd06   :  { %1034 = vrot.lane.b32.xlu0 %v1032_v40, %s5683_s16 }
 0xd07   :  { %1061 = vrot.lane.b32.xlu1 %v1059_v42, %s5683_s16 }
 0xd78   :  { %v1035_v52 = vpop.permute.xlu0 %1034 }
 0xd79   :  { %v6068_v53 = vadd.bf16 %v1035_v52, %v1027_v46  ;;  %v1062_v56 = vpop.permute.xlu1 %1061 }
 0xd7a   :  { %v6070_v57 = vadd.bf16 %v1062_v56, %v1054_v34 }
 0xd7b   :  { %5427 = vtanh.bf16 %v6068_v53 }
 0xd7c   :  { %5429 = vtanh.bf16 %v6070_v57 }
 0xd86   :  { %v5428_v58 = vpop.eup %5427 }
 0xd87   :  { %v5430_v61 = vpop.eup %5429  ;;  %1040 = vrot.lane.b32.xlu0 %v5428_v58, %s5683_s16 }
 0xd88   :  { %1067 = vrot.lane.b32.xlu1 %v5430_v61, %s5683_s16 }
 0xdf9   :  { %v1041_v2 = vpop.permute.xlu0 %1040 }
 0xdfa   :  { %v1043_v59 = vmul.bf16 %v1041_v2, %v1025_v37  ;;  %v1068_v3 = vpop.permute.xlu1 %1067 }
 0xdfb   :  { %v1070_v4 = vmul.bf16 %v1068_v3, %v1052_v39  ;;  %v311_v3 = vsub.s32 6, %v5876_v12 }
 0xdfc   :  { %1075 = vrot.lane.b32.xlu1 %v1043_v59, %s5700_s7 }
 0xdfd   :  { %1072 = vrot.lane.b32.xlu0 %v1070_v4, %s5694_s11  ;;  %v312_v4 = vrot.slane %v5878_v15, %v311_v3 }
 0xe6e   :  { %v1076_v63 = vpop.permute.xlu1 %1075 }
 0xe6f   :  { %v1073_v1 = vpop.permute.xlu0 %1072 }
 0xe70   :  { %v1079_v5 = vsel %vm405_vm0, %v1073_v1, %v1076_v63 }
 0xe71   :  { %4666 = vmatmul.mubr.msk.bf16.vlgmr.msra.gmra.mrb[12].mxu0 %vm655_vm1, %v1079_v5 }
 0xe72   :  { %1295 = vmatpush1.bf16.msra.mxu0 %v5894_v44  ;;  %1326 = vmatprep.mubr.bf16.mxu0 %v5699_v0 }
 0xe73   :  { %1296 = vmatprep.subr.bf16.mxu0 %v5897_v45 }
 0xe76   :  { %1297 = vmatpush1.bf16.msra.mxu0 %v5903_v47 }
 0xe77   :  { %1298 = vmatprep.subr.bf16.mxu0 %v5907_v48 }
 0xe7a   :  { %1299 = vmatpush1.bf16.msra.mxu0 %v5910_v49 }
 0xe7b   :  { %1300 = vmatprep.subr.bf16.mxu0 %v5913_v50 }
 0xe7e   :  { %1301 = vmatpush1.bf16.msra.mxu0 %v5916_v51 }
 0xf44   :  { %v1116_v8 = vpop.f32.mrb[12].mxu0 }
 0xf45   :  { %v1123_v35 = vadd.f32 %v1116_v8, %v5942_v62  ;;  %v1118_v13 = vpop.f32.mrb[13].mxu0 }
 0xf46   :  { %v1150_v14 = vadd.f32 %v1118_v13, %v528_v7  ;;  %v1120_v18 = vpop.f32.mrb[14].mxu0 }
 0xf47   :  { %v1124_v19 = vpack.c.bf16 %v1123_v35, %v1123_v35  ;;  %v1121_v21 = vpop.f32.mrb[15].mxu0 }
 0xf48   :  { %v1151_v22 = vpack.c.bf16 %v1150_v14, %v1150_v14 }
 0xf49   :  { %5431 = vtanh.bf16 %v1124_v19  ;;  %v4667_v25 = vmul.bf16 3216621497, %v1124_v19 }
 0xf4a   :  { %5433 = vtanh.bf16 %v1151_v22  ;;  %v4668_v26 = vmul.bf16 3216621497, %v1151_v22 }
 0xf4b   :  { %5435 = vpow.bf16 %v4667_v25 }
 0xf4c   :  { %5437 = vpow.bf16 %v4668_v26 }
 0xf54   :  { %v5432_v23 = vpop.eup %5431 }
 0xf55   :  { %v5434_v24 = vpop.eup %5433  ;;  %1135 = vrot.lane.b32.xlu0 %v5432_v23, %s5683_s16 }
 0xf56   :  { %1162 = vrot.lane.b32.xlu1 %v5434_v24, %s5683_s16  ;;  %v5436_v55 = vpop.eup %5435 }
 0xf57   :  { %v5438_v27 = vpop.eup %5437  ;;  %v1129_v28 = vadd.bf16 1065369472, %v5436_v55 }
 0xf58   :  { %v1156_v43 = vadd.bf16 1065369472, %v5438_v27 }
 0xf59   :  { %5439 = vrcp.bf16 %v1129_v28 }
 0xf5a   :  { %5441 = vrcp.bf16 %v1156_v43 }
 0xf64   :  { %v5440_v29 = vpop.eup %5439 }
 0xf65   :  { %v5442_v54 = vpop.eup %5441  ;;  %v1131_v30 = vmul.bf16 1065369472, %v5440_v29 }
 0xf66   :  { %v1158_v33 = vmul.bf16 1065369472, %v5442_v54 }
 0xf67   :  { %v1133_v38 = vmul.bf16 %v1131_v30, %v6068_v53 }
 0xf68   :  { %v1160_v40 = vmul.bf16 %v1158_v33, %v6070_v57 }
 0xfc7   :  { %v1136_v31 = vpop.permute.xlu0 %1135 }
 0xfc8   :  { %v1138_v6 = vmul.bf16 %v1136_v31, %v1131_v30  ;;  %v1163_v36 = vpop.permute.xlu1 %1162 }
 0xfc9   :  { %v1165_v37 = vmul.bf16 %v1163_v36, %v1158_v33 }
 0xfca   :  { %1140 = vrot.lane.b32.xlu0 %v1138_v6, %s5683_s16 }
 0xfcb   :  { %1167 = vrot.lane.b32.xlu1 %v1165_v37, %s5683_s16 }
0x103c   :  { %v1141_v39 = vpop.permute.xlu0 %1140 }
0x103d   :  { %v6098_v41 = vadd.bf16 %v1141_v39, %v1133_v38  ;;  %v1168_v42 = vpop.permute.xlu1 %1167 }
0x103e   :  { %v6100_v46 = vadd.bf16 %v1168_v42, %v1160_v40  ;;  %v315_v40 = vsub.s32 7, %v5876_v12 }
0x103f   :  { %5443 = vtanh.bf16 %v6098_v41 }
0x1040   :  { %5445 = vtanh.bf16 %v6100_v46 }
0x104a   :  { %v5444_v52 = vpop.eup %5443 }
0x104b   :  { %v5446_v34 = vpop.eup %5445  ;;  %1146 = vrot.lane.b32.xlu0 %v5444_v52, %s5683_s16 }
0x104c   :  { %1173 = vrot.lane.b32.xlu1 %v5446_v34, %s5683_s16 }
0x10bd   :  { %v1147_v56 = vpop.permute.xlu0 %1146 }
0x10be   :  { %v1149_v53 = vmul.bf16 %v1147_v56, %v1131_v30  ;;  %v1174_v58 = vpop.permute.xlu1 %1173 }
0x10bf   :  { %v1176_v61 = vmul.bf16 %v1174_v58, %v1158_v33 }
0x10c0   :  { %1181 = vrot.lane.b32.xlu1 %v1149_v53, %s5700_s7 }
0x10c1   :  { %1178 = vrot.lane.b32.xlu0 %v1176_v61, %s5694_s11 }
0x1132   :  { %v1182_v57 = vpop.permute.xlu1 %1181 }
0x1133   :  { %v1179_v2 = vpop.permute.xlu0 %1178 }
0x1134   :  { %v1185_v59 = vsel %vm405_vm0, %v1179_v2, %v1182_v57 }
0x1135   :  { %4669 = vmatmul.mubr.msk.bf16.vlgmr.msra.gmra.mrb[20].mxu1 %vm655_vm1, %v1185_v59 }
0x1136   :  { %1401 = vmatpush1.bf16.msra.mxu1 %v5894_v44  ;;  %1432 = vmatprep.mubr.bf16.mxu1 %v5699_v0  ;;  %v567_v44 = vadd.f32 %v5978_v9, %v312_v4 }
0x1137   :  { %1402 = vmatprep.subr.bf16.mxu1 %v5897_v45 }
0x113a   :  { %1403 = vmatpush1.bf16.msra.mxu1 %v5903_v47 }
0x113b   :  { %1404 = vmatprep.subr.bf16.mxu1 %v5907_v48 }
0x113e   :  { %1405 = vmatpush1.bf16.msra.mxu1 %v5910_v49 }
0x113f   :  { %1406 = vmatprep.subr.bf16.mxu1 %v5913_v50 }
0x1142   :  { %1407 = vmatpush1.bf16.msra.mxu1 %v5916_v51 }
0x1208   :  { %v1222_v63 = vpop.f32.mrb[20].mxu1 }
0x1209   :  { %v1229_v1 = vadd.f32 %v1222_v63, %v5942_v62  ;;  %v1224_v45 = vpop.f32.mrb[21].mxu1 }
0x120a   :  { %v1256_v5 = vadd.f32 %v1224_v45, %v567_v44  ;;  %v1226_v47 = vpop.f32.mrb[22].mxu1 }
0x120b   :  { %v1230_v32 = vpack.c.bf16 %v1229_v1, %v1229_v1  ;;  %v1227_v48 = vpop.f32.mrb[23].mxu1 }
0x120c   :  { %v1257_v10 = vpack.c.bf16 %v1256_v5, %v1256_v5 }
0x120d   :  { %5447 = vtanh.bf16 %v1230_v32  ;;  %v4670_v51 = vmul.bf16 3216621497, %v1230_v32 }
0x120e   :  { %5449 = vtanh.bf16 %v1257_v10  ;;  %v4671_v7 = vmul.bf16 3216621497, %v1257_v10 }
0x120f   :  { %5451 = vpow.bf16 %v4670_v51 }
0x1210   :  { %5453 = vpow.bf16 %v4671_v7 }
0x1218   :  { %v5448_v49 = vpop.eup %5447 }
0x1219   :  { %v5450_v50 = vpop.eup %5449  ;;  %1241 = vrot.lane.b32.xlu0 %v5448_v49, %s5683_s16 }
0x121a   :  { %1268 = vrot.lane.b32.xlu1 %v5450_v50, %s5683_s16  ;;  %v5452_v9 = vpop.eup %5451 }
0x121b   :  { %v5454_v8 = vpop.eup %5453  ;;  %v1235_v35 = vadd.bf16 1065369472, %v5452_v9 }
0x121c   :  { %v1262_v13 = vadd.bf16 1065369472, %v5454_v8 }
0x121d   :  { %5455 = vrcp.bf16 %v1235_v35 }
0x121e   :  { %5457 = vrcp.bf16 %v1262_v13 }
0x1228   :  { %v5456_v14 = vpop.eup %5455 }
0x1229   :  { %v5458_v18 = vpop.eup %5457  ;;  %v1237_v19 = vmul.bf16 1065369472, %v5456_v14 }
0x122a   :  { %v1264_v22 = vmul.bf16 1065369472, %v5458_v18 }
0x122b   :  { %v1239_v26 = vmul.bf16 %v1237_v19, %v6098_v41  ;;  %v316_v41 = vrot.slane %v5878_v15, %v315_v40 }
0x122c   :  { %v1266_v27 = vmul.bf16 %v1264_v22, %v6100_v46 }
0x122d   :  { %v569_v42 = vadd.f32 %v5980_v11, %v316_v41 }
0x128b   :  { %v1242_v21 = vpop.permute.xlu0 %1241 }
0x128c   :  { %v1244_v23 = vmul.bf16 %v1242_v21, %v1237_v19  ;;  %v1269_v24 = vpop.permute.xlu1 %1268 }
0x128d   :  { %v1271_v25 = vmul.bf16 %v1269_v24, %v1264_v22 }
0x128e   :  { %1246 = vrot.lane.b32.xlu0 %v1244_v23, %s5683_s16 }
0x128f   :  { %1273 = vrot.lane.b32.xlu1 %v1271_v25, %s5683_s16 }
0x1300   :  { %v1247_v55 = vpop.permute.xlu0 %1246 }
0x1301   :  { %v1249_v28 = vadd.bf16 %v1247_v55, %v1239_v26  ;;  %v1274_v43 = vpop.permute.xlu1 %1273 }
0x1302   :  { %v1276_v29 = vadd.bf16 %v1274_v43, %v1266_v27 }
0x1303   :  { %5459 = vtanh.bf16 %v1249_v28 }
0x1304   :  { %5461 = vtanh.bf16 %v1276_v29 }
0x130e   :  { %v5460_v54 = vpop.eup %5459 }
0x130f   :  { %v5462_v30 = vpop.eup %5461  ;;  %1252 = vrot.lane.b32.xlu0 %v5460_v54, %s5683_s16 }
0x1310   :  { %1279 = vrot.lane.b32.xlu1 %v5462_v30, %s5683_s16 }
0x1381   :  { %v1253_v31 = vpop.permute.xlu0 %1252 }
0x1382   :  { %v1255_v33 = vmul.bf16 %v1253_v31, %v1237_v19  ;;  %v1280_v6 = vpop.permute.xlu1 %1279 }
0x1383   :  { %v1282_v36 = vmul.bf16 %v1280_v6, %v1264_v22  ;;  %v6150_v22 = vld [vmem:[#allocation2] sm:$0x3] }
0x1384   :  { %1287 = vrot.lane.b32.xlu1 %v1255_v33, %s5700_s7 }
0x1385   :  { %1284 = vrot.lane.b32.xlu0 %v1282_v36, %s5694_s11 }
0x13f6   :  { %v1288_v37 = vpop.permute.xlu1 %1287 }
0x13f7   :  { %v1285_v38 = vpop.permute.xlu0 %1284 }
0x13f8   :  { %v1291_v39 = vsel %vm405_vm0, %v1285_v38, %v1288_v37 }
0x13f9   :  { %4672 = vmatmul.mubr.msk.bf16.vlgmr.msra.gmra.mrb[16].mxu0 %vm655_vm1, %v1291_v39 }
0x13fa   :  { %1626 = vmatprep.mubr.bf16.mxu0 %v5699_v0 }
0x14cc   :  { %v1328_v46 = vpop.f32.mrb[16].mxu0 }
0x14cd   :  { %v1335_v52 = vadd.f32 %v1328_v46, %v5942_v62  ;;  %v1330_v34 = vpop.f32.mrb[17].mxu0 }
0x14ce   :  { %v1362_v56 = vadd.f32 %v1330_v34, %v569_v42  ;;  %v1332_v53 = vpop.f32.mrb[18].mxu0 }
0x14cf   :  { %v1336_v58 = vpack.c.bf16 %v1335_v52, %v1335_v52  ;;  %v1333_v61 = vpop.f32.mrb[19].mxu0 }
0x14d0   :  { %v1363_v57 = vpack.c.bf16 %v1362_v56, %v1362_v56 }
0x14d1   :  { %5463 = vtanh.bf16 %v1336_v58  ;;  %v4673_v15 = vmul.bf16 3216621497, %v1336_v58 }
0x14d2   :  { %5465 = vtanh.bf16 %v1363_v57  ;;  %v4674_v3 = vmul.bf16 3216621497, %v1363_v57 }
0x14d3   :  { %5467 = vpow.bf16 %v4673_v15 }
0x14d4   :  { %5469 = vpow.bf16 %v4674_v3 }
0x14dc   :  { %v5464_v2 = vpop.eup %5463 }
0x14dd   :  { %v5466_v59 = vpop.eup %5465  ;;  %1347 = vrot.lane.b32.xlu0 %v5464_v2, %s5683_s16 }
0x14de   :  { %1374 = vrot.lane.b32.xlu1 %v5466_v59, %s5683_s16  ;;  %v5468_v11 = vpop.eup %5467 }
0x14df   :  { %v5470_v62 = vpop.eup %5469  ;;  %v1341_v4 = vadd.bf16 1065369472, %v5468_v11 }
0x14e0   :  { %v1368_v44 = vadd.bf16 1065369472, %v5470_v62 }
0x14e1   :  { %5471 = vrcp.bf16 %v1341_v4 }
0x14e2   :  { %5473 = vrcp.bf16 %v1368_v44 }
0x14ec   :  { %v5472_v63 = vpop.eup %5471 }
0x14ed   :  { %v5474_v1 = vpop.eup %5473  ;;  %v1343_v45 = vmul.bf16 1065369472, %v5472_v63 }
0x14ee   :  { %v1370_v47 = vmul.bf16 1065369472, %v5474_v1 }
0x14ef   :  { %v1345_v49 = vmul.bf16 %v1343_v45, %v1249_v28 }
0x14f0   :  { %v1372_v51 = vmul.bf16 %v1370_v47, %v1276_v29 }
0x154f   :  { %v1348_v5 = vpop.permute.xlu0 %1347 }
0x1550   :  { %v1350_v32 = vmul.bf16 %v1348_v5, %v1343_v45  ;;  %v1375_v48 = vpop.permute.xlu1 %1374  ;;  %v5494_v5 = vld [vmem:[#allocation13 + $0x1] ss:$0 sm:$0xff] }
0x1551   :  { %v1377_v10 = vmul.bf16 %v1375_v48, %v1370_v47 }
0x1552   :  { %1352 = vrot.lane.b32.xlu0 %v1350_v32, %s5683_s16 }
0x1553   :  { %1379 = vrot.lane.b32.xlu1 %v1377_v10, %s5683_s16 }
0x15c4   :  { %v1353_v50 = vpop.permute.xlu0 %1352 }
0x15c5   :  { %v6143_v7 = vadd.bf16 %v1353_v50, %v1345_v49  ;;  %v1380_v9 = vpop.permute.xlu1 %1379 }
0x15c6   :  { %v1382_v8 = vadd.bf16 %v1380_v9, %v1372_v51 }
0x15c7   :  { %5475 = vtanh.bf16 %v6143_v7 }
0x15c8   :  { %5477 = vtanh.bf16 %v1382_v8 }
0x15d2   :  { %v5476_v35 = vpop.eup %5475 }
0x15d3   :  { %v5478_v13 = vpop.eup %5477  ;;  %1358 = vrot.lane.b32.xlu0 %v5476_v35, %s5683_s16 }
0x15d4   :  { %1385 = vrot.lane.b32.xlu1 %v5478_v13, %s5683_s16 }
0x1645   :  { %v1359_v14 = vpop.permute.xlu0 %1358 }
0x1646   :  { %v1361_v18 = vmul.bf16 %v1359_v14, %v1343_v45  ;;  %v1386_v19 = vpop.permute.xlu1 %1385 }
0x1647   :  { %v1388_v21 = vmul.bf16 %v1386_v19, %v1370_v47 }
0x1648   :  { %1393 = vrot.lane.b32.xlu1 %v1361_v18, %s5700_s7 }
0x1649   :  { %1390 = vrot.lane.b32.xlu0 %v1388_v21, %s5694_s11 }
0x164c   :  { %146 = vrot.lane.b32.xlu1 %v6150_v22, %s5701_s2 }
0x164d   :  { %140 = vrot.lane.b32.xlu0 %v6150_v22, %s5702_s18 }
0x1650   :  { %158 = vrot.lane.b32.xlu1 %v6150_v22, %s5703_s19 }
0x1651   :  { %152 = vrot.lane.b32.xlu0 %v6150_v22, %s5704_s21 }
0x1654   :  { %170 = vrot.lane.b32.xlu1 %v6150_v22, %s5705_s22 }
0x1655   :  { %164 = vrot.lane.b32.xlu0 %v6150_v22, %s5706_s3 }
0x1659   :  { %176 = vrot.lane.b32.xlu0 %v6150_v22, %s5707_s0 }
0x16ba   :  { %v1394_v23 = vpop.permute.xlu1 %1393 }
0x16bb   :  { %v1391_v24 = vpop.permute.xlu0 %1390 }
0x16bc   :  { %v1397_v25 = vsel %vm405_vm0, %v1391_v24, %v1394_v23 }
0x16bd   :  { %4675 = vmatmul.mubr.msk.bf16.vlgmr.msra.gmra.mrb[24].mxu1 %vm655_vm1, %v1397_v25 }
0x16be   :  { %v147_v26 = vpop.permute.xlu1 %146  ;;  %1667 = vmatprep.mubr.bf16.mxu1 %v5699_v0 }
0x16bf   :  { %v141_v55 = vpop.permute.xlu0 %140 }
0x16c0   :  { %v143_v27 = vadd.f32 %v6150_v22, %v141_v55  ;;  %v144_v28 = vmax.f32 %v6150_v22, %v141_v55  ;;  %v145_v43 = vmin.f32 %v6150_v22, %v141_v55 }
0x16c2   :  { %v149_v29 = vadd.f32 %v147_v26, %v143_v27  ;;  %v150_v54 = vmax.f32 %v144_v28, %v147_v26  ;;  %v151_v30 = vmin.f32 %v145_v43, %v147_v26  ;;  %v159_v31 = vpop.permute.xlu1 %158 }
0x16c3   :  { %v153_v33 = vpop.permute.xlu0 %152 }
0x16c4   :  { %v155_v6 = vadd.f32 %v153_v33, %v149_v29  ;;  %v156_v36 = vmax.f32 %v150_v54, %v153_v33  ;;  %v157_v37 = vmin.f32 %v151_v30, %v153_v33 }
0x16c6   :  { %v161_v38 = vadd.f32 %v159_v31, %v155_v6  ;;  %v6172_v39 = vmax.f32 %v156_v36, %v159_v31  ;;  %v6174_v40 = vmin.f32 %v157_v37, %v159_v31  ;;  %v6178_v41 = vpop.permute.xlu1 %170 }
0x16c7   :  { %v6176_v0 = vpop.permute.xlu0 %164 }
0x16c8   :  { %v167_v42 = vadd.f32 %v6176_v0, %v161_v38  ;;  %v168_v46 = vmax.f32 %v6172_v39, %v6176_v0  ;;  %v169_v52 = vmin.f32 %v6174_v40, %v6176_v0  ;;  %v5303_v39 = vld [vmem:[#allocation7 + $0x20] ss:$16 sps:$4 sm:$0xff]  }
0x16ca   :  { %v173_v34 = vadd.f32 %v6178_v41, %v167_v42 }
0x16cb   :  { %v6186_v56 = vpop.permute.xlu0 %176 }
0x16cc   :  { %v179_v53 = vadd.f32 %v6186_v56, %v173_v34 }
0x16ce   :  { %v6189_v58 = vmul.f32 0.125, %v179_v53 }
0x16d0   :  { %186 = vrot.lane.b32.xlu0 %v6189_v58, %s5708_s20  ;;  %v183_v43 = vsub.f32 %v6150_v22, %v6189_v58 }
0x16d2   :  { %v184_v31 = vmul.f32 %v183_v43, %v183_v43 }
0x16d4   :  { %206 = vrot.lane.b32.xlu0 %v6189_v58, %s5697_s24  ;;  %s5711_s24 = smov 24  }
0x16d8   :  { %226 = vrot.lane.b32.xlu0 %v6189_v58, %s5709_s23 }
0x16dc   :  { %246 = vrot.lane.b32.xlu0 %v6189_v58, %s5710_s4 }
0x1742   :  { %v187_v61 = vpop.permute.xlu0 %186 }
0x1743   :  { %v189_v57 = vsub.f32 %v6150_v22, %v187_v61 }
0x1745   :  { %v190_v2 = vmul.f32 %v189_v57, %v189_v57 }
0x1746   :  { %v207_v59 = vpop.permute.xlu0 %206 }
0x1747   :  { %192 = vrot.lane.b32.xlu0 %v190_v2, %s5702_s18  ;;  %v209_v15 = vsub.f32 %v6150_v22, %v207_v59 }
0x1749   :  { %v210_v3 = vmul.f32 %v209_v15, %v209_v15 }
0x174a   :  { %v227_v11 = vpop.permute.xlu0 %226 }
0x174b   :  { %v229_v62 = vsub.f32 %v6150_v22, %v227_v11  ;;  %212 = vrot.lane.b32.xlu0 %v210_v3, %s5704_s21 }
0x174d   :  { %v230_v4 = vmul.f32 %v229_v62, %v229_v62 }
0x174e   :  { %v247_v44 = vpop.permute.xlu0 %246 }
0x174f   :  { %v249_v63 = vsub.f32 %v6150_v22, %v247_v44  ;;  %232 = vrot.lane.b32.xlu0 %v230_v4, %s5706_s3  ;;  %v5297_v4 = vld [vmem:[#allocation7] ss:$16 sps:$4 sm:$0xff]   ;;  %v5299_v44 = vld [vmem:[#allocation7 + $0x4] ss:$16 sps:$4 sm:$0xff]  }
0x1750   :  { %1594 = vmatprep.subr.bf16.mxu0 %v5299_v44  ;;  %v1789_v44 = vld [vmem:[#allocation9 + $0x1c0] sm:$0xff] }
0x1751   :  { %v250_v1 = vmul.f32 %v249_v63, %v249_v63  ;;  %v5300_v63 = vld [vmem:[#allocation7 + $0x8] ss:$16 sps:$4 sm:$0xff]   ;;  %1595 = vmatpush1.bf16.msra.mxu0 %v5297_v4  ;;  %v1788_v4 = vld [vmem:[#allocation9 + $0x180] sm:$0xff] }
0x1753   :  { %252 = vrot.lane.b32.xlu0 %v250_v1, %s5707_s0  ;;  %v5302_v1 = vld [vmem:[#allocation7 + $0xc] ss:$16 sps:$4 sm:$0xff]  }
0x1754   :  { %1635 = vmatprep.subr.bf16.mxu1 %v5302_v1  ;;  %v4698_v1 = vcombine.high %v1788_v4, %v1789_v44 }
0x1755   :  { %1636 = vmatpush1.bf16.msra.mxu1 %v5300_v63 }
0x1790   :  { %v1434_v45 = vpop.f32.mrb[24].mxu1 }
0x1791   :  { %v1440_v47 = vadd.f32 %v5494_v5, %v1434_v45  ;;  %v1436_v32 = vpop.f32.mrb[25].mxu1  ;;  %v5305_v45 = vld [vmem:[#allocation7 + $0x24] ss:$16 sps:$4 sm:$0xff]   ;;  %v5308_v5 = vld [vmem:[#allocation7 + $0x2c] ss:$16 sps:$4 sm:$0xff]  }
0x1792   :  { %v1437_v48 = vpop.f32.mrb[26].mxu1  ;;  %1596 = vmatprep.subr.bf16.mxu0 %v5305_v45  ;;  %1637 = vmatprep.subr.bf16.mxu1 %v5308_v5  ;;  %v1790_v45 = vld [vmem:[#allocation9 + $0x200] sm:$0xff] }
0x1793   :  { %v1441_v10 = vpack.c.bf16 %v1440_v47, %v1440_v47  ;;  %v1438_v49 = vpop.f32.mrb[27].mxu1  ;;  %1597 = vmatpush1.bf16.msra.mxu0 %v5303_v39  ;;  %v1791_v5 = vld [vmem:[#allocation9 + $0x240] sm:$0xff]  ;;  %v4697_v39 = vcombine.low %v1788_v4, %v1789_v44 }
0x1794   :  { %v5309_v49 = vld [vmem:[#allocation7 + $0x40] ss:$16 sps:$4 sm:$0xff]  }
0x1795   :  { %5479 = vtanh.bf16 %v1441_v10  ;;  %v4676_v51 = vmul.bf16 3216621497, %v1441_v10  ;;  %v1811_v4 = vld [vmem:[#allocation9 + $0x740] sm:$0xff] }
0x1796   :  { %v1812_v44 = vld [vmem:[#allocation9 + $0x780] sm:$0xff] }
0x1797   :  { %5481 = vpow.bf16 %v4676_v51  ;;  %v5312_v51 = vld [vmem:[#allocation7 + $0x48] ss:$16 sps:$4 sm:$0xff]  }
0x17a0   :  { %v5480_v50 = vpop.eup %5479 }
0x17a1   :  { %1452 = vrot.lane.b32.xlu1 %v5480_v50, %s5683_s16  ;;  %v5311_v50 = vld [vmem:[#allocation7 + $0x44] ss:$16 sps:$4 sm:$0xff]  }
0x17a2   :  { %v5482_v9 = vpop.eup %5481  ;;  %1598 = vmatprep.subr.bf16.mxu0 %v5311_v50 }
0x17a3   :  { %v1446_v8 = vadd.bf16 1065369472, %v5482_v9  ;;  %v5314_v9 = vld [vmem:[#allocation7 + $0x4c] ss:$16 sps:$4 sm:$0xff]   ;;  %1599 = vmatpush1.bf16.msra.mxu0 %v5309_v49  ;;  %v1795_v49 = vld [vmem:[#allocation9 + $0x340] sm:$0xff] }
0x17a5   :  { %196 = vrot.lane.b32.xlu1 %v6189_v58, %s5691_s13  ;;  %5483 = vrcp.bf16 %v1446_v8  ;;  %s5713_s13 = smov 36  }
0x17a9   :  { %216 = vrot.lane.b32.xlu1 %v6189_v58, %s5686_s28  ;;  %s5712_s28 = smov 40  }
0x17ad   :  { %236 = vrot.lane.b32.xlu1 %v6189_v58, %s5711_s24 }
0x17b0   :  { %v5484_v35 = vpop.eup %5483 }
0x17b1   :  { %v6210_v13 = vmul.bf16 1065369472, %v5484_v35 }
0x17b3   :  { %v1450_v54 = vmul.bf16 %v6210_v13, %v6143_v7  ;;  %v174_v7 = vmax.f32 %v168_v46, %v6178_v41  ;;  %v5306_v46 = vld [vmem:[#allocation7 + $0x28] ss:$16 sps:$4 sm:$0xff]  }
0x17b4   :  { %1638 = vmatpush1.bf16.msra.mxu1 %v5306_v46  ;;  %v4700_v46 = vcombine.high %v1790_v45, %v1791_v5 }
0x17b5   :  { %v180_v62 = vmax.f32 %v174_v7, %v6186_v56  ;;  %1639 = vmatprep.subr.bf16.mxu1 %v5314_v9  ;;  %v1786_v7 = vld [vmem:[#allocation9 + $0x100] sm:$0xff] }
0x17b6   :  { %v1796_v9 = vld [vmem:[#allocation9 + $0x380] sm:$0xff] }
0x17b8   :  { %1640 = vmatpush1.bf16.msra.mxu1 %v5312_v51 }
0x17b9   :  { %v193_v29 = vpop.permute.xlu0 %192 }
0x17ba   :  { %v195_v36 = vadd.f32 %v193_v29, %v184_v31 }
0x17bd   :  { %v213_v6 = vpop.permute.xlu0 %212 }
0x17c1   :  { %v233_v42 = vpop.permute.xlu0 %232 }
0x1813   :  { %v1453_v14 = vpop.permute.xlu1 %1452 }
0x1814   :  { %v1455_v18 = vmul.bf16 %v1453_v14, %v6210_v13  ;;  %v175_v14 = vmin.f32 %v169_v52, %v6178_v41  ;;  %v6240_v52 = vld [vmem:[#allocation13 + $0x2] ss:$8 sm:$0xf] }
0x1816   :  { %1457 = vrot.lane.b32.xlu1 %v1455_v18, %s5683_s16 }
0x1817   :  { %v197_v19 = vpop.permute.xlu1 %196 }
0x1818   :  { %v199_v21 = vsub.f32 %v6150_v22, %v197_v19  ;;  %v181_v19 = vmin.f32 %v175_v14, %v6186_v56  ;;  %v1513_v56 = vrot.slane %v6240_v52, %v5881_v16 }
0x181a   :  { %v200_v23 = vmul.f32 %v199_v21, %v199_v21 }
0x181b   :  { %v217_v24 = vpop.permute.xlu1 %216 }
0x181c   :  { %v219_v25 = vsub.f32 %v6150_v22, %v217_v24  ;;  %202 = vrot.lane.b32.xlu1 %v200_v23, %s5701_s2 }
0x181e   :  { %v220_v26 = vmul.f32 %v219_v25, %v219_v25 }
0x181f   :  { %v237_v55 = vpop.permute.xlu1 %236 }
0x1820   :  { %v239_v27 = vsub.f32 %v6150_v22, %v237_v55  ;;  %222 = vrot.lane.b32.xlu1 %v220_v26, %s5703_s19  ;;  %v253_v22 = vpop.permute.xlu0 %252 }
0x1822   :  { %v240_v28 = vmul.f32 %v239_v27, %v239_v27  ;;  %v1517_v27 = vrot.slane %v6240_v52, %v5938_v60 }
0x1824   :  { %242 = vrot.lane.b32.xlu1 %v240_v28, %s5705_s22 }
0x1888   :  { %v1458_v30 = vpop.permute.xlu1 %1457 }
0x1889   :  { %v1460_v33 = vadd.bf16 %v1458_v30, %v1450_v54 }
0x188b   :  { %5485 = vtanh.bf16 %v1460_v33 }
0x188e   :  { %v203_v37 = vpop.permute.xlu1 %202 }
0x188f   :  { %v205_v38 = vadd.f32 %v203_v37, %v195_v36 }
0x1891   :  { %v215_v34 = vadd.f32 %v213_v6, %v205_v38 }
0x1892   :  { %v223_v53 = vpop.permute.xlu1 %222 }
0x1893   :  { %v225_v61 = vadd.f32 %v223_v53, %v215_v34  ;;  %v1782_v53 = vld [vmem:[#allocation9] sm:$0xff] }
0x1895   :  { %v235_v57 = vadd.f32 %v233_v42, %v225_v61  ;;  %v1783_v61 = vld [vmem:[#allocation9 + $0x40] sm:$0xff] }
0x1896   :  { %v5486_v2 = vpop.eup %5485  ;;  %v243_v59 = vpop.permute.xlu1 %242 }
0x1897   :  { %v245_v15 = vadd.f32 %v243_v59, %v235_v57  ;;  %1463 = vrot.lane.b32.xlu1 %v5486_v2, %s5683_s16  ;;  %v1784_v57 = vld [vmem:[#allocation9 + $0x80] sm:$0xff]  ;;  %v4691_v2 = vcombine.low %v1782_v53, %v1783_v61  ;;  %v4692_v59 = vcombine.high %v1782_v53, %v1783_v61 }
0x1899   :  { %v255_v3 = vadd.f32 %v253_v22, %v245_v15  ;;  %v1785_v22 = vld [vmem:[#allocation9 + $0xc0] sm:$0xff]  ;;  %1987 = vmatprep.subr.bf16.mxu0 %v4692_v59 }
0x189a   :  { %v4694_v15 = vcombine.high %v1784_v57, %v1785_v22 }
0x189b   :  { %v256_v11 = vmul.f32 0.125, %v255_v3  ;;  %1472 = vrot.lane.b32.xlu1 %v6189_v58, %s5683_s16  ;;  %v1787_v3 = vld [vmem:[#allocation9 + $0x140] sm:$0xff] }
0x189c   :  { %v4695_v63 = vcombine.low %v1786_v7, %v1787_v3 }
0x189d   :  { %5487 = vrsqrt.f32 %v256_v11  ;;  %vm259_vm2 = vcmp.eq.f32.partialorder %v256_v11, inf  ;;  %v262_v32 = vand.u32 2147483648, %v256_v11  ;;  %vm261_vm3 = vcmp.eq.f32.partialorder %v256_v11, 0.0 }
0x189f   :  { %1480 = vrot.lane.b32.xlu1 %v180_v62, %s5712_s28  ;;  %v4696_v62 = vcombine.high %v1786_v7, %v1787_v3  ;;  %v1809_v7 = vld [vmem:[#allocation9 + $0x6c0] sm:$0xff] }
0x18a7   :  { %v5488_v58 = vpop.eup %5487 }
0x18a8   :  { %v258_v47 = vmul.f32 %v5488_v58, %v256_v11  ;;  %v1792_v58 = vld [vmem:[#allocation9 + $0x280] sm:$0xff] }
0x18aa   :  { %v260_v48 = vsel %vm259_vm2, %v256_v11, %v258_v47  ;;  %v4693_v11 = vcombine.low %v1784_v57, %v1785_v22  ;;  %v1793_v47 = vld [vmem:[#allocation9 + $0x2c0] sm:$0xff] }
0x18ab   :  { %v263_v10 = vsel %vm261_vm3, %v262_v32, %v260_v48  ;;  %v4699_v32 = vcombine.low %v1790_v45, %v1791_v5  ;;  %v4702_v48 = vcombine.high %v1792_v58, %v1793_v47  ;;  %v4701_v50 = vcombine.low %v1792_v58, %v1793_v47  ;;  %v1806_v57 = vld [vmem:[#allocation9 + $0x600] sm:$0xff]  ;;  %v2279_v58 = vld [vmem:[#allocation9 + $0x50] sm:$0xff] }
0x18ac   :  { %1476 = vrot.lane.b32.xlu0 %v263_v10, %s5713_s13  ;;  %v1794_v10 = vld [vmem:[#allocation9 + $0x300] sm:$0xff] }
0x18ad   :  { %v4704_v51 = vcombine.high %v1794_v10, %v1795_v49  ;;  %v1813_v45 = vld [vmem:[#allocation9 + $0x7c0] sm:$0xff] }
0x18ae   :  { %v4722_v5 = vcombine.high %v1812_v44, %v1813_v45 }
0x1909   :  { %v1464_v8 = vpop.permute.xlu1 %1463 }
0x190a   :  { %v1466_v35 = vmul.bf16 %v1464_v8, %v6210_v13  ;;  %v1797_v8 = vld [vmem:[#allocation9 + $0x3c0] sm:$0xff] }
0x190b   :  { %v4706_v14 = vcombine.high %v1796_v9, %v1797_v8 }
0x190c   :  { %v1467_v18 = vunpack.c.l.bf16 %v1466_v35  ;;  %v4703_v35 = vcombine.low %v1794_v10, %v1795_v49 }
0x190d   :  { %v1473_v21 = vpop.permute.xlu1 %1472 }
0x190e   :  { %1469 = vrot.lane.b32.xlu0 %v1467_v18, %s5694_s11  ;;  %v1798_v18 = vld [vmem:[#allocation9 + $0x400] sm:$0xff] }
0x1911   :  { %v1481_v13 = vpop.permute.xlu1 %1480 }
0x1912   :  { %1484 = vrot.lane.b32.xlu0 %v181_v19, %s5714_s25  ;;  %v1799_v19 = vld [vmem:[#allocation9 + $0x440] sm:$0xff] }
0x191e   :  { %v1477_v23 = vpop.permute.xlu0 %1476 }
0x1980   :  { %v1470_v24 = vpop.permute.xlu0 %1469 }
0x1981   :  { %v1487_v25 = vsel %vm405_vm0, %v1470_v24, %v1473_v21  ;;  %v4705_v21 = vcombine.low %v1796_v9, %v1797_v8  ;;  %v1800_v24 = vld [vmem:[#allocation9 + $0x480] sm:$0xff] }
0x1982   :  { %v1489_v26 = vsel %vm1488_vm4, %v1487_v25, %v1477_v23  ;;  %v4708_v23 = vcombine.high %v1798_v18, %v1799_v19  ;;  %v1801_v25 = vld [vmem:[#allocation9 + $0x4c0] sm:$0xff] }
0x1983   :  { %v1491_v55 = vsel %vm1490_vm5, %v1489_v26, %v1481_v13  ;;  %v4707_v13 = vcombine.low %v1798_v18, %v1799_v19  ;;  %v4710_v26 = vcombine.high %v1800_v24, %v1801_v25 }
0x1984   :  { %v1485_v40 = vpop.permute.xlu0 %1484 }
0x1985   :  { %v1493_v0 = vsel %vm1492_vm6, %v1491_v55, %v1485_v40  ;;  %v4709_v55 = vcombine.low %v1800_v24, %v1801_v25  ;;  %v1679_v24 = vld [vmem:[#allocation13 + $0x13] ss:$8 sm:$0x3] }
0x1986   :  { %v1506_v41 = vpack.c.bf16 %v1493_v0, %v1493_v0  ;;  %v1521_v0 = vrot.slane %v6240_v52, %v295_v20 }
0x1988   :  { %4689 = vmatmul.mubr.msk.bf16.vlgmr.msra.gmra.mrb[20].mxu0 %vm1590_vm7, %v1506_v41  ;;  %4690 = vmatmul.mubr.msk.bf16.vlgmr.msra.gmra.mrb[28].mxu1 %vm1590_vm7, %v1506_v41  ;;  %v1525_v41 = vrot.slane %v6240_v52, %v299_v17 }
0x1989   :  { %1988 = vmatpush1.bf16.msra.mxu0 %v4691_v2  ;;  %v1807_v2 = vld [vmem:[#allocation9 + $0x640] sm:$0xff] }
0x198a   :  { %1989 = vmatprep.subr.bf16.mxu0 %v4694_v15  ;;  %v4715_v59 = vcombine.low %v1806_v57, %v1807_v2  ;;  %v4716_v22 = vcombine.high %v1806_v57, %v1807_v2  ;;  %v1808_v15 = vld [vmem:[#allocation9 + $0x680] sm:$0xff]  ;;  %v2288_v57 = vld [vmem:[#allocation9 + $0x290] sm:$0xff] }
0x198b   :  { %v4718_v3 = vcombine.high %v1808_v15, %v1809_v7  ;;  %v2289_v2 = vld [vmem:[#allocation9 + $0x2d0] sm:$0xff] }
0x198d   :  { %1990 = vmatpush1.bf16.msra.mxu0 %v4693_v11  ;;  %v4717_v11 = vcombine.low %v1808_v15, %v1809_v7  ;;  %v2290_v15 = vld [vmem:[#allocation9 + $0x310] sm:$0xff] }
0x198e   :  { %1991 = vmatprep.subr.bf16.mxu0 %v4696_v62  ;;  %v1810_v62 = vld [vmem:[#allocation9 + $0x700] sm:$0xff]  ;;  %v2291_v7 = vld [vmem:[#allocation9 + $0x350] sm:$0xff] }
0x1991   :  { %1992 = vmatpush1.bf16.msra.mxu0 %v4695_v63  ;;  %v4719_v63 = vcombine.low %v1810_v62, %v1811_v4 }
0x1992   :  { %1993 = vmatprep.subr.bf16.mxu0 %v4698_v1  ;;  %v4720_v1 = vcombine.high %v1810_v62, %v1811_v4  ;;  %v2030_v62 = vld [vmem:[#allocation9 + $0x8] sm:$0xff]  ;;  %v2292_v4 = vld [vmem:[#allocation9 + $0x390] sm:$0xff] }
0x1995   :  { %1994 = vmatpush1.bf16.msra.mxu0 %v4697_v39  ;;  %v4721_v39 = vcombine.low %v1812_v44, %v1813_v45  ;;  %v2293_v44 = vld [vmem:[#allocation9 + $0x3d0] sm:$0xff] }
0x1996   :  { %1995 = vmatprep.subr.bf16.mxu0 %v4700_v46  ;;  %v2278_v46 = vld [vmem:[#allocation9 + $0x10] sm:$0xff] }
0x1997   :  { %v4755_v47 = vcombine.low %v2278_v46, %v2279_v58 }
0x1999   :  { %1996 = vmatpush1.bf16.msra.mxu0 %v4699_v32  ;;  %v4756_v32 = vcombine.high %v2278_v46, %v2279_v58  ;;  %v2294_v46 = vld [vmem:[#allocation9 + $0x410] sm:$0xff] }
0x199a   :  { %1997 = vmatprep.subr.bf16.mxu0 %v4702_v48  ;;  %v2295_v58 = vld [vmem:[#allocation9 + $0x450] sm:$0xff] }
0x199d   :  { %1998 = vmatpush1.bf16.msra.mxu0 %v4701_v50 }
0x199e   :  { %1999 = vmatprep.subr.bf16.mxu0 %v4704_v51 }
0x19a1   :  { %2000 = vmatpush1.bf16.msra.mxu0 %v4703_v35 }
0x19a2   :  { %2001 = vmatprep.subr.bf16.mxu0 %v4706_v14 }
0x19a5   :  { %2002 = vmatpush1.bf16.msra.mxu0 %v4705_v21  ;;  %v1677_v21 = vld [vmem:[#allocation13 + $0x3] ss:$8 sm:$0x3] }
0x19a6   :  { %2003 = vmatprep.subr.bf16.mxu0 %v4708_v23  ;;  %v1706_v25 = vrot.slane %v1677_v21, %v5881_v16 }
0x19a9   :  { %2004 = vmatpush1.bf16.msra.mxu0 %v4707_v13  ;;  %v1710_v13 = vrot.slane %v1677_v21, %v5938_v60 }
0x19aa   :  { %2005 = vmatprep.subr.bf16.mxu0 %v4710_v26 }
0x19ad   :  { %2006 = vmatpush1.bf16.msra.mxu0 %v4709_v55 }
0x1a5b   :  { %v1628_v28 = vpop.f32.mrb[20].mxu0  ;;  %v6246_v43 = vpop.f32.mrb[28].mxu1 }
0x1a5c   :  { %v6248_v29 = vadd.f32 %v1628_v28, %v1513_v56  ;;  %v1630_v54 = vpop.f32.mrb[21].mxu0  ;;  %v6250_v30 = vpop.f32.mrb[29].mxu1 }
0x1a5d   :  { %v6252_v31 = vadd.f32 %v1630_v54, %v1517_v27  ;;  %v1632_v33 = vpop.f32.mrb[22].mxu0  ;;  %v1673_v6 = vpop.f32.mrb[30].mxu1  ;;  %v1670_v54 = vadd.f32 %v6246_v43, %v1521_v0  ;;  %v1802_v43 = vld [vmem:[#allocation9 + $0x500] sm:$0xff]  ;;  %v1723_v0 = vrot.slane %v1679_v24, %v5938_v60 }
0x1a5e   :  { %v1633_v36 = vpop.f32.mrb[23].mxu0  ;;  %v1674_v37 = vpop.f32.mrb[31].mxu1  ;;  %v1681_v38 = vsel %vm1680_vm8, %v6248_v29, 0.0  ;;  %v1672_v33 = vadd.f32 %v6250_v30, %v1525_v41  ;;  %v1803_v30 = vld [vmem:[#allocation9 + $0x540] sm:$0xff] }
0x1a5f   :  { %v1682_v42 = vsel %vm1680_vm8, %v6252_v31, 0.0  ;;  %v4712_v37 = vcombine.high %v1802_v43, %v1803_v30 }
0x1a60   :  { %v1683_v34 = vadd.f32 %v1682_v42, %v1681_v38  ;;  %v4711_v38 = vcombine.low %v1802_v43, %v1803_v30  ;;  %v1804_v42 = vld [vmem:[#allocation9 + $0x580] sm:$0xff]  ;;  %v2284_v30 = vld [vmem:[#allocation9 + $0x190] sm:$0xff] }
0x1a61   :  { %2007 = vmatprep.subr.bf16.mxu0 %v4712_v37  ;;  %v2285_v37 = vld [vmem:[#allocation9 + $0x1d0] sm:$0xff] }
0x1a62   :  { %1684 = vadd.xlane.f32.xlu1 %v1683_v34  ;;  %2008 = vmatpush1.bf16.msra.mxu0 %v4711_v38  ;;  %v1805_v34 = vld [vmem:[#allocation9 + $0x5c0] sm:$0xff]  ;;  %v4762_v38 = vcombine.high %v2284_v30, %v2285_v37 }
0x1a63   :  { %v4714_v53 = vcombine.high %v1804_v42, %v1805_v34  ;;  %v4713_v61 = vcombine.low %v1804_v42, %v1805_v34  ;;  %v2286_v42 = vld [vmem:[#allocation9 + $0x210] sm:$0xff] }
0x1a64   :  { %v2287_v34 = vld [vmem:[#allocation9 + $0x250] sm:$0xff] }
0x1a65   :  { %2009 = vmatprep.subr.bf16.mxu0 %v4714_v53  ;;  %v4761_v53 = vcombine.low %v2284_v30, %v2285_v37 }
0x1a66   :  { %2010 = vmatpush1.bf16.msra.mxu0 %v4713_v61  ;;  %v4764_v61 = vcombine.high %v2286_v42, %v2287_v34 }
0x1a67   :  { %2011 = vmatprep.subr.bf16.mxu0 %v4716_v22  ;;  %v4766_v22 = vcombine.high %v2288_v57, %v2289_v2 }
0x1a6a   :  { %2012 = vmatpush1.bf16.msra.mxu0 %v4715_v59  ;;  %v4763_v59 = vcombine.low %v2286_v42, %v2287_v34  ;;  %v2304_v34 = vld [vmem:[#allocation9 + $0x690] sm:$0xff] }
0x1a6b   :  { %2013 = vmatprep.subr.bf16.mxu0 %v4718_v3  ;;  %v4765_v3 = vcombine.low %v2288_v57, %v2289_v2 }
0x1a6e   :  { %2014 = vmatpush1.bf16.msra.mxu0 %v4717_v11  ;;  %v4768_v11 = vcombine.high %v2290_v15, %v2291_v7 }
0x1a6f   :  { %2015 = vmatprep.subr.bf16.mxu0 %v4720_v1 }
0x1a72   :  { %2016 = vmatpush1.bf16.msra.mxu0 %v4719_v63  ;;  %v2031_v63 = vld [vmem:[#allocation9 + $0x48] sm:$0xff] }
0x1a73   :  { %2017 = vmatprep.subr.bf16.mxu0 %v4722_v5  ;;  %v4723_v1 = vcombine.low %v2030_v62, %v2031_v63  ;;  %v4724_v45 = vcombine.high %v2030_v62, %v2031_v63  ;;  %v4767_v5 = vcombine.low %v2290_v15, %v2291_v7  ;;  %v2306_v7 = vld [vmem:[#allocation9 + $0x710] sm:$0xff]  ;;  %v2047_v63 = vld [vmem:[#allocation9 + $0x448] sm:$0xff] }
0x1a75   :  { %2235 = vmatprep.subr.bf16.mxu1 %v4724_v45  ;;  %v2308_v45 = vld [vmem:[#allocation9 + $0x790] sm:$0xff] }
0x1a76   :  { %2018 = vmatpush1.bf16.msra.mxu0 %v4721_v39  ;;  %v4770_v39 = vcombine.high %v2292_v4, %v2293_v44  ;;  %2236 = vmatpush1.bf16.msra.mxu1 %v4723_v1 }
0x1a77   :  { %2483 = vmatprep.subr.bf16.mxu0 %v4756_v32  ;;  %v4772_v32 = vcombine.high %v2294_v46, %v2295_v58 }
0x1aef   :  { %v1685_v40 = vpop.xlane.xlu1 %1684 }
0x1af0   :  { %v1687_v56 = vmul.f32 0.00390625, %v1685_v40  ;;  %v1719_v40 = vrot.slane %v1679_v24, %v5881_v16  ;;  %v2037_v24 = vld [vmem:[#allocation9 + $0x1c8] sm:$0xff] }
0x1af2   :  { %v6265_v27 = vsub.f32 %v6248_v29, %v1687_v56  ;;  %v6268_v28 = vsub.f32 %v6252_v31, %v1687_v56  ;;  %v1734_v29 = vsel %vm1680_vm8, %v1670_v54, 0.0  ;;  %v1735_v31 = vsel %vm1680_vm8, %v1672_v33, 0.0 }
0x1af3   :  { %v1736_v36 = vadd.f32 %v1735_v31, %v1734_v29  ;;  %v2282_v31 = vld [vmem:[#allocation9 + $0x110] sm:$0xff] }
0x1af4   :  { %v1690_v6 = vmul.f32 %v6265_v27, %v6265_v27  ;;  %v1691_v20 = vmul.f32 %v6268_v28, %v6268_v28 }
0x1af6   :  { %v1692_v12 = vsel %vm1680_vm8, %v1690_v6, 0.0  ;;  %v1693_v17 = vsel %vm1680_vm8, %v1691_v20, 0.0  ;;  %v2280_v20 = vld [vmem:[#allocation9 + $0x90] sm:$0xff] }
0x1af7   :  { %v1694_v52 = vadd.f32 %v1693_v17, %v1692_v12  ;;  %v2281_v12 = vld [vmem:[#allocation9 + $0xd0] sm:$0xff] }
0x1af8   :  { %v4758_v29 = vcombine.high %v2280_v20, %v2281_v12 }
0x1af9   :  { %1695 = vadd.xlane.f32.xlu0 %v1694_v52 }
0x1afd   :  { %1737 = vadd.xlane.f32.xlu0 %v1736_v36  ;;  %v2283_v36 = vld [vmem:[#allocation9 + $0x150] sm:$0xff] }
0x1afe   :  { %v4760_v43 = vcombine.high %v2282_v31, %v2283_v36 }
0x1b86   :  { %v1696_v48 = vpop.xlane.xlu0 %1695 }
0x1b87   :  { %v1697_v10 = vmul.f32 0.00390625, %v1696_v48  ;;  %v2296_v48 = vld [vmem:[#allocation9 + $0x490] sm:$0xff] }
0x1b89   :  { %v1698_v49 = vadd.f32 1e-05, %v1697_v10  ;;  %v2297_v10 = vld [vmem:[#allocation9 + $0x4d0] sm:$0xff] }
0x1b8a   :  { %v1738_v50 = vpop.xlane.xlu0 %1737 }
0x1b8b   :  { %5489 = vrsqrt.f32 %v1698_v49  ;;  %v1739_v51 = vmul.f32 0.00390625, %v1738_v50  ;;  %v2032_v49 = vld [vmem:[#allocation9 + $0x88] sm:$0xff] }
0x1b8c   :  { %v2033_v50 = vld [vmem:[#allocation9 + $0xc8] sm:$0xff] }
0x1b8d   :  { %v6280_v9 = vsub.f32 %v1670_v54, %v1739_v51  ;;  %v6282_v8 = vsub.f32 %v1672_v33, %v1739_v51  ;;  %v2034_v51 = vld [vmem:[#allocation9 + $0x108] sm:$0xff] }
0x1b8f   :  { %v1742_v35 = vmul.f32 %v6280_v9, %v6280_v9  ;;  %v1743_v14 = vmul.f32 %v6282_v8, %v6282_v8 }
0x1b91   :  { %v1744_v18 = vsel %vm1680_vm8, %v1742_v35, 0.0  ;;  %v1745_v19 = vsel %vm1680_vm8, %v1743_v14, 0.0  ;;  %v4725_v35 = vcombine.low %v2032_v49, %v2033_v50  ;;  %v4726_v14 = vcombine.high %v2032_v49, %v2033_v50 }
0x1b92   :  { %v1746_v23 = vadd.f32 %v1745_v19, %v1744_v18  ;;  %v2035_v18 = vld [vmem:[#allocation9 + $0x148] sm:$0xff]  ;;  %v4771_v19 = vcombine.low %v2294_v46, %v2295_v58 }
0x1b93   :  { %v4728_v21 = vcombine.high %v2034_v51, %v2035_v18  ;;  %2237 = vmatprep.subr.bf16.mxu1 %v4726_v14 }
0x1b94   :  { %1747 = vadd.xlane.f32.xlu1 %v1746_v23  ;;  %v2036_v23 = vld [vmem:[#allocation9 + $0x188] sm:$0xff]  ;;  %2238 = vmatpush1.bf16.msra.mxu1 %v4725_v35 }
0x1b95   :  { %v5490_v26 = vpop.eup %5489  ;;  %2239 = vmatprep.subr.bf16.mxu1 %v4728_v21  ;;  %v2051_v35 = vld [vmem:[#allocation9 + $0x548] sm:$0xff] }
0x1b96   :  { %v1701_v55 = vmul.f32 %v5490_v26, %v6268_v28  ;;  %v1700_v41 = vmul.f32 %v5490_v26, %v6265_v27  ;;  %v4757_v28 = vcombine.low %v2280_v20, %v2281_v12  ;;  %v4759_v27 = vcombine.low %v2282_v31, %v2283_v36  ;;  %v2299_v26 = vld [vmem:[#allocation9 + $0x550] sm:$0xff]  ;;  %v2053_v21 = vld [vmem:[#allocation9 + $0x5c8] sm:$0xff] }
0x1b97   :  { %v4729_v20 = vcombine.low %v2036_v23, %v2037_v24  ;;  %v2302_v36 = vld [vmem:[#allocation9 + $0x610] sm:$0xff] }
0x1b98   :  { %v1714_v56 = vmul.f32 %v1710_v13, %v1701_v55  ;;  %v1713_v54 = vmul.f32 %v1706_v25, %v1700_v41  ;;  %v4774_v25 = vcombine.high %v2296_v48, %v2297_v10  ;;  %v2298_v13 = vld [vmem:[#allocation9 + $0x510] sm:$0xff]  ;;  %v4727_v55 = vcombine.low %v2034_v51, %v2035_v18  ;;  %v2038_v41 = vld [vmem:[#allocation9 + $0x208] sm:$0xff] }
0x1b99   :  { %v2050_v51 = vld [vmem:[#allocation9 + $0x508] sm:$0xff] }
0x1b9a   :  { %v1727_v33 = vadd.f32 %v1723_v0, %v1714_v56  ;;  %v1726_v6 = vadd.f32 %v1719_v40, %v1713_v54  ;;  %v4730_v40 = vcombine.high %v2036_v23, %v2037_v24  ;;  %v4773_v0 = vcombine.low %v2296_v48, %v2297_v10  ;;  %v2039_v56 = vld [vmem:[#allocation9 + $0x248] sm:$0xff]  ;;  %2240 = vmatpush1.bf16.msra.mxu1 %v4727_v55 }
0x1b9b   :  { %v4776_v54 = vcombine.high %v2298_v13, %v2299_v26  ;;  %v4732_v12 = vcombine.high %v2038_v41, %v2039_v56  ;;  %v4744_v18 = vcombine.high %v2050_v51, %v2051_v35  ;;  %v4743_v23 = vcombine.low %v2050_v51, %v2051_v35  ;;  %v2531_v51 = vld [vmem:[#allocation9 + $0x158] sm:$0xff] }
0x1b9c   :  { %v1729_v17 = vpack.c.bf16 %v1727_v33, %v1727_v33  ;;  %v1728_v52 = vpack.c.bf16 %v1726_v6, %v1726_v6  ;;  %v2300_v33 = vld [vmem:[#allocation9 + $0x590] sm:$0xff]  ;;  %2241 = vmatprep.subr.bf16.mxu1 %v4730_v40  ;;  %v2056_v40 = vld [vmem:[#allocation9 + $0x688] sm:$0xff] }
0x1b9d   :  { %v2301_v6 = vld [vmem:[#allocation9 + $0x5d0] sm:$0xff] }
0x1b9e   :  { %2019 = vmatprep.mubr.bf16.mxu0 %v1729_v17  ;;  %v4775_v17 = vcombine.low %v2298_v13, %v2299_v26  ;;  %v4778_v31 = vcombine.high %v2300_v33, %v2301_v6  ;;  %2242 = vmatpush1.bf16.msra.mxu1 %v4729_v20  ;;  %v4777_v37 = vcombine.low %v2300_v33, %v2301_v6  ;;  %v2055_v13 = vld [vmem:[#allocation9 + $0x648] sm:$0xff] }
0x1b9f   :  { %2020 = vmatmul.mubr.bf16.vlgmr.msra.gmra.mrb[24].mxu0 %v1728_v52  ;;  %v2040_v52 = vld [vmem:[#allocation9 + $0x288] sm:$0xff]  ;;  %2243 = vmatprep.subr.bf16.mxu1 %v4732_v12 }
0x1ba0   :  { %2484 = vmatpush1.bf16.msra.mxu0 %v4755_v47  ;;  %v4769_v47 = vcombine.low %v2292_v4, %v2293_v44  ;;  %v2046_v44 = vld [vmem:[#allocation9 + $0x408] sm:$0xff] }
0x1ba1   :  { %2485 = vmatprep.subr.bf16.mxu0 %v4758_v29  ;;  %v2041_v29 = vld [vmem:[#allocation9 + $0x2c8] sm:$0xff]  ;;  %v4740_v46 = vcombine.high %v2046_v44, %v2047_v63  ;;  %v4739_v10 = vcombine.low %v2046_v44, %v2047_v63 }
0x1ba2   :  { %v4734_v30 = vcombine.high %v2040_v52, %v2041_v29  ;;  %v2059_v33 = vld [vmem:[#allocation9 + $0x748] sm:$0xff] }
0x1ba3   :  { %v1815_v63 = vld [vmem:[#allocation13 + $0x4] ss:$8 sm:$0x3] }
0x1ba4   :  { %2486 = vmatpush1.bf16.msra.mxu0 %v4757_v28  ;;  %v2303_v28 = vld [vmem:[#allocation9 + $0x650] sm:$0xff] }
0x1ba5   :  { %2487 = vmatprep.subr.bf16.mxu0 %v4760_v43  ;;  %v4731_v43 = vcombine.low %v2038_v41, %v2039_v56  ;;  %v4780_v42 = vcombine.high %v2302_v36, %v2303_v28  ;;  %v4779_v2 = vcombine.low %v2302_v36, %v2303_v28  ;;  %v2526_v36 = vld [vmem:[#allocation9 + $0x18] sm:$0xff] }
0x1ba6   :  { %v2527_v28 = vld [vmem:[#allocation9 + $0x58] sm:$0xff] }
0x1ba7   :  { %2244 = vmatpush1.bf16.msra.mxu1 %v4731_v43  ;;  %v4787_v43 = vcombine.low %v2526_v36, %v2527_v28 }
0x1ba8   :  { %2488 = vmatpush1.bf16.msra.mxu0 %v4759_v27  ;;  %v2042_v27 = vld [vmem:[#allocation9 + $0x308] sm:$0xff]  ;;  %2245 = vmatprep.subr.bf16.mxu1 %v4734_v30  ;;  %v4788_v30 = vcombine.high %v2526_v36, %v2527_v28  ;;  %v2774_v36 = vld [vmem:[#allocation9 + $0x20] sm:$0xff] }
0x1ba9   :  { %2489 = vmatprep.subr.bf16.mxu0 %v4762_v38  ;;  %v2043_v38 = vld [vmem:[#allocation9 + $0x348] sm:$0xff]  ;;  %v2775_v28 = vld [vmem:[#allocation9 + $0x60] sm:$0xff] }
0x1baa   :  { %v4736_v57 = vcombine.high %v2042_v27, %v2043_v38 }
0x1bac   :  { %2490 = vmatpush1.bf16.msra.mxu0 %v4761_v53  ;;  %v2305_v53 = vld [vmem:[#allocation9 + $0x6d0] sm:$0xff] }
0x1bad   :  { %2491 = vmatprep.subr.bf16.mxu0 %v4764_v61  ;;  %v4733_v61 = vcombine.low %v2040_v52, %v2041_v29  ;;  %v4782_v15 = vcombine.high %v2304_v34, %v2305_v53  ;;  %v4781_v4 = vcombine.low %v2304_v34, %v2305_v53  ;;  %v2061_v52 = vld [vmem:[#allocation9 + $0x7c8] sm:$0xff]  ;;  %v1733_v34 = vld [vmem:[#allocation13 + $0x33] ss:$8 sm:$0x3] }
0x1baf   :  { %2246 = vmatpush1.bf16.msra.mxu1 %v4733_v61 }
0x1bb0   :  { %2492 = vmatpush1.bf16.msra.mxu0 %v4763_v59  ;;  %v2044_v59 = vld [vmem:[#allocation9 + $0x388] sm:$0xff]  ;;  %2247 = vmatprep.subr.bf16.mxu1 %v4736_v57 }
0x1bb1   :  { %2493 = vmatprep.subr.bf16.mxu0 %v4766_v22  ;;  %v2045_v22 = vld [vmem:[#allocation9 + $0x3c8] sm:$0xff] }
0x1bb2   :  { %v4738_v62 = vcombine.high %v2044_v59, %v2045_v22 }
0x1bb4   :  { %2494 = vmatpush1.bf16.msra.mxu0 %v4765_v3  ;;  %v2307_v3 = vld [vmem:[#allocation9 + $0x750] sm:$0xff] }
0x1bb5   :  { %2495 = vmatprep.subr.bf16.mxu0 %v4768_v11  ;;  %v4735_v11 = vcombine.low %v2042_v27, %v2043_v38  ;;  %v4784_v1 = vcombine.high %v2306_v7, %v2307_v3  ;;  %v4783_v58 = vcombine.low %v2306_v7, %v2307_v3 }
0x1bb7   :  { %2248 = vmatpush1.bf16.msra.mxu1 %v4735_v11 }
0x1bb8   :  { %2496 = vmatpush1.bf16.msra.mxu0 %v4767_v5  ;;  %v2309_v5 = vld [vmem:[#allocation9 + $0x7d0] sm:$0xff]  ;;  %2249 = vmatprep.subr.bf16.mxu1 %v4738_v62 }
0x1bb9   :  { %2497 = vmatprep.subr.bf16.mxu0 %v4770_v39  ;;  %v4737_v39 = vcombine.low %v2044_v59, %v2045_v22  ;;  %v4786_v48 = vcombine.high %v2308_v45, %v2309_v5  ;;  %v4785_v50 = vcombine.low %v2308_v45, %v2309_v5  ;;  %v1771_v22 = vrot.slane %v1733_v34, %v5881_v16 }
0x1bba   :  { %v1824_v45 = vrot.slane %v1815_v63, %v5938_v60 }
0x1bbb   :  { %2250 = vmatpush1.bf16.msra.mxu1 %v4737_v39 }
0x1bbc   :  { %2498 = vmatpush1.bf16.msra.mxu0 %v4769_v47  ;;  %v2048_v47 = vld [vmem:[#allocation9 + $0x488] sm:$0xff]  ;;  %2251 = vmatprep.subr.bf16.mxu1 %v4740_v46 }
0x1bbd   :  { %2499 = vmatprep.subr.bf16.mxu0 %v4772_v32  ;;  %v2049_v32 = vld [vmem:[#allocation9 + $0x4c8] sm:$0xff] }
0x1bbe   :  { %v4742_v49 = vcombine.high %v2048_v47, %v2049_v32  ;;  %v4741_v14 = vcombine.low %v2048_v47, %v2049_v32  ;;  %v2529_v47 = vld [vmem:[#allocation9 + $0xd8] sm:$0xff] }
0x1bbf   :  { %2252 = vmatpush1.bf16.msra.mxu1 %v4739_v10 }
0x1bc0   :  { %2500 = vmatpush1.bf16.msra.mxu0 %v4771_v19  ;;  %2253 = vmatprep.subr.bf16.mxu1 %v4742_v49  ;;  %v2052_v19 = vld [vmem:[#allocation9 + $0x588] sm:$0xff] }
0x1bc1   :  { %2501 = vmatprep.subr.bf16.mxu0 %v4774_v25  ;;  %v4746_v24 = vcombine.high %v2052_v19, %v2053_v21  ;;  %v2054_v25 = vld [vmem:[#allocation9 + $0x608] sm:$0xff]  ;;  %v4745_v26 = vcombine.low %v2052_v19, %v2053_v21  ;;  %v2533_v19 = vld [vmem:[#allocation9 + $0x1d8] sm:$0xff] }
0x1bc2   :  { %v4748_v55 = vcombine.high %v2054_v25, %v2055_v13  ;;  %v4747_v41 = vcombine.low %v2054_v25, %v2055_v13  ;;  %v2535_v25 = vld [vmem:[#allocation9 + $0x258] sm:$0xff] }
0x1bc3   :  { %2254 = vmatpush1.bf16.msra.mxu1 %v4741_v14 }
0x1bc4   :  { %2502 = vmatpush1.bf16.msra.mxu0 %v4773_v0  ;;  %2255 = vmatprep.subr.bf16.mxu1 %v4744_v18  ;;  %v2057_v0 = vld [vmem:[#allocation9 + $0x6c8] sm:$0xff]  ;;  %v2532_v18 = vld [vmem:[#allocation9 + $0x198] sm:$0xff] }
0x1bc5   :  { %2503 = vmatprep.subr.bf16.mxu0 %v4776_v54  ;;  %v4750_v56 = vcombine.high %v2056_v40, %v2057_v0  ;;  %v2058_v54 = vld [vmem:[#allocation9 + $0x708] sm:$0xff]  ;;  %v4749_v6 = vcombine.low %v2056_v40, %v2057_v0  ;;  %v4793_v13 = vcombine.low %v2532_v18, %v2533_v19  ;;  %v2537_v40 = vld [vmem:[#allocation9 + $0x2d8] sm:$0xff] }
0x1bc6   :  { %v4752_v20 = vcombine.high %v2058_v54, %v2059_v33  ;;  %v4751_v12 = vcombine.low %v2058_v54, %v2059_v33  ;;  %v2539_v54 = vld [vmem:[#allocation9 + $0x358] sm:$0xff] }
0x1bc7   :  { %2256 = vmatpush1.bf16.msra.mxu1 %v4743_v23  ;;  %v4794_v23 = vcombine.high %v2532_v18, %v2533_v19  ;;  %v2786_v18 = vld [vmem:[#allocation9 + $0x320] sm:$0xff] }
0x1bc8   :  { %2504 = vmatpush1.bf16.msra.mxu0 %v4775_v17  ;;  %2257 = vmatprep.subr.bf16.mxu1 %v4746_v24  ;;  %v2060_v17 = vld [vmem:[#allocation9 + $0x788] sm:$0xff]  ;;  %v2534_v24 = vld [vmem:[#allocation9 + $0x218] sm:$0xff]  ;;  %v2787_v19 = vld [vmem:[#allocation9 + $0x360] sm:$0xff] }
0x1bc9   :  { %2505 = vmatprep.subr.bf16.mxu0 %v4778_v31  ;;  %v4754_v29 = vcombine.high %v2060_v17, %v2061_v52  ;;  %v4753_v31 = vcombine.low %v2060_v17, %v2061_v52  ;;  %v4795_v0 = vcombine.low %v2534_v24, %v2535_v25 }
0x1bcb   :  { %2258 = vmatpush1.bf16.msra.mxu1 %v4745_v26  ;;  %v4796_v26 = vcombine.high %v2534_v24, %v2535_v25  ;;  %v2553_v24 = vld [vmem:[#allocation9 + $0x6d8] sm:$0xff] }
0x1bcc   :  { %2506 = vmatpush1.bf16.msra.mxu0 %v4777_v37  ;;  %2259 = vmatprep.subr.bf16.mxu1 %v4748_v55  ;;  %v2536_v55 = vld [vmem:[#allocation9 + $0x298] sm:$0xff] }
0x1bcd   :  { %2507 = vmatprep.subr.bf16.mxu0 %v4780_v42  ;;  %v1731_v42 = vld [vmem:[#allocation13 + $0x23] ss:$8 sm:$0x3]  ;;  %v4797_v33 = vcombine.low %v2536_v55, %v2537_v40 }
0x1bce   :  { %v1758_v53 = vrot.slane %v1731_v42, %v5881_v16  ;;  %v1762_v61 = vrot.slane %v1731_v42, %v5938_v60  ;;  %v2545_v42 = vld [vmem:[#allocation9 + $0x4d8] sm:$0xff] }
0x1bcf   :  { %2260 = vmatpush1.bf16.msra.mxu1 %v4747_v41  ;;  %v4798_v41 = vcombine.high %v2536_v55, %v2537_v40  ;;  %v2788_v55 = vld [vmem:[#allocation9 + $0x3a0] sm:$0xff] }
0x1bd0   :  { %2508 = vmatpush1.bf16.msra.mxu0 %v4779_v2  ;;  %2261 = vmatprep.subr.bf16.mxu1 %v4750_v56  ;;  %v2538_v56 = vld [vmem:[#allocation9 + $0x318] sm:$0xff]  ;;  %v2789_v40 = vld [vmem:[#allocation9 + $0x3e0] sm:$0xff] }
0x1bd1   :  { %2509 = vmatprep.subr.bf16.mxu0 %v4782_v15  ;;  %v1775_v15 = vrot.slane %v1733_v34, %v5938_v60  ;;  %v4799_v17 = vcombine.low %v2538_v56, %v2539_v54  ;;  %v2776_v34 = vld [vmem:[#allocation9 + $0xa0] sm:$0xff] }
0x1bd3   :  { %2262 = vmatpush1.bf16.msra.mxu1 %v4749_v6  ;;  %v4800_v6 = vcombine.high %v2538_v56, %v2539_v54  ;;  %v2555_v56 = vld [vmem:[#allocation9 + $0x758] sm:$0xff]  ;;  %v4831_v54 = vcombine.low %v2786_v18, %v2787_v19 }
0x1bd4   :  { %2510 = vmatpush1.bf16.msra.mxu0 %v4781_v4  ;;  %2263 = vmatprep.subr.bf16.mxu1 %v4752_v20  ;;  %v2540_v20 = vld [vmem:[#allocation9 + $0x398] sm:$0xff] }
0x1bd5   :  { %2511 = vmatprep.subr.bf16.mxu0 %v4784_v1  ;;  %v1820_v1 = vrot.slane %v1815_v63, %v5881_v16 }
0x1bd7   :  { %2264 = vmatpush1.bf16.msra.mxu1 %v4751_v12  ;;  %v2541_v12 = vld [vmem:[#allocation9 + $0x3d8] sm:$0xff] }
0x1bd8   :  { %2512 = vmatpush1.bf16.msra.mxu0 %v4783_v58  ;;  %2265 = vmatprep.subr.bf16.mxu1 %v4754_v29  ;;  %v2528_v58 = vld [vmem:[#allocation9 + $0x98] sm:$0xff]  ;;  %v4802_v52 = vcombine.high %v2540_v20, %v2541_v12 }
0x1bd9   :  { %2513 = vmatprep.subr.bf16.mxu0 %v4786_v48  ;;  %v4790_v49 = vcombine.high %v2528_v58, %v2529_v47  ;;  %v4789_v35 = vcombine.low %v2528_v58, %v2529_v47  ;;  %v2542_v29 = vld [vmem:[#allocation9 + $0x418] sm:$0xff] }
0x1bdb   :  { %2266 = vmatpush1.bf16.msra.mxu1 %v4753_v31  ;;  %v2543_v31 = vld [vmem:[#allocation9 + $0x458] sm:$0xff] }
0x1bdc   :  { %2514 = vmatpush1.bf16.msra.mxu0 %v4785_v50  ;;  %2731 = vmatprep.subr.bf16.mxu1 %v4788_v30  ;;  %v2530_v50 = vld [vmem:[#allocation9 + $0x118] sm:$0xff]  ;;  %v4801_v30 = vcombine.low %v2540_v20, %v2541_v12  ;;  %v2790_v20 = vld [vmem:[#allocation9 + $0x420] sm:$0xff] }
0x1bdd   :  { %v4792_v14 = vcombine.high %v2530_v50, %v2531_v51  ;;  %v4791_v21 = vcombine.low %v2530_v50, %v2531_v51  ;;  %v2551_v50 = vld [vmem:[#allocation9 + $0x658] sm:$0xff]  ;;  %v2791_v12 = vld [vmem:[#allocation9 + $0x460] sm:$0xff] }
0x1c21   :  { %v1748_v37 = vpop.xlane.xlu1 %1747 }
0x1c22   :  { %v1749_v27 = vmul.f32 0.00390625, %v1748_v37  ;;  %v4819_v37 = vcombine.low %v2774_v36, %v2775_v28 }
0x1c24   :  { %v1750_v38 = vadd.f32 1e-05, %v1749_v27  ;;  %v4804_v27 = vcombine.high %v2542_v29, %v2543_v31 }
0x1c26   :  { %5491 = vrsqrt.f32 %v1750_v38  ;;  %v2544_v38 = vld [vmem:[#allocation9 + $0x498] sm:$0xff] }
0x1c30   :  { %v5492_v57 = vpop.eup %5491 }
0x1c31   :  { %v1752_v2 = vmul.f32 %v5492_v57, %v6280_v9  ;;  %v1753_v59 = vmul.f32 %v5492_v57, %v6282_v8 }
0x1c33   :  { %v1766_v7 = vmul.f32 %v1762_v61, %v1753_v59  ;;  %v1765_v3 = vmul.f32 %v1758_v53, %v1752_v2  ;;  %v2777_v53 = vld [vmem:[#allocation9 + $0xe0] sm:$0xff] }
0x1c34   :  { %v2778_v61 = vld [vmem:[#allocation9 + $0x120] sm:$0xff]  ;;  %v4821_v57 = vcombine.low %v2776_v34, %v2777_v53  ;;  %v4822_v2 = vcombine.high %v2776_v34, %v2777_v53 }
0x1c35   :  { %v1779_v11 = vadd.f32 %v1775_v15, %v1766_v7  ;;  %v1778_v62 = vadd.f32 %v1771_v22, %v1765_v3  ;;  %v2779_v59 = vld [vmem:[#allocation9 + $0x160] sm:$0xff]  ;;  %v4803_v22 = vcombine.low %v2542_v29, %v2543_v31  ;;  %v2557_v29 = vld [vmem:[#allocation9 + $0x7d8] sm:$0xff]  ;;  %v4833_v31 = vcombine.low %v2788_v55, %v2789_v40 }
0x1c36   :  { %v4824_v15 = vcombine.high %v2778_v61, %v2779_v59  ;;  %v2780_v7 = vld [vmem:[#allocation9 + $0x1a0] sm:$0xff] }
0x1c37   :  { %v1781_v4 = vpack.c.bf16 %v1779_v11, %v1779_v11  ;;  %v1780_v44 = vpack.c.bf16 %v1778_v62, %v1778_v62  ;;  %v2781_v3 = vld [vmem:[#allocation9 + $0x1e0] sm:$0xff]  ;;  %v4806_v11 = vcombine.high %v2544_v38, %v2545_v42  ;;  %v2546_v62 = vld [vmem:[#allocation9 + $0x518] sm:$0xff] }
0x1c38   :  { %v4826_v63 = vcombine.high %v2780_v7, %v2781_v3  ;;  %v2794_v34 = vld [vmem:[#allocation9 + $0x520] sm:$0xff] }
0x1c39   :  { %2515 = vmatprep.mubr.bf16.mxu0 %v1781_v4  ;;  %v2547_v4 = vld [vmem:[#allocation9 + $0x558] sm:$0xff]  ;;  %v2795_v53 = vld [vmem:[#allocation9 + $0x560] sm:$0xff] }
0x1c3a   :  { %2516 = vmatmul.mubr.bf16.vlgmr.msra.gmra.mrb[28].mxu0 %v1780_v44  ;;  %v4823_v44 = vcombine.low %v2778_v61, %v2779_v59  ;;  %v4807_v47 = vcombine.low %v2546_v62, %v2547_v4  ;;  %v2797_v59 = vld [vmem:[#allocation9 + $0x5e0] sm:$0xff] }
0x1c72   :  { %v2021_v9 = vpop.f32.mrb[24].mxu0 }
0x1c73   :  { %v2022_v5 = vadd.f32 %v2021_v9, %v1820_v1  ;;  %v2023_v8 = vpop.f32.mrb[25].mxu0  ;;  %v4805_v1 = vcombine.low %v2544_v38, %v2545_v42  ;;  %v2783_v9 = vld [vmem:[#allocation9 + $0x260] sm:$0xff] }
0x1c74   :  { %v2024_v39 = vadd.f32 %v2023_v8, %v1824_v45  ;;  %v2025_v46 = vpop.f32.mrb[26].mxu0  ;;  %v2782_v45 = vld [vmem:[#allocation9 + $0x220] sm:$0xff]  ;;  %v2548_v8 = vld [vmem:[#allocation9 + $0x598] sm:$0xff] }
0x1c75   :  { %v2026_v32 = vpop.f32.mrb[27].mxu0  ;;  %v2028_v10 = vpack.c.bf16 %v2022_v5, %v2022_v5  ;;  %v4808_v5 = vcombine.high %v2546_v62, %v2547_v4  ;;  %v4825_v46 = vcombine.low %v2780_v7, %v2781_v3  ;;  %v4828_v58 = vcombine.high %v2782_v45, %v2783_v9  ;;  %v2798_v7 = vld [vmem:[#allocation9 + $0x620] sm:$0xff] }
0x1c76   :  { %v2029_v48 = vpack.c.bf16 %v2024_v39, %v2024_v39  ;;  %v2549_v39 = vld [vmem:[#allocation9 + $0x5d8] sm:$0xff]  ;;  %v2784_v32 = vld [vmem:[#allocation9 + $0x2a0] sm:$0xff]  ;;  %v4827_v51 = vcombine.low %v2782_v45, %v2783_v9 }
0x1c77   :  { %v2799_v3 = vld [vmem:[#allocation9 + $0x660] sm:$0xff] }
0x1c78   :  { %2267 = vmatprep.mubr.bf16.mxu1 %v2029_v48  ;;  %v2785_v48 = vld [vmem:[#allocation9 + $0x2e0] sm:$0xff]  ;;  %v4844_v62 = vcombine.high %v2798_v7, %v2799_v3 }
0x1c79   :  { %2268 = vmatmul.mubr.bf16.vlgmr.msra.gmra.mrb[32].mxu1 %v2028_v10  ;;  %v4810_v10 = vcombine.high %v2548_v8, %v2549_v39  ;;  %v4829_v25 = vcombine.low %v2784_v32, %v2785_v48  ;;  %v2800_v4 = vld [vmem:[#allocation9 + $0x6a0] sm:$0xff] }
0x1c7a   :  { %2732 = vmatpush1.bf16.msra.mxu1 %v4787_v43  ;;  %v4820_v43 = vcombine.high %v2774_v36, %v2775_v28  ;;  %v4836_v36 = vcombine.high %v2790_v20, %v2791_v12  ;;  %v2802_v45 = vld [vmem:[#allocation9 + $0x720] sm:$0xff] }
0x1c7b   :  { %2733 = vmatprep.subr.bf16.mxu1 %v4790_v49  ;;  %v2550_v49 = vld [vmem:[#allocation9 + $0x618] sm:$0xff]  ;;  %v2803_v9 = vld [vmem:[#allocation9 + $0x760] sm:$0xff] }
0x1c7c   :  { %3086 = vmatprep.subr.bf16.mxu0 %v4820_v43  ;;  %v2792_v43 = vld [vmem:[#allocation9 + $0x4a0] sm:$0xff] }
0x1c7d   :  { %3087 = vmatpush1.bf16.msra.mxu0 %v4819_v37 }
0x1c7e   :  { %2734 = vmatpush1.bf16.msra.mxu1 %v4789_v35  ;;  %3088 = vmatprep.subr.bf16.mxu0 %v4822_v2  ;;  %v4830_v35 = vcombine.high %v2784_v32, %v2785_v48  ;;  %v2796_v2 = vld [vmem:[#allocation9 + $0x5a0] sm:$0xff] }
0x1c7f   :  { %2735 = vmatprep.subr.bf16.mxu1 %v4792_v14  ;;  %v4809_v14 = vcombine.low %v2548_v8, %v2549_v39  ;;  %v4848_v8 = vcombine.high %v2802_v45, %v2803_v9  ;;  %v4847_v39 = vcombine.low %v2802_v45, %v2803_v9  ;;  %v2311_v48 = vld [vmem:[#allocation13 + $0x24] ss:$8 sm:$0x3] }
0x1c81   :  { %3089 = vmatpush1.bf16.msra.mxu0 %v4821_v57  ;;  %v4840_v57 = vcombine.high %v2794_v34, %v2795_v53 }
0x1c82   :  { %2736 = vmatpush1.bf16.msra.mxu1 %v4791_v21  ;;  %3090 = vmatprep.subr.bf16.mxu0 %v4824_v15  ;;  %v4812_v21 = vcombine.high %v2550_v49, %v2551_v50  ;;  %v4842_v15 = vcombine.high %v2796_v2, %v2797_v59 }
0x1c83   :  { %2737 = vmatprep.subr.bf16.mxu1 %v4794_v23  ;;  %v2552_v23 = vld [vmem:[#allocation9 + $0x698] sm:$0xff] }
0x1c85   :  { %3091 = vmatpush1.bf16.msra.mxu0 %v4823_v44  ;;  %v2801_v44 = vld [vmem:[#allocation9 + $0x6e0] sm:$0xff] }
0x1c86   :  { %2738 = vmatpush1.bf16.msra.mxu1 %v4793_v13  ;;  %3092 = vmatprep.subr.bf16.mxu0 %v4826_v63  ;;  %v4832_v13 = vcombine.high %v2786_v18, %v2787_v19  ;;  %v4843_v63 = vcombine.low %v2798_v7, %v2799_v3  ;;  %v2832_v7 = vld [vmem:[#allocation9 + $0x630] sm:$0xf] }
0x1c87   :  { %2739 = vmatprep.subr.bf16.mxu1 %v4796_v26  ;;  %v4811_v26 = vcombine.low %v2550_v49, %v2551_v50  ;;  %v2320_v49 = vrot.slane %v2311_v48, %v5938_v60  ;;  %v2833_v3 = vld [vmem:[#allocation9 + $0x670] sm:$0xf] }
0x1c89   :  { %3093 = vmatpush1.bf16.msra.mxu0 %v4825_v46  ;;  %v2804_v46 = vld [vmem:[#allocation9 + $0x7a0] sm:$0xff] }
0x1c8a   :  { %2740 = vmatpush1.bf16.msra.mxu1 %v4795_v0  ;;  %3094 = vmatprep.subr.bf16.mxu0 %v4828_v58  ;;  %v4814_v0 = vcombine.high %v2552_v23, %v2553_v24  ;;  %v2805_v58 = vld [vmem:[#allocation9 + $0x7e0] sm:$0xff] }
0x1c8b   :  { %2741 = vmatprep.subr.bf16.mxu1 %v4798_v41  ;;  %v2554_v41 = vld [vmem:[#allocation9 + $0x718] sm:$0xff]  ;;  %v4849_v32 = vcombine.low %v2804_v46, %v2805_v58 }
0x1c8c   :  { %v4815_v28 = vcombine.low %v2554_v41, %v2555_v56 }
0x1c8d   :  { %3095 = vmatpush1.bf16.msra.mxu0 %v4827_v51 }
0x1c8e   :  { %2742 = vmatpush1.bf16.msra.mxu1 %v4797_v33  ;;  %3096 = vmatprep.subr.bf16.mxu0 %v4830_v35  ;;  %v4834_v33 = vcombine.high %v2788_v55, %v2789_v40 }
0x1c8f   :  { %2743 = vmatprep.subr.bf16.mxu1 %v4800_v6  ;;  %v4813_v6 = vcombine.low %v2552_v23, %v2553_v24  ;;  %v2063_v24 = vld [vmem:[#allocation13 + $0x14] ss:$8 sm:$0x3] }
0x1c91   :  { %3097 = vmatpush1.bf16.msra.mxu0 %v4829_v25  ;;  %v2068_v25 = vrot.slane %v2063_v24, %v5881_v16 }
0x1c92   :  { %2744 = vmatpush1.bf16.msra.mxu1 %v4799_v17  ;;  %3098 = vmatprep.subr.bf16.mxu0 %v4832_v13  ;;  %v4816_v17 = vcombine.high %v2554_v41, %v2555_v56  ;;  %v2072_v13 = vrot.slane %v2063_v24, %v5938_v60  ;;  %v5715_v24 = vmov 0.0  }
0x1c93   :  { %2745 = vmatprep.subr.bf16.mxu1 %v4802_v52  ;;  %v2556_v52 = vld [vmem:[#allocation9 + $0x798] sm:$0xff] }
0x1c94   :  { %v4818_v37 = vcombine.high %v2556_v52, %v2557_v29  ;;  %v4817_v42 = vcombine.low %v2556_v52, %v2557_v29  ;;  %v2809_v52 = vld [vmem:[#allocation9 + $0x70] sm:$0xf] }
0x1c95   :  { %3099 = vmatpush1.bf16.msra.mxu0 %v4831_v54  ;;  %v2826_v29 = vld [vmem:[#allocation9 + $0x4b0] sm:$0xf] }
0x1c96   :  { %2746 = vmatpush1.bf16.msra.mxu1 %v4801_v30  ;;  %3100 = vmatprep.subr.bf16.mxu0 %v4834_v33  ;;  %v2793_v30 = vld [vmem:[#allocation9 + $0x4e0] sm:$0xff] }
0x1c97   :  { %2747 = vmatprep.subr.bf16.mxu1 %v4804_v27  ;;  %v4835_v27 = vcombine.low %v2790_v20, %v2791_v12  ;;  %v4838_v38 = vcombine.high %v2792_v43, %v2793_v30  ;;  %v4837_v61 = vcombine.low %v2792_v43, %v2793_v30  ;;  %v2825_v20 = vld [vmem:[#allocation9 + $0x470] sm:$0xf] }
0x1c98   :  { %v2808_v12 = vld [vmem:[#allocation9 + $0x30] sm:$0xf] }
0x1c99   :  { %3101 = vmatpush1.bf16.msra.mxu0 %v4833_v31  ;;  %v2827_v31 = vld [vmem:[#allocation9 + $0x4f0] sm:$0xf] }
0x1c9a   :  { %2748 = vmatpush1.bf16.msra.mxu1 %v4803_v22  ;;  %3102 = vmatprep.subr.bf16.mxu0 %v4836_v36  ;;  %v4839_v22 = vcombine.low %v2794_v34, %v2795_v53  ;;  %v4851_v36 = vcombine.low %v2808_v12, %v2809_v52  ;;  %v2810_v43 = vld [vmem:[#allocation9 + $0xb0] sm:$0xf] }
0x1c9b   :  { %2749 = vmatprep.subr.bf16.mxu1 %v4806_v11  ;;  %v4841_v11 = vcombine.low %v2796_v2, %v2797_v59  ;;  %v2811_v30 = vld [vmem:[#allocation9 + $0xf0] sm:$0xf] }
0x1c9c   :  { %v2812_v34 = vld [vmem:[#allocation9 + $0x130] sm:$0xf] }
0x1c9d   :  { %3103 = vmatpush1.bf16.msra.mxu0 %v4835_v27  ;;  %v2829_v27 = vld [vmem:[#allocation9 + $0x570] sm:$0xf] }
0x1c9e   :  { %2750 = vmatpush1.bf16.msra.mxu1 %v4805_v1  ;;  %3104 = vmatprep.subr.bf16.mxu0 %v4838_v38  ;;  %v4846_v1 = vcombine.high %v2800_v4, %v2801_v44  ;;  %v4852_v38 = vcombine.low %v2810_v43, %v2811_v30  ;;  %v2813_v53 = vld [vmem:[#allocation9 + $0x170] sm:$0xf]  ;;  %v2857_v30 = vld [vmem:[#allocation9 + $0x38] sm:$0xf] }
0x1c9f   :  { %2751 = vmatprep.subr.bf16.mxu1 %v4808_v5  ;;  %v4845_v5 = vcombine.low %v2800_v4, %v2801_v44  ;;  %v4853_v2 = vcombine.low %v2812_v34, %v2813_v53  ;;  %v2816_v4 = vld [vmem:[#allocation9 + $0x230] sm:$0xf] }
0x1ca0   :  { %v2817_v44 = vld [vmem:[#allocation9 + $0x270] sm:$0xf] }
0x1ca1   :  { %3105 = vmatpush1.bf16.msra.mxu0 %v4837_v61  ;;  %v2830_v61 = vld [vmem:[#allocation9 + $0x5b0] sm:$0xf]  ;;  %v4855_v45 = vcombine.low %v2816_v4, %v2817_v44  ;;  %v2879_v4 = vld [vmem:[#allocation9 + $0x5b8] sm:$0xf] }
0x1ca2   :  { %2752 = vmatpush1.bf16.msra.mxu1 %v4807_v47  ;;  %3106 = vmatprep.subr.bf16.mxu0 %v4840_v57  ;;  %v4850_v47 = vcombine.high %v2804_v46, %v2805_v58  ;;  %v2831_v57 = vld [vmem:[#allocation9 + $0x5f0] sm:$0xf]  ;;  %v2880_v44 = vld [vmem:[#allocation9 + $0x5f8] sm:$0xf] }
0x1ca3   :  { %2753 = vmatprep.subr.bf16.mxu1 %v4810_v10  ;;  %v2316_v10 = vrot.slane %v2311_v48, %v5881_v16  ;;  %v4862_v59 = vcombine.low %v2830_v61, %v2831_v57  ;;  %v2836_v46 = vld [vmem:[#allocation9 + $0x730] sm:$0xf] }
0x1ca4   :  { %v2837_v58 = vld [vmem:[#allocation9 + $0x770] sm:$0xf] }
0x1ca5   :  { %3107 = vmatpush1.bf16.msra.mxu0 %v4839_v22  ;;  %v2814_v22 = vld [vmem:[#allocation9 + $0x1b0] sm:$0xf] }
0x1ca6   :  { %2754 = vmatpush1.bf16.msra.mxu1 %v4809_v14  ;;  %3108 = vmatprep.subr.bf16.mxu0 %v4842_v15  ;;  %v2815_v15 = vld [vmem:[#allocation9 + $0x1f0] sm:$0xf] }
0x1ca7   :  { %2755 = vmatprep.subr.bf16.mxu1 %v4812_v21  ;;  %v2821_v48 = vld [vmem:[#allocation9 + $0x370] sm:$0xf] }
0x1ca9   :  { %3109 = vmatpush1.bf16.msra.mxu0 %v4841_v11  ;;  %v4854_v11 = vcombine.low %v2814_v22, %v2815_v15  ;;  %v2877_v22 = vld [vmem:[#allocation9 + $0x538] sm:$0xf] }
0x1caa   :  { %2756 = vmatpush1.bf16.msra.mxu1 %v4811_v26  ;;  %3110 = vmatprep.subr.bf16.mxu0 %v4844_v62  ;;  %v4863_v62 = vcombine.low %v2832_v7, %v2833_v3  ;;  %v2878_v15 = vld [vmem:[#allocation9 + $0x578] sm:$0xf] }
0x1cab   :  { %2757 = vmatprep.subr.bf16.mxu1 %v4814_v0  ;;  %v4877_v3 = vcombine.low %v2877_v22, %v2878_v15 }
0x1cad   :  { %3111 = vmatpush1.bf16.msra.mxu0 %v4843_v63  ;;  %v2834_v63 = vld [vmem:[#allocation9 + $0x6b0] sm:$0xf] }
0x1cae   :  { %2758 = vmatpush1.bf16.msra.mxu1 %v4813_v6  ;;  %3112 = vmatprep.subr.bf16.mxu0 %v4846_v1  ;;  %v2824_v6 = vld [vmem:[#allocation9 + $0x430] sm:$0xf] }
0x1caf   :  { %2759 = vmatprep.subr.bf16.mxu1 %v4816_v17  ;;  %v4859_v17 = vcombine.low %v2824_v6, %v2825_v20  ;;  %v2835_v1 = vld [vmem:[#allocation9 + $0x6f0] sm:$0xf]  ;;  %v2807_v6 = vld [vmem:[#allocation13 + $0x5] ss:$8 sm:$0x3] }
0x1cb0   :  { %v4864_v9 = vcombine.low %v2834_v63, %v2835_v1  ;;  %v2919_v20 = vrot.slane %v2807_v6, %v5881_v16  ;;  %v2923_v12 = vrot.slane %v2807_v6, %v5938_v60  ;;  %v4878_v1 = vcombine.low %v2879_v4, %v2880_v44  ;;  %v5317_v6 = vld [vmem:[#allocation10 + $0x28] ss:$16 sps:$4 sm:$0xff]   ;;  %v5331_v44 = vld [vmem:[#allocation12] ss:$12 sps:$4 sm:$0xff]  }
0x1cb1   :  { %3113 = vmatpush1.bf16.msra.mxu0 %v4845_v5  ;;  %v2818_v5 = vld [vmem:[#allocation9 + $0x2b0] sm:$0xf] }
0x1cb2   :  { %2760 = vmatpush1.bf16.msra.mxu1 %v4815_v28  ;;  %3114 = vmatprep.subr.bf16.mxu0 %v4848_v8  ;;  %v4860_v28 = vcombine.low %v2826_v29, %v2827_v31  ;;  %v2819_v8 = vld [vmem:[#allocation9 + $0x2f0] sm:$0xf] }
0x1cb3   :  { %2761 = vmatprep.subr.bf16.mxu1 %v4818_v37  ;;  %v2828_v37 = vld [vmem:[#allocation9 + $0x530] sm:$0xf] }
0x1cb5   :  { %3115 = vmatpush1.bf16.msra.mxu0 %v4847_v39  ;;  %v4856_v39 = vcombine.low %v2818_v5, %v2819_v8  ;;  %v2881_v5 = vld [vmem:[#allocation9 + $0x638] sm:$0xf] }
0x1cb6   :  { %2762 = vmatpush1.bf16.msra.mxu1 %v4817_v42  ;;  %3116 = vmatprep.subr.bf16.mxu0 %v4850_v47  ;;  %v4861_v42 = vcombine.low %v2828_v37, %v2829_v27  ;;  %v4865_v47 = vcombine.low %v2836_v46, %v2837_v58  ;;  %v2858_v37 = vld [vmem:[#allocation9 + $0x78] sm:$0xf] }
0x1cb7   :  { %4994 = vmatprep.subr.bf16.mxu1 %v4859_v17  ;;  %v4867_v53 = vcombine.low %v2857_v30, %v2858_v37  ;;  %v2882_v8 = vld [vmem:[#allocation9 + $0x678] sm:$0xf]  ;;  %v3655_v30 = vld [vmem:[#allocation9 + $0x68] sm:$0xff] }
0x1cb8   :  { %v4879_v46 = vcombine.low %v2881_v5, %v2882_v8  ;;  %v2865_v58 = vld [vmem:[#allocation9 + $0x238] sm:$0xf] }
0x1cb9   :  { %3117 = vmatpush1.bf16.msra.mxu0 %v4849_v32  ;;  %v2820_v32 = vld [vmem:[#allocation9 + $0x330] sm:$0xf]  ;;  %v5332_v8 = vld [vmem:[#allocation12 + $0x18] ss:$12 sps:$4 sm:$0xff]  }
0x1cba   :  { %5133 = vmatprep.subr.bf16.mxu0 %v5715_v24 }
0x1d0d   :  { %v2517_v50 = vpop.f32.mrb[28].mxu0 }
0x1d0e   :  { %v2518_v51 = vadd.f32 %v2517_v50, %v2316_v10  ;;  %v2519_v35 = vpop.f32.mrb[29].mxu0  ;;  %v4857_v10 = vcombine.low %v2820_v32, %v2821_v48  ;;  %v2839_v50 = vld [vmem:[#allocation9 + $0x7f0] sm:$0xf]  ;;  %v2883_v32 = vld [vmem:[#allocation9 + $0x6b8] sm:$0xf] }
0x1d0f   :  { %v2520_v14 = vadd.f32 %v2519_v35, %v2320_v49  ;;  %v2521_v18 = vpop.f32.mrb[30].mxu0  ;;  %v2838_v49 = vld [vmem:[#allocation9 + $0x7b0] sm:$0xf]  ;;  %v2884_v48 = vld [vmem:[#allocation9 + $0x6f8] sm:$0xf] }
0x1d10   :  { %v2522_v19 = vpop.f32.mrb[31].mxu0  ;;  %v2524_v23 = vpack.c.bf16 %v2518_v51, %v2518_v51  ;;  %v4866_v51 = vcombine.low %v2838_v49, %v2839_v50  ;;  %v2822_v35 = vld [vmem:[#allocation9 + $0x3b0] sm:$0xf]  ;;  %v4880_v49 = vcombine.low %v2883_v32, %v2884_v48  ;;  %v2867_v50 = vld [vmem:[#allocation9 + $0x2b8] sm:$0xf]  ;;  %v3663_v32 = vld [vmem:[#allocation9 + $0x268] sm:$0xff] }
0x1d11   :  { %v2525_v21 = vpack.c.bf16 %v2520_v14, %v2520_v14  ;;  %v2823_v14 = vld [vmem:[#allocation9 + $0x3f0] sm:$0xf]  ;;  %v2873_v19 = vld [vmem:[#allocation9 + $0x438] sm:$0xf] }
0x1d12   :  { %v4858_v18 = vcombine.low %v2822_v35, %v2823_v14  ;;  %v2885_v35 = vld [vmem:[#allocation9 + $0x738] sm:$0xf] }
0x1d13   :  { %2763 = vmatprep.mubr.bf16.mxu1 %v2525_v21  ;;  %v2874_v21 = vld [vmem:[#allocation9 + $0x478] sm:$0xf] }
0x1d14   :  { %2764 = vmatmul.mubr.bf16.vlgmr.msra.gmra.mrb[36].mxu1 %v2524_v23  ;;  %v4875_v23 = vcombine.low %v2873_v19, %v2874_v21  ;;  %v2886_v14 = vld [vmem:[#allocation9 + $0x778] sm:$0xf] }
0x1d15   :  { %4995 = vmatpush3.bf16.msra.mxu1 %v4851_v36  ;;  %v4881_v19 = vcombine.low %v2885_v35, %v2886_v14  ;;  %v2869_v21 = vld [vmem:[#allocation9 + $0x338] sm:$0xf]  ;;  %v3666_v14 = vld [vmem:[#allocation9 + $0x328] sm:$0xff] }
0x1d16   :  { %4996 = vmatprep.subr.bf16.mxu1 %v4860_v28 }
0x1d19   :  { %4997 = vmatpush3.bf16.msra.mxu1 %v4852_v38  ;;  %v2875_v38 = vld [vmem:[#allocation9 + $0x4b8] sm:$0xf] }
0x1d1a   :  { %4998 = vmatprep.subr.bf16.mxu1 %v4861_v42  ;;  %v2876_v42 = vld [vmem:[#allocation9 + $0x4f8] sm:$0xf] }
0x1d1b   :  { %v4876_v57 = vcombine.low %v2875_v38, %v2876_v42  ;;  %v6335_v38 = vld [vmem:[#allocation13 + $0x34] ss:$8 sm:$0x3] }
0x1d1d   :  { %4999 = vmatpush3.bf16.msra.mxu1 %v4853_v2  ;;  %v2859_v2 = vld [vmem:[#allocation9 + $0xb8] sm:$0xf] }
0x1d1e   :  { %5000 = vmatprep.subr.bf16.mxu1 %v4862_v59  ;;  %v2860_v59 = vld [vmem:[#allocation9 + $0xf8] sm:$0xf] }
0x1d1f   :  { %v4868_v7 = vcombine.low %v2859_v2, %v2860_v59 }
0x1d21   :  { %5001 = vmatpush3.bf16.msra.mxu1 %v4854_v11  ;;  %v2861_v11 = vld [vmem:[#allocation9 + $0x138] sm:$0xf] }
0x1d22   :  { %5002 = vmatprep.subr.bf16.mxu1 %v4863_v62  ;;  %v2862_v62 = vld [vmem:[#allocation9 + $0x178] sm:$0xf] }
0x1d23   :  { %v4869_v63 = vcombine.low %v2861_v11, %v2862_v62 }
0x1d25   :  { %5003 = vmatpush3.bf16.msra.mxu1 %v4855_v45  ;;  %v2863_v45 = vld [vmem:[#allocation9 + $0x1b8] sm:$0xf] }
0x1d26   :  { %5004 = vmatprep.subr.bf16.mxu1 %v4864_v9  ;;  %v2864_v9 = vld [vmem:[#allocation9 + $0x1f8] sm:$0xf] }
0x1d29   :  { %5005 = vmatpush3.bf16.msra.mxu1 %v4856_v39  ;;  %v4870_v39 = vcombine.low %v2863_v45, %v2864_v9  ;;  %v3659_v45 = vld [vmem:[#allocation9 + $0x168] sm:$0xff] }
0x1d2a   :  { %5006 = vmatprep.subr.bf16.mxu1 %v4865_v47  ;;  %v2866_v47 = vld [vmem:[#allocation9 + $0x278] sm:$0xf] }
0x1d2d   :  { %5007 = vmatpush3.bf16.msra.mxu1 %v4857_v10  ;;  %v4871_v10 = vcombine.low %v2865_v58, %v2866_v47  ;;  %v3662_v47 = vld [vmem:[#allocation9 + $0x228] sm:$0xff] }
0x1d2e   :  { %5008 = vmatprep.subr.bf16.mxu1 %v4866_v51  ;;  %v2868_v51 = vld [vmem:[#allocation9 + $0x2f8] sm:$0xf] }
0x1d31   :  { %5009 = vmatpush3.bf16.msra.mxu1 %v4858_v18  ;;  %v4872_v18 = vcombine.low %v2867_v50, %v2868_v51  ;;  %v3665_v50 = vld [vmem:[#allocation9 + $0x2e8] sm:$0xff]  ;;  %v4912_v51 = vcombine.low %v3662_v47, %v3663_v32 }
0x1d32   :  { %5016 = vmatprep.subr.bf16.mxu1 %v4875_v23  ;;  %v2870_v23 = vld [vmem:[#allocation9 + $0x378] sm:$0xf] }
0x1d4c   :  { %v2269_v26 = vpop.f32.mrb[32].mxu1 }
0x1d4d   :  { %v2270_v55 = vadd.f32 %v2269_v26, %v2068_v25  ;;  %v2271_v40 = vpop.f32.mrb[33].mxu1  ;;  %v5316_v25 = vld [vmem:[#allocation10] ss:$16 sps:$4 sm:$0xff]  }
0x1d4e   :  { %v2272_v0 = vadd.f32 %v2271_v40, %v2072_v13  ;;  %v2273_v41 = vpop.f32.mrb[34].mxu1  ;;  %v5318_v13 = vld [vmem:[#allocation10 + $0x20] ss:$16 sps:$4 sm:$0xff]  }
0x1d4f   :  { %v2274_v56 = vpop.f32.mrb[35].mxu1  ;;  %v2276_v33 = vpack.c.bf16 %v2270_v55, %v2270_v55  ;;  %v5320_v26 = vld [vmem:[#allocation10 + $0x40] ss:$16 sps:$4 sm:$0xff]  }
0x1d50   :  { %v2277_v54 = vpack.c.bf16 %v2272_v0, %v2272_v0  ;;  %v5322_v55 = vld [vmem:[#allocation10 + $0x60] ss:$16 sps:$4 sm:$0xff]  }
0x1d51   :  { %v5324_v40 = vld [vmem:[#allocation10 + $0x80] ss:$16 sps:$4 sm:$0xff]  }
0x1d52   :  { %3118 = vmatprep.mubr.bf16.mxu0 %v2277_v54  ;;  %v5326_v0 = vld [vmem:[#allocation10 + $0xa0] ss:$16 sps:$4 sm:$0xff]  }
0x1d53   :  { %3119 = vmatmul.mubr.bf16.vlgmr.msra.gmra.mrb[32].mxu0 %v2276_v33 }
0x1d54   :  { %5134 = vmatpush3.bf16.msra.mxu0 %v5316_v25  ;;  %v2887_v25 = vld [vmem:[#allocation9 + $0x7b8] sm:$0xf]  ;;  %5149 = vmatprep.mubr.msk.bf16.mxu0 %vm5716_vm9, %v5715_v24 }
0x1d55   :  { %5135 = vmatprep.subr.bf16.mxu0 %v5715_v24 }
0x1d58   :  { %5136 = vmatpush3.bf16.msra.mxu0 %v5318_v13  ;;  %v2888_v13 = vld [vmem:[#allocation9 + $0x7f8] sm:$0xf] }
0x1d59   :  { %5137 = vmatprep.subr.bf16.mxu0 %v5715_v24 }
0x1d5c   :  { %5138 = vmatpush3.bf16.msra.mxu0 %v5320_v26  ;;  %v4873_v26 = vcombine.low %v2869_v21, %v2870_v23  ;;  %v3668_v23 = vld [vmem:[#allocation9 + $0x3a8] sm:$0xff] }
0x1d5d   :  { %5139 = vmatprep.subr.bf16.mxu0 %v5715_v24 }
0x1d60   :  { %5140 = vmatpush3.bf16.msra.mxu0 %v5322_v55  ;;  %v4882_v55 = vcombine.low %v2887_v25, %v2888_v13  ;;  %v3669_v25 = vld [vmem:[#allocation9 + $0x3e8] sm:$0xff] }
0x1d61   :  { %5141 = vmatprep.subr.bf16.mxu0 %v5715_v24 }
0x1d64   :  { %5142 = vmatpush3.bf16.msra.mxu0 %v5324_v40  ;;  %v2871_v40 = vld [vmem:[#allocation9 + $0x3b8] sm:$0xf] }
0x1d65   :  { %5143 = vmatprep.subr.bf16.mxu0 %v5715_v24 }
0x1d68   :  { %5144 = vmatpush3.bf16.msra.mxu0 %v5326_v0  ;;  %v2872_v0 = vld [vmem:[#allocation9 + $0x3f8] sm:$0xf] }
0x1d69   :  { %5145 = vmatprep.subr.bf16.mxu0 %v5715_v24 }
0x1de7   :  { %v6314_v41 = vpop.f32.mrb[36].mxu1 }
0x1de8   :  { %v6317_v56 = vpop.f32.mrb[37].mxu1 }
0x1de9   :  { %v2769_v54 = vpop.f32.mrb[38].mxu1 }
0x1dea   :  { %v2770_v33 = vpop.f32.mrb[39].mxu1  ;;  %v4874_v54 = vcombine.low %v2871_v40, %v2872_v0  ;;  %v3670_v0 = vld [vmem:[#allocation9 + $0x428] sm:$0xff] }
0x1deb   :  { %v5315_v33 = vld [vmem:[#allocation10 + $0x8] ss:$16 sps:$4 sm:$0xff]  }
0x1e26   :  { %v3120_v17 = vpop.f32.mrb[32].mxu0 }
0x1e27   :  { %v3121_v52 = vadd.f32 %v3120_v17, %v2919_v20  ;;  %v3122_v29 = vpop.f32.mrb[33].mxu0  ;;  %v5319_v20 = vld [vmem:[#allocation10 + $0x48] ss:$16 sps:$4 sm:$0xff]  }
0x1e28   :  { %v3123_v31 = vadd.f32 %v3122_v29, %v2923_v12  ;;  %v3124_v36 = vpop.f32.mrb[34].mxu0  ;;  %v5321_v12 = vld [vmem:[#allocation10 + $0x68] ss:$16 sps:$4 sm:$0xff]  }
0x1e29   :  { %v3127_v28 = vmax.f32 %v3121_v52, 0.0  ;;  %v3125_v43 = vpop.f32.mrb[35].mxu0  ;;  %v5323_v17 = vld [vmem:[#allocation10 + $0x88] ss:$16 sps:$4 sm:$0xff]  }
0x1e2a   :  { %v3128_v27 = vmax.f32 %v3123_v31, 0.0  ;;  %v5325_v52 = vld [vmem:[#allocation10 + $0xa8] ss:$16 sps:$4 sm:$0xff]   ;;  %v5328_v31 = vld [vmem:[#allocation10 + $0xc0] ss:$16 sps:$4 sm:$0xff]  }
0x1e2b   :  { %v3129_v61 = vpack.c.bf16 %v3127_v28, %v3127_v28  ;;  %v5327_v29 = vld [vmem:[#allocation10 + $0xc8] ss:$16 sps:$4 sm:$0xff]   ;;  %5146 = vmatpush3.bf16.msra.mxu0 %v5328_v31  ;;  %v5330_v28 = vld [vmem:[#allocation10 + $0xe0] ss:$16 sps:$4 sm:$0xff]  }
0x1e2c   :  { %v3130_v34 = vpack.c.bf16 %v3128_v27, %v3128_v27  ;;  %5147 = vmatprep.subr.bf16.mxu0 %v5715_v24  ;;  %v5329_v36 = vld [vmem:[#allocation10 + $0xe8] ss:$16 sps:$4 sm:$0xff]  }
0x1e2d   :  { %v3654_v43 = vld [vmem:[#allocation9 + $0x28] sm:$0xff] }
0x1e2e   :  { %3259 = vmatprep.mubr.bf16.mxu1 %v3130_v34  ;;  %v4904_v37 = vcombine.low %v3654_v43, %v3655_v30  ;;  %v4905_v27 = vcombine.high %v3654_v43, %v3655_v30  ;;  %v3675_v43 = vld [vmem:[#allocation9 + $0x568] sm:$0xff] }
0x1e2f   :  { %3260 = vmatmul.mubr.bf16.vlgmr.msra.gmra.mrb[40].mxu1 %v3129_v61  ;;  %5148 = vmatpush3.bf16.msra.mxu0 %v5330_v28  ;;  %v3674_v28 = vld [vmem:[#allocation9 + $0x528] sm:$0xff] }
0x1e30   :  { %5017 = vmatpush3.bf16.msra.mxu1 %v4867_v53  ;;  %3397 = vmatprep.mubr.bf16.mxu1 %v3130_v34  ;;  %v2568_v34 = vrot.slane %v6335_v38, %v5938_v60  ;;  %v2840_v53 = vld [vmem:[#allocation13 + $0x6] ss:$0 sm:$0xff] }
0x1e31   :  { %5018 = vmatprep.subr.bf16.mxu1 %v4876_v57  ;;  %5173 = vmatprep.subr.bf16.mxu0 %v5715_v24 }
0x1e32   :  { %v2768_v15 = vadd.f32 %v6317_v56, %v2568_v34  ;;  %v3661_v56 = vld [vmem:[#allocation9 + $0x1e8] sm:$0xff]  ;;  %v4924_v34 = vcombine.low %v3674_v28, %v3675_v43 }
0x1e34   :  { %5019 = vmatpush3.bf16.msra.mxu1 %v4868_v7  ;;  %v3656_v7 = vld [vmem:[#allocation9 + $0xa8] sm:$0xff] }
0x1e35   :  { %5020 = vmatprep.subr.bf16.mxu1 %v4877_v3  ;;  %v3657_v3 = vld [vmem:[#allocation9 + $0xe8] sm:$0xff] }
0x1e36   :  { %v4907_v4 = vcombine.high %v3656_v7, %v3657_v3  ;;  %v4906_v9 = vcombine.low %v3656_v7, %v3657_v3 }
0x1e38   :  { %5021 = vmatpush3.bf16.msra.mxu1 %v4869_v63  ;;  %v2773_v63 = vpack.c.bf16 %v2768_v15, %v2768_v15  ;;  %v3681_v15 = vld [vmem:[#allocation9 + $0x6e8] sm:$0xff] }
0x1e39   :  { %5022 = vmatprep.subr.bf16.mxu1 %v4878_v1  ;;  %v3658_v1 = vld [vmem:[#allocation9 + $0x128] sm:$0xff] }
0x1e3a   :  { %v4909_v5 = vcombine.high %v3658_v1, %v3659_v45 }
0x1e3c   :  { %5023 = vmatpush3.bf16.msra.mxu1 %v4870_v39  ;;  %v3660_v39 = vld [vmem:[#allocation9 + $0x1a8] sm:$0xff] }
0x1e3d   :  { %5024 = vmatprep.subr.bf16.mxu1 %v4879_v46  ;;  %v4908_v46 = vcombine.low %v3658_v1, %v3659_v45  ;;  %v4911_v58 = vcombine.high %v3660_v39, %v3661_v56  ;;  %v4910_v48 = vcombine.low %v3660_v39, %v3661_v56  ;;  %v3685_v1 = vld [vmem:[#allocation9 + $0x7e8] sm:$0xff] }
0x1e40   :  { %5025 = vmatpush3.bf16.msra.mxu1 %v4871_v10  ;;  %v4913_v10 = vcombine.high %v3662_v47, %v3663_v32  ;;  %v3705_v47 = vld [vmem:[#allocation9 + $0x474] sm:$0xf] }
0x1e41   :  { %5026 = vmatprep.subr.bf16.mxu1 %v4880_v49  ;;  %v3664_v49 = vld [vmem:[#allocation9 + $0x2a8] sm:$0xff] }
0x1e42   :  { %v4915_v35 = vcombine.high %v3664_v49, %v3665_v50 }
0x1e44   :  { %5027 = vmatpush3.bf16.msra.mxu1 %v4872_v18  ;;  %v3667_v18 = vld [vmem:[#allocation9 + $0x368] sm:$0xff] }
0x1e45   :  { %5028 = vmatprep.subr.bf16.mxu1 %v4881_v19  ;;  %v4914_v19 = vcombine.low %v3664_v49, %v3665_v50  ;;  %v4917_v21 = vcombine.high %v3666_v14, %v3667_v18  ;;  %v4916_v13 = vcombine.low %v3666_v14, %v3667_v18 }
0x1e48   :  { %5029 = vmatpush3.bf16.msra.mxu1 %v4873_v26 }
0x1e49   :  { %5030 = vmatprep.subr.bf16.mxu1 %v4882_v55  ;;  %v4919_v55 = vcombine.high %v3668_v23, %v3669_v25 }
0x1e4c   :  { %5031 = vmatpush3.bf16.msra.mxu1 %v4874_v54  ;;  %v3671_v54 = vld [vmem:[#allocation9 + $0x468] sm:$0xff] }
0x1e4d   :  { %5153 = vmatprep.subr.bf16.mxu1 %v5715_v24  ;;  %v4920_v31 = vcombine.low %v3670_v0, %v3671_v54 }
0x1e4f   :  { %3398 = vmatmul.mubr.bf16.vlgmr.msra.gmra.mrb[44].mxu1 %v3129_v61 }
0x1e50   :  { %5154 = vmatpush3.bf16.msra.mxu1 %v5315_v33  ;;  %5169 = vmatprep.mubr.msk.bf16.mxu1 %vm5716_vm9, %v5715_v24 }
0x1e51   :  { %5155 = vmatprep.subr.bf16.mxu1 %v5715_v24 }
0x1e54   :  { %5156 = vmatpush3.bf16.msra.mxu1 %v5317_v6 }
0x1e55   :  { %5157 = vmatprep.subr.bf16.mxu1 %v5715_v24 }
0x1e58   :  { %5158 = vmatpush3.bf16.msra.mxu1 %v5319_v20 }
0x1e59   :  { %5159 = vmatprep.subr.bf16.mxu1 %v5715_v24 }
0x1e5c   :  { %5160 = vmatpush3.bf16.msra.mxu1 %v5321_v12  ;;  %v4918_v12 = vcombine.low %v3668_v23, %v3669_v25  ;;  %v3688_v23 = vld [vmem:[#allocation9 + $0x34] sm:$0xf] }
0x1e5d   :  { %5161 = vmatprep.subr.bf16.mxu1 %v5715_v24  ;;  %v3689_v25 = vld [vmem:[#allocation9 + $0x74] sm:$0xf] }
0x1e60   :  { %5162 = vmatpush3.bf16.msra.mxu1 %v5323_v17  ;;  %v4921_v17 = vcombine.high %v3670_v0, %v3671_v54 }
0x1e61   :  { %5163 = vmatprep.subr.bf16.mxu1 %v5715_v24 }
0x1e64   :  { %5164 = vmatpush3.bf16.msra.mxu1 %v5325_v52  ;;  %v3672_v52 = vld [vmem:[#allocation9 + $0x4a8] sm:$0xff] }
0x1e65   :  { %5165 = vmatprep.subr.bf16.mxu1 %v5715_v24 }
0x1e68   :  { %5166 = vmatpush3.bf16.msra.mxu1 %v5327_v29  ;;  %v3673_v29 = vld [vmem:[#allocation9 + $0x4e8] sm:$0xff] }
0x1e69   :  { %5167 = vmatprep.subr.bf16.mxu1 %v5715_v24  ;;  %v4922_v30 = vcombine.low %v3672_v52, %v3673_v29 }
0x1e6c   :  { %5168 = vmatpush3.bf16.msra.mxu1 %v5329_v36  ;;  %v4923_v36 = vcombine.high %v3672_v52, %v3673_v29  ;;  %v3692_v29 = vld [vmem:[#allocation9 + $0x134] sm:$0xf] }
0x1e6d   :  { %3966 = vmatprep.subr.bf16.mxu1 %v4905_v27  ;;  %v3676_v27 = vld [vmem:[#allocation9 + $0x5a8] sm:$0xff] }
0x1f02   :  { %v5010_v42 = vpop.f32.mrb[40].mxu1 }
0x1f03   :  { %v5011_v61 = vpop.f32.mrb[41].mxu1 }
0x1f04   :  { %v5012_v57 = vadd.f32 %v5011_v61, %v5010_v42  ;;  %v5013_v2 = vpop.f32.mrb[42].mxu1  ;;  %v3677_v42 = vld [vmem:[#allocation9 + $0x5e8] sm:$0xff] }
0x1f05   :  { %v5014_v59 = vpop.f32.mrb[43].mxu1  ;;  %v3678_v61 = vld [vmem:[#allocation9 + $0x628] sm:$0xff]  ;;  %v4926_v2 = vcombine.low %v3676_v27, %v3677_v42 }
0x1f06   :  { %v3262_v22 = vadd.f32 %v5012_v57, %v2840_v53  ;;  %v4927_v53 = vcombine.high %v3676_v27, %v3677_v42  ;;  %v3679_v57 = vld [vmem:[#allocation9 + $0x668] sm:$0xff]  ;;  %v3695_v27 = vld [vmem:[#allocation9 + $0x1f4] sm:$0xf] }
0x1f07   :  { %v4929_v59 = vcombine.high %v3678_v61, %v3679_v57  ;;  %v4928_v7 = vcombine.low %v3678_v61, %v3679_v57  ;;  %v3712_v42 = vld [vmem:[#allocation9 + $0x634] sm:$0xf] }
0x1f08   :  { %v3267_v11 = vmax.f32 %v3262_v22, 0.0  ;;  %v3680_v22 = vld [vmem:[#allocation9 + $0x6a8] sm:$0xff]  ;;  %v3696_v57 = vld [vmem:[#allocation9 + $0x234] sm:$0xf] }
0x1f09   :  { %v4931_v3 = vcombine.high %v3680_v22, %v3681_v15 }
0x1f0a   :  { %v3268_v62 = vpack.c.bf16 %v3267_v11, %v3267_v11  ;;  %v3682_v11 = vld [vmem:[#allocation9 + $0x728] sm:$0xff] }
0x1f0c   :  { %5150 = vmatmul.mubr.bf16.vlgmr.msra.gmra.mrb[36].mxu0 %v3268_v62  ;;  %5170 = vmatmul.mubr.bf16.vlgmr.msra.gmra.mrb[48].mxu1 %v3268_v62  ;;  %v3683_v62 = vld [vmem:[#allocation9 + $0x768] sm:$0xff] }
0x1f0d   :  { %3967 = vmatpush1.bf16.msra.mxu1 %v4904_v37  ;;  %3998 = vmatprep.mubr.bf16.mxu1 %v2773_v63  ;;  %v4925_v37 = vcombine.high %v3674_v28, %v3675_v43  ;;  %v3684_v63 = vld [vmem:[#allocation9 + $0x7a8] sm:$0xff]  ;;  %v4932_v45 = vcombine.low %v3682_v11, %v3683_v62  ;;  %v3711_v28 = vld [vmem:[#allocation9 + $0x5f4] sm:$0xf] }
0x1f0e   :  { %3968 = vmatprep.subr.bf16.mxu1 %v4907_v4  ;;  %5174 = vmatpush3.bf16.msra.mxu0 %v5331_v44  ;;  %v4930_v4 = vcombine.low %v3680_v22, %v3681_v15  ;;  %v4933_v44 = vcombine.high %v3682_v11, %v3683_v62  ;;  %v3715_v22 = vld [vmem:[#allocation9 + $0x6f4] sm:$0xf] }
0x1f0f   :  { %5175 = vmatprep.subr.bf16.mxu0 %v5715_v24  ;;  %5181 = vmatprep.mubr.msk.bf16.mxu0 %vm5716_vm9, %v5715_v24  ;;  %v3699_v11 = vld [vmem:[#allocation9 + $0x2f4] sm:$0xf] }
0x1f10   :  { %v3716_v62 = vld [vmem:[#allocation9 + $0x734] sm:$0xf] }
0x1f11   :  { %3969 = vmatpush1.bf16.msra.mxu1 %v4906_v9  ;;  %v2564_v9 = vrot.slane %v6335_v38, %v5881_v16  ;;  %v5334_v38 = vld [vmem:[#allocation12 + $0x48] ss:$12 sps:$4 sm:$0xff]  }
0x1f12   :  { %3970 = vmatprep.subr.bf16.mxu1 %v4909_v5  ;;  %5176 = vmatpush3.bf16.msra.mxu0 %v5332_v8  ;;  %v4935_v5 = vcombine.high %v3684_v63, %v3685_v1  ;;  %v4934_v8 = vcombine.low %v3684_v63, %v3685_v1  ;;  %v3700_v1 = vld [vmem:[#allocation9 + $0x334] sm:$0xf] }
0x1f13   :  { %5177 = vmatprep.subr.bf16.mxu0 %v5715_v24  ;;  %v2766_v39 = vadd.f32 %v6314_v41, %v2564_v9  ;;  %v2889_v41 = vld [vmem:[#allocation13 + $0x7] ss:$0 sm:$0xff]  ;;  %v3718_v9 = vld [vmem:[#allocation9 + $0x7b4] sm:$0xf] }
0x1f15   :  { %3971 = vmatpush1.bf16.msra.mxu1 %v4908_v46  ;;  %v2772_v56 = vpack.c.bf16 %v2766_v39, %v2766_v39  ;;  %v5333_v46 = vld [vmem:[#allocation12 + $0x30] ss:$12 sps:$4 sm:$0xff]  }
0x1f16   :  { %3972 = vmatprep.subr.bf16.mxu1 %v4911_v58  ;;  %5178 = vmatpush3.bf16.msra.mxu0 %v5333_v46  ;;  %v3704_v58 = vld [vmem:[#allocation9 + $0x434] sm:$0xf] }
0x1f17   :  { %5179 = vmatprep.subr.bf16.mxu0 %v5715_v24  ;;  %v4944_v32 = vcombine.low %v3704_v58, %v3705_v47  ;;  %v3703_v46 = vld [vmem:[#allocation9 + $0x3f4] sm:$0xf]  ;;  %v3754_v58 = vld [vmem:[#allocation9 + $0x47c] sm:$0xf] }
0x1f19   :  { %3973 = vmatpush1.bf16.msra.mxu1 %v4910_v48 }
0x1f1a   :  { %3974 = vmatprep.subr.bf16.mxu1 %v4913_v10  ;;  %5180 = vmatpush3.bf16.msra.mxu0 %v5334_v38  ;;  %v3753_v38 = vld [vmem:[#allocation9 + $0x43c] sm:$0xf] }
0x1f1b   :  { %5061 = vmatprep.subr.bf16.mxu0 %v4944_v32  ;;  %v4960_v32 = vcombine.low %v3753_v38, %v3754_v58  ;;  %v5335_v38 = vld [vmem:[#allocation10 + $0x4] ss:$16 sps:$4 sm:$0xff]  }
0x1f1c   :  { %v5337_v58 = vld [vmem:[#allocation10 + $0x24] ss:$16 sps:$4 sm:$0xff]  }
0x1f1d   :  { %3975 = vmatpush1.bf16.msra.mxu1 %v4912_v51 }
0x1f1e   :  { %3976 = vmatprep.subr.bf16.mxu1 %v4915_v35 }
0x1f21   :  { %3977 = vmatpush1.bf16.msra.mxu1 %v4914_v19 }
0x1f22   :  { %v5032_v26 = vpop.f32.mrb[44].mxu1  ;;  %3978 = vmatprep.subr.bf16.mxu1 %v4917_v21 }
0x1f23   :  { %v5033_v40 = vpop.f32.mrb[45].mxu1 }
0x1f24   :  { %v6344_v33 = vadd.f32 %v5033_v40, %v5032_v26  ;;  %v5035_v6 = vpop.f32.mrb[46].mxu1  ;;  %v3707_v26 = vld [vmem:[#allocation9 + $0x4f4] sm:$0xf]  ;;  %v4936_v40 = vcombine.low %v3688_v23, %v3689_v25  ;;  %v3737_v23 = vld [vmem:[#allocation9 + $0x3c] sm:$0xf] }
0x1f25   :  { %v5036_v20 = vpop.f32.mrb[47].mxu1  ;;  %3979 = vmatpush1.bf16.msra.mxu1 %v4916_v13  ;;  %v3706_v13 = vld [vmem:[#allocation9 + $0x4b4] sm:$0xf]  ;;  %v3738_v25 = vld [vmem:[#allocation9 + $0x7c] sm:$0xf] }
0x1f26   :  { %3980 = vmatprep.subr.bf16.mxu1 %v4919_v55  ;;  %v4945_v54 = vcombine.low %v3706_v13, %v3707_v26  ;;  %v3690_v6 = vld [vmem:[#allocation9 + $0xb4] sm:$0xf]  ;;  %v3755_v26 = vld [vmem:[#allocation9 + $0x4bc] sm:$0xf] }
0x1f27   :  { %v3691_v20 = vld [vmem:[#allocation9 + $0xf4] sm:$0xf] }
0x1f29   :  { %3981 = vmatpush1.bf16.msra.mxu1 %v4918_v12  ;;  %v3708_v12 = vld [vmem:[#allocation9 + $0x534] sm:$0xf] }
0x1f2a   :  { %3982 = vmatprep.subr.bf16.mxu1 %v4921_v17  ;;  %v3709_v17 = vld [vmem:[#allocation9 + $0x574] sm:$0xf] }
0x1f2b   :  { %v4946_v52 = vcombine.low %v3708_v12, %v3709_v17  ;;  %v3758_v12 = vld [vmem:[#allocation9 + $0x57c] sm:$0xf] }
0x1f2d   :  { %3983 = vmatpush1.bf16.msra.mxu1 %v4920_v31  ;;  %v3693_v31 = vld [vmem:[#allocation9 + $0x174] sm:$0xf] }
0x1f2e   :  { %3984 = vmatprep.subr.bf16.mxu1 %v4923_v36  ;;  %v3710_v36 = vld [vmem:[#allocation9 + $0x5b4] sm:$0xf]  ;;  %v4938_v43 = vcombine.low %v3692_v29, %v3693_v31  ;;  %v3742_v29 = vld [vmem:[#allocation9 + $0x17c] sm:$0xf] }
0x1f2f   :  { %v3759_v31 = vld [vmem:[#allocation9 + $0x5bc] sm:$0xf] }
0x1f31   :  { %3985 = vmatpush1.bf16.msra.mxu1 %v4922_v30  ;;  %v4947_v30 = vcombine.low %v3710_v36, %v3711_v28  ;;  %v3760_v36 = vld [vmem:[#allocation9 + $0x5fc] sm:$0xf] }
0x1f32   :  { %3986 = vmatprep.subr.bf16.mxu1 %v4925_v37  ;;  %v3694_v37 = vld [vmem:[#allocation9 + $0x1b4] sm:$0xf] }
0x1f35   :  { %3987 = vmatpush1.bf16.msra.mxu1 %v4924_v34  ;;  %v3713_v34 = vld [vmem:[#allocation9 + $0x674] sm:$0xf] }
0x1f36   :  { %3988 = vmatprep.subr.bf16.mxu1 %v4927_v53  ;;  %v4939_v53 = vcombine.low %v3694_v37, %v3695_v27  ;;  %v4948_v61 = vcombine.low %v3712_v42, %v3713_v34  ;;  %v3744_v37 = vld [vmem:[#allocation9 + $0x1fc] sm:$0xf] }
0x1f37   :  { %v3761_v27 = vld [vmem:[#allocation9 + $0x63c] sm:$0xf] }
0x1f38   :  { %v3762_v42 = vld [vmem:[#allocation9 + $0x67c] sm:$0xf] }
0x1f39   :  { %3989 = vmatpush1.bf16.msra.mxu1 %v4926_v2  ;;  %v3697_v2 = vld [vmem:[#allocation9 + $0x274] sm:$0xf] }
0x1f3a   :  { %3990 = vmatprep.subr.bf16.mxu1 %v4929_v59  ;;  %v3714_v59 = vld [vmem:[#allocation9 + $0x6b4] sm:$0xf]  ;;  %v4940_v15 = vcombine.low %v3696_v57, %v3697_v2  ;;  %v3746_v57 = vld [vmem:[#allocation9 + $0x27c] sm:$0xf] }
0x1f3b   :  { %v3763_v2 = vld [vmem:[#allocation9 + $0x6bc] sm:$0xf] }
0x1f3d   :  { %3991 = vmatpush1.bf16.msra.mxu1 %v4928_v7  ;;  %v4949_v7 = vcombine.low %v3714_v59, %v3715_v22  ;;  %v3764_v59 = vld [vmem:[#allocation9 + $0x6fc] sm:$0xf] }
0x1f3e   :  { %3992 = vmatprep.subr.bf16.mxu1 %v4931_v3  ;;  %v3698_v3 = vld [vmem:[#allocation9 + $0x2b4] sm:$0xf] }
0x1f41   :  { %3993 = vmatpush1.bf16.msra.mxu1 %v4930_v4  ;;  %v3717_v4 = vld [vmem:[#allocation9 + $0x774] sm:$0xf] }
0x1f42   :  { %3994 = vmatprep.subr.bf16.mxu1 %v4933_v44  ;;  %v4941_v44 = vcombine.low %v3698_v3, %v3699_v11  ;;  %v4950_v63 = vcombine.low %v3716_v62, %v3717_v4  ;;  %v3748_v3 = vld [vmem:[#allocation9 + $0x2fc] sm:$0xf] }
0x1f43   :  { %v3765_v11 = vld [vmem:[#allocation9 + $0x73c] sm:$0xf] }
0x1f44   :  { %v3766_v62 = vld [vmem:[#allocation9 + $0x77c] sm:$0xf] }
0x1f45   :  { %3995 = vmatpush1.bf16.msra.mxu1 %v4932_v45  ;;  %v3701_v45 = vld [vmem:[#allocation9 + $0x374] sm:$0xf] }
0x1f46   :  { %3996 = vmatprep.subr.bf16.mxu1 %v4935_v5  ;;  %v3719_v5 = vld [vmem:[#allocation9 + $0x7f4] sm:$0xf] }
0x1f47   :  { %v4951_v39 = vcombine.low %v3718_v9, %v3719_v5  ;;  %v3768_v9 = vld [vmem:[#allocation9 + $0x7fc] sm:$0xf] }
0x1f49   :  { %3997 = vmatpush1.bf16.msra.mxu1 %v4934_v8  ;;  %v4942_v8 = vcombine.low %v3700_v1, %v3701_v45  ;;  %v3750_v1 = vld [vmem:[#allocation9 + $0x37c] sm:$0xf] }
0x1f4a   :  { %5185 = vmatprep.subr.bf16.mxu1 %v5715_v24  ;;  %v3767_v45 = vld [vmem:[#allocation9 + $0x7bc] sm:$0xf] }
0x1f4c   :  { %3999 = vmatmul.mubr.bf16.vlgmr.msra.gmra.mrb[52].mxu1 %v2772_v56  ;;  %v3702_v56 = vld [vmem:[#allocation9 + $0x3b4] sm:$0xf] }
0x1f4d   :  { %5201 = vmatprep.mubr.msk.bf16.mxu1 %vm5716_vm9, %v5715_v24  ;;  %v4943_v47 = vcombine.low %v3702_v56, %v3703_v46  ;;  %v3752_v56 = vld [vmem:[#allocation9 + $0x3fc] sm:$0xf]  ;;  %5186 = vmatpush3.bf16.msra.mxu1 %v5335_v38 }
0x1f4e   :  { %5187 = vmatprep.subr.bf16.mxu1 %v5715_v24 }
0x1f51   :  { %5188 = vmatpush3.bf16.msra.mxu1 %v5337_v58 }
0x1f52   :  { %5189 = vmatprep.subr.bf16.mxu1 %v5715_v24 }
0x1fdf   :  { %v3487_v48 = vpop.f32.mrb[36].mxu0  ;;  %v6353_v10 = vpop.f32.mrb[48].mxu1 }
0x1fe0   :  { %v3488_v49 = vadd.f32 %v6344_v33, %v3487_v48  ;;  %v5151_v50 = vpop.f32.mrb[37].mxu0  ;;  %v5171_v51 = vpop.f32.mrb[49].mxu1  ;;  %v4937_v33 = vcombine.low %v3690_v6, %v3691_v20  ;;  %v3740_v20 = vld [vmem:[#allocation9 + $0xfc] sm:$0xf] }
0x1fe1   :  { %v3490_v35 = vpop.f32.mrb[38].mxu0  ;;  %v3581_v14 = vpop.f32.mrb[50].mxu1 }
0x1fe2   :  { %v3493_v18 = vadd.f32 %v3488_v49, %v2889_v41  ;;  %v5152_v19 = vpop.f32.mrb[39].mxu0  ;;  %v5172_v21 = vpop.f32.mrb[51].mxu1  ;;  %v3687_v41 = vld [vmem:[#allocation13 + $0x15] ss:$8 sm:$0x3] }
0x1fe3   :  { %v3799_v48 = vrot.slane %v3687_v41, %v5881_v16  ;;  %v3803_v49 = vrot.slane %v3687_v41, %v5938_v60  ;;  %v3739_v16 = vld [vmem:[#allocation9 + $0xbc] sm:$0xf] }
0x1fe4   :  { %v3494_v55 = vmax.f32 %v3493_v18, 0.0  ;;  %v3757_v60 = vld [vmem:[#allocation9 + $0x53c] sm:$0xf]  ;;  %v4953_v17 = vcombine.low %v3739_v16, %v3740_v20 }
0x1fe5   :  { %v5338_v41 = vld [vmem:[#allocation10 + $0x2c] ss:$16 sps:$4 sm:$0xff]  }
0x1fe6   :  { %v3495_v0 = vpack.c.bf16 %v3494_v55, %v3494_v55  ;;  %v3756_v55 = vld [vmem:[#allocation9 + $0x4fc] sm:$0xf] }
0x1fe7   :  { %v4961_v6 = vcombine.low %v3755_v26, %v3756_v55 }
0x1fe8   :  { %5182 = vmatmul.mubr.msk.bf16.vlgmr.msra.gmra.mrb[40].mxu0 %vm655_vm1, %v3495_v0  ;;  %v4952_v0 = vcombine.low %v3737_v23, %v3738_v25  ;;  %v5349_v23 = vld [vmem:[#allocation10 + $0xe4] ss:$16 sps:$4 sm:$0xff]   ;;  %v5350_v25 = vld [vmem:[#allocation10 + $0xec] ss:$16 sps:$4 sm:$0xff]  }
0x1fe9   :  { %5062 = vmatpush3.bf16.msra.mxu0 %v4936_v40 }
0x1fea   :  { %5063 = vmatprep.subr.bf16.mxu0 %v4945_v54 }
0x1fed   :  { %5064 = vmatpush3.bf16.msra.mxu0 %v4937_v33  ;;  %v4962_v33 = vcombine.low %v3757_v60, %v3758_v12 }
0x1fee   :  { %5065 = vmatprep.subr.bf16.mxu0 %v4946_v52  ;;  %v3741_v52 = vld [vmem:[#allocation9 + $0x13c] sm:$0xf] }
0x1fef   :  { %v4954_v28 = vcombine.low %v3741_v52, %v3742_v29  ;;  %v5351_v52 = vld [vmem:[#allocation12 + $0x4] ss:$12 sps:$4 sm:$0xff]  }
0x1ff1   :  { %5066 = vmatpush3.bf16.msra.mxu0 %v4938_v43  ;;  %v4963_v43 = vcombine.low %v3759_v31, %v3760_v36  ;;  %v5352_v31 = vld [vmem:[#allocation12 + $0x1c] ss:$12 sps:$4 sm:$0xff]  }
0x1ff2   :  { %5067 = vmatprep.subr.bf16.mxu0 %v4947_v30  ;;  %v3743_v30 = vld [vmem:[#allocation9 + $0x1bc] sm:$0xf] }
0x1ff3   :  { %v4955_v34 = vcombine.low %v3743_v30, %v3744_v37  ;;  %v5353_v37 = vld [vmem:[#allocation12 + $0x34] ss:$12 sps:$4 sm:$0xff]  }
0x1ff5   :  { %5068 = vmatpush3.bf16.msra.mxu0 %v4939_v53  ;;  %v4964_v53 = vcombine.low %v3761_v27, %v3762_v42  ;;  %v5354_v27 = vld [vmem:[#allocation12 + $0x4c] ss:$12 sps:$4 sm:$0xff]  }
0x1ff6   :  { %5069 = vmatprep.subr.bf16.mxu0 %v4948_v61  ;;  %v3745_v61 = vld [vmem:[#allocation9 + $0x23c] sm:$0xf]  ;;  %v3769_v42 = vld [vmem:[#allocation13 + $0xf] ss:$0 sm:$0xff] }
0x1ff7   :  { %v4956_v22 = vcombine.low %v3745_v61, %v3746_v57 }
0x1ff9   :  { %5070 = vmatpush3.bf16.msra.mxu0 %v4940_v15  ;;  %v4965_v15 = vcombine.low %v3763_v2, %v3764_v59 }
0x1ffa   :  { %5071 = vmatprep.subr.bf16.mxu0 %v4949_v7  ;;  %v3747_v7 = vld [vmem:[#allocation9 + $0x2bc] sm:$0xf] }
0x1ffb   :  { %v4957_v4 = vcombine.low %v3747_v7, %v3748_v3 }
0x1ffd   :  { %5072 = vmatpush3.bf16.msra.mxu0 %v4941_v44  ;;  %v4966_v44 = vcombine.low %v3765_v11, %v3766_v62 }
0x1ffe   :  { %5073 = vmatprep.subr.bf16.mxu0 %v4950_v63  ;;  %v3749_v63 = vld [vmem:[#allocation9 + $0x33c] sm:$0xf] }
0x1fff   :  { %v4958_v5 = vcombine.low %v3749_v63, %v3750_v1  ;;  %v5357_v63 = vld [vmem:[#allocation12 + $0x38] ss:$12 sps:$4 sm:$0xff]   ;;  %v5358_v1 = vld [vmem:[#allocation12 + $0x50] ss:$12 sps:$4 sm:$0xff]  }
0x2001   :  { %5074 = vmatpush3.bf16.msra.mxu0 %v4942_v8  ;;  %v4967_v8 = vcombine.low %v3767_v45, %v3768_v9  ;;  %v3794_v9 = vld [vmem:[#allocation13 + $0x1f] ss:$0 sm:$0xff] }
0x2002   :  { %5075 = vmatprep.subr.bf16.mxu0 %v4951_v39  ;;  %v3751_v39 = vld [vmem:[#allocation9 + $0x3bc] sm:$0xf] }
0x2003   :  { %v4959_v46 = vcombine.low %v3751_v39, %v3752_v56 }
0x2005   :  { %5076 = vmatpush3.bf16.msra.mxu0 %v4943_v47  ;;  %v5336_v47 = vld [vmem:[#allocation10 + $0xc] ss:$16 sps:$4 sm:$0xff]  }
0x2006   :  { %5083 = vmatprep.subr.bf16.mxu0 %v4960_v32  ;;  %v5339_v32 = vld [vmem:[#allocation10 + $0x44] ss:$16 sps:$4 sm:$0xff]  }
0x2007   :  { %5190 = vmatpush3.bf16.msra.mxu1 %v5339_v32 }
0x2008   :  { %5191 = vmatprep.subr.bf16.mxu1 %v5715_v24 }
0x201f   :  { %v4000_v50 = vpop.f32.mrb[52].mxu1 }
0x2020   :  { %v4001_v51 = vadd.f32 %v4000_v50, %v3799_v48  ;;  %v4002_v35 = vpop.f32.mrb[53].mxu1  ;;  %v5341_v48 = vld [vmem:[#allocation10 + $0x64] ss:$16 sps:$4 sm:$0xff]  }
0x2021   :  { %v4003_v14 = vadd.f32 %v4002_v35, %v3803_v49  ;;  %v4004_v18 = vpop.f32.mrb[54].mxu1  ;;  %v5340_v49 = vld [vmem:[#allocation10 + $0x4c] ss:$16 sps:$4 sm:$0xff]   ;;  %5192 = vmatpush3.bf16.msra.mxu1 %v5341_v48  ;;  %v5343_v50 = vld [vmem:[#allocation10 + $0x84] ss:$16 sps:$4 sm:$0xff]  }
0x2022   :  { %v4007_v19 = vmax.f32 %v4001_v51, 0.0  ;;  %v4005_v21 = vpop.f32.mrb[55].mxu1  ;;  %v5342_v51 = vld [vmem:[#allocation10 + $0x6c] ss:$16 sps:$4 sm:$0xff]   ;;  %5193 = vmatprep.subr.bf16.mxu1 %v5715_v24  ;;  %v5345_v35 = vld [vmem:[#allocation10 + $0xa4] ss:$16 sps:$4 sm:$0xff]  }
0x2023   :  { %v4008_v13 = vmax.f32 %v4003_v14, 0.0  ;;  %v5344_v14 = vld [vmem:[#allocation10 + $0x8c] ss:$16 sps:$4 sm:$0xff]  }
0x2024   :  { %v6359_v54 = vpack.c.bf16 %v4007_v19, %v4007_v19  ;;  %v5346_v18 = vld [vmem:[#allocation10 + $0xac] ss:$16 sps:$4 sm:$0xff]   ;;  %v5347_v19 = vld [vmem:[#allocation10 + $0xc4] ss:$16 sps:$4 sm:$0xff]  }
0x2025   :  { %v4010_v40 = vpack.c.bf16 %v4008_v13, %v4008_v13  ;;  %5194 = vmatpush3.bf16.msra.mxu1 %v5343_v50  ;;  %v5348_v21 = vld [vmem:[#allocation10 + $0xcc] ss:$16 sps:$4 sm:$0xff]   ;;  %v4548_v50 = vld [vmem:[#allocation13 + $0x40] ss:$0 sm:$0xff] }
0x2026   :  { %5195 = vmatprep.subr.bf16.mxu1 %v5715_v24 }
0x2027   :  { %4139 = vmatprep.mubr.bf16.mxu0 %v4010_v40 }
0x2028   :  { %4140 = vmatmul.mubr.bf16.vlgmr.msra.gmra.mrb[44].mxu0 %v6359_v54 }
0x2029   :  { %5084 = vmatpush3.bf16.msra.mxu0 %v4952_v0  ;;  %4277 = vmatprep.mubr.bf16.mxu0 %v4010_v40 }
0x202a   :  { %5085 = vmatprep.subr.bf16.mxu0 %v4961_v6  ;;  %5196 = vmatpush3.bf16.msra.mxu1 %v5345_v35  ;;  %v3720_v6 = vld [vmem:[#allocation13 + $0xe] ss:$0 sm:$0xff] }
0x202b   :  { %5197 = vmatprep.subr.bf16.mxu1 %v5715_v24 }
0x202d   :  { %5086 = vmatpush3.bf16.msra.mxu0 %v4953_v17 }
0x202e   :  { %5087 = vmatprep.subr.bf16.mxu0 %v4962_v33  ;;  %5198 = vmatpush3.bf16.msra.mxu1 %v5347_v19 }
0x202f   :  { %5199 = vmatprep.subr.bf16.mxu1 %v5715_v24 }
0x2031   :  { %5088 = vmatpush3.bf16.msra.mxu0 %v4954_v28 }
0x2032   :  { %5089 = vmatprep.subr.bf16.mxu0 %v4963_v43  ;;  %5200 = vmatpush3.bf16.msra.mxu1 %v5349_v23 }
0x2033   :  { %5225 = vmatprep.subr.bf16.mxu1 %v5715_v24 }
0x2035   :  { %5090 = vmatpush3.bf16.msra.mxu0 %v4955_v34 }
0x2036   :  { %5091 = vmatprep.subr.bf16.mxu0 %v4964_v53 }
0x2039   :  { %5092 = vmatpush3.bf16.msra.mxu0 %v4956_v22 }
0x203a   :  { %5093 = vmatprep.subr.bf16.mxu0 %v4965_v15 }
0x203d   :  { %5094 = vmatpush3.bf16.msra.mxu0 %v4957_v4  ;;  %v5355_v4 = vld [vmem:[#allocation12 + $0x8] ss:$12 sps:$4 sm:$0xff]  }
0x203e   :  { %5095 = vmatprep.subr.bf16.mxu0 %v4966_v44  ;;  %v5356_v44 = vld [vmem:[#allocation12 + $0x20] ss:$12 sps:$4 sm:$0xff]  }
0x2041   :  { %5096 = vmatpush3.bf16.msra.mxu0 %v4958_v5 }
0x2042   :  { %5097 = vmatprep.subr.bf16.mxu0 %v4967_v8 }
0x2045   :  { %5098 = vmatpush3.bf16.msra.mxu0 %v4959_v46 }
0x2046   :  { %5205 = vmatprep.subr.bf16.mxu0 %v5715_v24 }
0x2048   :  { %4278 = vmatmul.mubr.bf16.vlgmr.msra.gmra.mrb[48].mxu0 %v6359_v54 }
0x2049   :  { %5206 = vmatpush3.bf16.msra.mxu0 %v5336_v47  ;;  %5221 = vmatprep.mubr.msk.bf16.mxu0 %vm5716_vm9, %v5715_v24  ;;  %v2914_v47 = vld [vmem:[#allocation13 + $0x17] ss:$0 sm:$0xff] }
0x204a   :  { %5207 = vmatprep.subr.bf16.mxu0 %v5715_v24 }
0x204d   :  { %5208 = vmatpush3.bf16.msra.mxu0 %v5338_v41 }
0x204e   :  { %5209 = vmatprep.subr.bf16.mxu0 %v5715_v24 }
0x2051   :  { %5210 = vmatpush3.bf16.msra.mxu0 %v5340_v49 }
0x2052   :  { %5211 = vmatprep.subr.bf16.mxu0 %v5715_v24 }
0x2055   :  { %5212 = vmatpush3.bf16.msra.mxu0 %v5342_v51 }
0x2056   :  { %5213 = vmatprep.subr.bf16.mxu0 %v5715_v24 }
0x2059   :  { %5214 = vmatpush3.bf16.msra.mxu0 %v5344_v14 }
0x205a   :  { %5215 = vmatprep.subr.bf16.mxu0 %v5715_v24 }
0x205d   :  { %5216 = vmatpush3.bf16.msra.mxu0 %v5346_v18 }
0x205e   :  { %5217 = vmatprep.subr.bf16.mxu0 %v5715_v24 }
0x2061   :  { %5218 = vmatpush3.bf16.msra.mxu0 %v5348_v21 }
0x2062   :  { %5219 = vmatprep.subr.bf16.mxu0 %v5715_v24 }
0x2065   :  { %5220 = vmatpush3.bf16.msra.mxu0 %v5350_v25 }
0x2066   :  { %5237 = vmatprep.subr.bf16.mxu0 %v5715_v24 }
0x20bb   :  { %v3645_v13 = vpop.f32.mrb[40].mxu0 }
0x20bc   :  { %v6383_v26 = vadd.f32 %v3645_v13, %v6353_v10  ;;  %v5183_v55 = vpop.f32.mrb[41].mxu0 }
0x20bd   :  { %v3648_v40 = vpop.f32.mrb[42].mxu0 }
0x20be   :  { %v5184_v0 = vpop.f32.mrb[43].mxu0  ;;  %v3651_v32 = vadd.f32 %v6383_v26, %v2914_v47 }
0x20c0   :  { %v3652_v41 = vmax.f32 %v3651_v32, 0.0 }
0x20c2   :  { %v3653_v48 = vpack.c.bf16 %v3652_v41, %v3652_v41 }
0x20fb   :  { %v5077_v54 = vpop.f32.mrb[44].mxu0 }
0x20fc   :  { %v5078_v16 = vpop.f32.mrb[45].mxu0 }
0x20fd   :  { %v5079_v20 = vadd.f32 %v5078_v16, %v5077_v54  ;;  %v5080_v60 = vpop.f32.mrb[46].mxu0 }
0x20fe   :  { %v5081_v12 = vpop.f32.mrb[47].mxu0 }
0x20ff   :  { %v4142_v17 = vadd.f32 %v5079_v20, %v3720_v6 }
0x2101   :  { %v4147_v33 = vmax.f32 %v4142_v17, 0.0 }
0x2103   :  { %v4148_v29 = vpack.c.bf16 %v4147_v33, %v4147_v33 }
0x2105   :  { %5202 = vmatmul.mubr.bf16.vlgmr.msra.gmra.mrb[56].mxu1 %v4148_v29  ;;  %5222 = vmatmul.mubr.bf16.vlgmr.msra.gmra.mrb[52].mxu0 %v4148_v29 }
0x2106   :  { %5226 = vmatpush3.bf16.msra.mxu1 %v5351_v52  ;;  %5233 = vmatprep.mubr.msk.bf16.mxu1 %vm5716_vm9, %v5715_v24 }
0x2107   :  { %5227 = vmatprep.subr.bf16.mxu1 %v5715_v24  ;;  %5245 = vmatprep.mubr.msk.bf16.mxu0 %vm5716_vm9, %v5715_v24 }
0x2108   :  { %5238 = vmatpush3.bf16.msra.mxu0 %v5355_v4 }
0x2109   :  { %5239 = vmatprep.subr.bf16.mxu0 %v5715_v24 }
0x210a   :  { %5228 = vmatpush3.bf16.msra.mxu1 %v5352_v31 }
0x210b   :  { %5229 = vmatprep.subr.bf16.mxu1 %v5715_v24 }
0x210c   :  { %5240 = vmatpush3.bf16.msra.mxu0 %v5356_v44 }
0x210d   :  { %5241 = vmatprep.subr.bf16.mxu0 %v5715_v24 }
0x210e   :  { %5230 = vmatpush3.bf16.msra.mxu1 %v5353_v37 }
0x210f   :  { %5231 = vmatprep.subr.bf16.mxu1 %v5715_v24 }
0x2110   :  { %5242 = vmatpush3.bf16.msra.mxu0 %v5357_v63 }
0x2111   :  { %5243 = vmatprep.subr.bf16.mxu0 %v5715_v24 }
0x2112   :  { %5232 = vmatpush3.bf16.msra.mxu1 %v5354_v27 }
0x2114   :  { %5244 = vmatpush3.bf16.msra.mxu0 %v5358_v1 }
0x211b   :  { %v5099_v10 = vpop.f32.mrb[48].mxu0 }
0x211c   :  { %v5100_v36 = vpop.f32.mrb[49].mxu0 }
0x211d   :  { %v5101_v28 = vadd.f32 %v5100_v36, %v5099_v10  ;;  %v5102_v43 = vpop.f32.mrb[50].mxu0 }
0x211e   :  { %v5103_v30 = vpop.f32.mrb[51].mxu0 }
0x21d8   :  { %v4367_v34 = vpop.f32.mrb[56].mxu1  ;;  %v4458_v53 = vpop.f32.mrb[52].mxu0 }
0x21d9   :  { %v4368_v61 = vadd.f32 %v5101_v28, %v4367_v34  ;;  %v5203_v57 = vpop.f32.mrb[57].mxu1  ;;  %v5223_v2 = vpop.f32.mrb[53].mxu0 }
0x21da   :  { %v4370_v59 = vpop.f32.mrb[58].mxu1  ;;  %v4461_v22 = vpop.f32.mrb[54].mxu0 }
0x21db   :  { %v4373_v15 = vadd.f32 %v4368_v61, %v3769_v42  ;;  %v5204_v7 = vpop.f32.mrb[59].mxu1  ;;  %v5224_v3 = vpop.f32.mrb[55].mxu0 }
0x21dd   :  { %v4374_v11 = vmax.f32 %v4373_v15, 0.0 }
0x21df   :  { %v4375_v62 = vpack.c.bf16 %v4374_v11, %v4374_v11 }
0x21e1   :  { %5234 = vmatmul.mubr.msk.bf16.vlgmr.msra.gmra.mrb[60].mxu1 %vm655_vm1, %v4375_v62 }
0x22b4   :  { %v4525_v45 = vpop.f32.mrb[60].mxu1 }
0x22b5   :  { %v4526_v5 = vadd.f32 %v4525_v45, %v4458_v53  ;;  %v5235_v8 = vpop.f32.mrb[61].mxu1 }
0x22b6   :  { %v4528_v39 = vpop.f32.mrb[62].mxu1 }
0x22b7   :  { %v5236_v56 = vpop.f32.mrb[63].mxu1  ;;  %v4531_v46 = vadd.f32 %v4526_v5, %v3794_v9 }
0x22b9   :  { %v4532_v38 = vmax.f32 %v4531_v46, 0.0 }
0x22bb   :  { %v4533_v58 = vpack.c.bf16 %v4532_v38, %v4532_v38 }
0x22bd   :  { %4535 = vrot.lane.b32.xlu0 %v4533_v58, %s5683_s16 }
0x232f   :  { %v4536_v49 = vpop.permute.xlu0 %4535 }
0x2330   :  { %v4539_v24 = vsel %vm405_vm0, %v3653_v48, %v4536_v49 }
0x2331   :  { %5246 = vmatmul.mubr.msk.bf16.vlgmr.msra.gmra.mrb[56].mxu0 %vm655_vm1, %v4539_v24 }
0x2404   :  { %v4609_v51 = vpop.f32.mrb[56].mxu0 }
0x2405   :  { %v4610_v35 = vadd.f32 %v4609_v51, %v4548_v50  ;;  %v5247_v14 = vpop.f32.mrb[57].mxu0 }
0x2406   :  { %v4612_v18 = vpop.f32.mrb[58].mxu0 }
0x2407   :  { %4615 = vst [vmem:[%s6411_s8] sm:$0x3] %v4610_v35  ;;  %v5248_v19 = vpop.f32.mrb[59].mxu0 }
0x2408   :  { %4620 = vsyncpa [#allocation3], 1 }
0x2409   :  { %4621 = vsyncpa [#allocation5], 1 }
0x240a   :  { %4622 = vsyncpa [#allocation8], 1 }
0x240b   :  { %4623 = vsyncpa [#allocation11], 1 }
0x240c   :  { %4624 = vsyncpa [#allocation14], 1 }

</bundles_post_ra>
